<compile_context>
chip_gen: v7x
topology: tpu7x:2x2x1
jax: 0.10.0
libtpu: 0.0.40
codegen_flags: <defaults>
</compile_context>

<pallas_src>
import math
from functools import partial

import numpy as np
import jax
import jax.numpy as jnp
from jax import lax
from jax.experimental import pallas as pl
from jax.experimental.pallas import tpu as pltpu

_EPS = 1e-5  # PyTorch GroupNorm default


# ----------------------- host-side constant matrices -----------------------

def _interp_matrix(n_in, n_out):
    """1-D bilinear interpolation matrix, align_corners=True (PyTorch semantics)."""
    m = np.zeros((n_out, n_in), np.float32)
    if n_in == 1:
        m[:, 0] = 1.0
        return m
    if n_out == 1:
        m[0, 0] = 1.0
        return m
    pos = np.arange(n_out, dtype=np.float64) * (n_in - 1) / (n_out - 1)
    i0 = np.clip(np.floor(pos).astype(np.int64), 0, n_in - 2)
    frac = (pos - i0).astype(np.float32)
    m[np.arange(n_out), i0] += 1.0 - frac
    m[np.arange(n_out), i0 + 1] += frac
    return m


def _shift_matrices(hh, ww, dil):
    """9 (S,S) 0/1 matrices: S_k @ x_flat == x shifted by tap k of a 3x3 conv (pad=dil)."""
    mats = []
    for dh in (-dil, 0, dil):
        for dw in (-dil, 0, dil):
            m = np.zeros((hh * ww, hh * ww), np.float32)
            for p in range(hh):
                for q in range(ww):
                    sp, sq = p + dh, q + dw
                    if 0 <= sp < hh and 0 <= sq < ww:
                        m[p * ww + q, sp * ww + sq] = 1.0
            mats.append(m)
    return np.stack(mats, 0)


def _zoom_matrix(hh, ww, c0, c1, c2, c3):
    """(S,S) matrix: crop latent rows c0:c1 / cols c2:c3, bilinear(align_corners) to (hh,ww)."""
    ch, cw = c1 - c0, c3 - c2
    k = np.kron(_interp_matrix(ch, hh), _interp_matrix(cw, ww))   # (hh*ww, ch*cw)
    m = np.zeros((hh * ww, hh * ww), np.float32)
    for ih in range(ch):
        for iw in range(cw):
            m[:, (c0 + ih) * ww + (c2 + iw)] = k[:, ih * cw + iw]
    return m


def _upsample_matrix_T(hh, ww, r):
    """Transposed x r bilinear(align_corners) upsample matrix, shape (S, S*r*r)."""
    u = np.kron(_interp_matrix(hh, hh * r), _interp_matrix(ww, ww * r))  # (S*r*r, S)
    return np.ascontiguousarray(u.T)


# ------------------------------ fused kernel ------------------------------

def _fused_kernel(xp_ref, sh_ref, encw_ref, decwa_ref, decw32_ref, b_ref, ut_ref,
                  o_ref, *, C, Ca, gs, eps):
    P2 = xp_ref.shape[3]
    Cin = 2 * C
    # static row offsets into the packed weight slabs
    o_w2 = P2
    o_w3 = P2 + 9 * C
    o_wp = 9 * Ca
    o_wpr3 = o_wp + Cin
    o_wprP = o_wpr3 + 3 * Ca
    o_wct = o_wprP + Ca

    def gn(h, gamma, beta):
        """GroupNorm over (S, C) tile; gs==1 (num_groups==C) in the demo config."""
        if gs == 1:
            mu = jnp.mean(h, axis=0, keepdims=True)
            d = h - mu
            var = jnp.mean(d * d, axis=0, keepdims=True)
            hn = d * lax.rsqrt(var + eps)
        else:  # general path (statically dead for the demo config)
            s, c = h.shape
            hg = h.reshape(s, c // gs, gs)
            mu = jnp.mean(hg, axis=(0, 2), keepdims=True)
            d = hg - mu
            var = jnp.mean(d * d, axis=(0, 2), keepdims=True)
            hn = (d * lax.rsqrt(var + eps)).reshape(s, c)
        return hn * gamma + beta

    def pack_taps(xb, ntap):
        """Packed im2col on the flattened latent grid: (S, Cin) -> (S, ntap*Cin) bf16."""
        parts = [jnp.dot(sh_ref[k], xb, preferred_element_type=jnp.float32)
                 for k in range(ntap)]
        return jnp.concatenate(parts, axis=1).astype(jnp.bfloat16)

    def encode(x):
        """ExtResNetBlock (gcr): GN0 -> 4x4/s4 conv -> ReLU -> GN -> 3x3 -> ReLU -> GN -> 3x3 -> +res -> ReLU."""
        mu = jnp.mean(x, axis=(0, 1), keepdims=True)
        d = x - mu
        var = jnp.mean(d * d, axis=(0, 1), keepdims=True)
        xn = (d * lax.rsqrt(var + eps)).astype(jnp.bfloat16)
        # GN0 gamma/beta are folded into the patchify weight/bias (exact: no padding).
        h = jnp.dot(xn, encw_ref[0:P2], preferred_element_type=jnp.float32) + b_ref[0:1, 0:C]
        h = jnp.maximum(h, 0.0)
        res = h
        hn = gn(h, b_ref[3:4, 0:C], b_ref[4:5, 0:C]).astype(jnp.bfloat16)
        h2 = jnp.dot(pack_taps(hn, 9), encw_ref[o_w2:o_w2 + 9 * C],
                     preferred_element_type=jnp.float32) + b_ref[1:2, 0:C]
        h2 = jnp.maximum(h2, 0.0)
        h2n = gn(h2, b_ref[5:6, 0:C], b_ref[6:7, 0:C]).astype(jnp.bfloat16)
        h3 = jnp.dot(pack_taps(h2n, 9), encw_ref[o_w3:o_w3 + 9 * C],
                     preferred_element_type=jnp.float32) + b_ref[2:3, 0:C]
        return jnp.maximum(h3 + res, 0.0)                               # (S, C) f32

    def decode(cat):
        """DeepLabHead on the (S, 2C) concat; returns channel-major (8, S*r*r) logits."""
        catb = cat.astype(jnp.bfloat16)
        # merged ASPP: [1x1 | 3x3 d1 | 3x3 d2] as one packed-K matmul (K = 18*2C)
        aspp3 = jnp.dot(pack_taps(catb, 18), decwa_ref[...],
                        preferred_element_type=jnp.float32) + b_ref[7:8, 0:3 * Ca]
        aspp3 = jnp.maximum(aspp3, 0.0).astype(jnp.bfloat16)            # (S, 3Ca)
        # image-pool branch folded into the projection as a dynamic bias
        pooled = jnp.mean(cat, axis=0, keepdims=True).astype(jnp.bfloat16)   # (1, 2C)
        pb = jnp.dot(pooled, decw32_ref[o_wp:o_wp + Cin],
                     preferred_element_type=jnp.float32) + b_ref[8:9, 0:Ca]
        pb = jnp.maximum(pb, 0.0).astype(jnp.bfloat16)
        dyn_b = jnp.dot(pb, decw32_ref[o_wprP:o_wprP + Ca],
                        preferred_element_type=jnp.float32) + b_ref[9:10, 0:Ca]
        proj = jnp.maximum(jnp.dot(aspp3, decw32_ref[o_wpr3:o_wpr3 + 3 * Ca],
                                   preferred_element_type=jnp.float32) + dyn_b, 0.0)
        projb = proj.astype(jnp.bfloat16)
        # 3x3 head conv (packed-K), ReLU
        head = jnp.maximum(jnp.dot(pack_taps(projb, 9), decw32_ref[0:9 * Ca],
                                   preferred_element_type=jnp.float32) + b_ref[10:11, 0:Ca],
                           0.0)
        headb = head.astype(jnp.bfloat16)
        # classifier computed channel-major:  logits_t[class, spatial]
        logits_t = lax.dot_general(decw32_ref[o_wct:o_wct + 16], headb,
                                   (((1,), (1,)), ((), ())),
                                   preferred_element_type=jnp.float32)   # (16, S)
        logits8 = logits_t[0:8, :] + b_ref[16:24, 0:1]                   # (8, S)
        # x`ratio` bilinear upsample as one constant-matrix dot; lane-dense result
        return jnp.dot(logits8.astype(jnp.bfloat16), ut_ref[...],
                       preferred_element_type=jnp.float32)               # (8, S*r*r)

    lat_loc = encode(xp_ref[0, 0])                     # (S, C)
    lat_glob = encode(xp_ref[0, 1])                    # (S, C)
    # crop + bilinear zoom of the global latent (constant matrix, bf16, f32 acc)
    zoom = jnp.dot(sh_ref[18], lat_glob.astype(jnp.bfloat16),
                   preferred_element_type=jnp.float32)                   # (S, C)
    o_ref[0, 0] = decode(jnp.concatenate([lat_loc, zoom], axis=1))       # pred
    o_ref[0, 1] = decode(jnp.concatenate([lat_glob, lat_glob], axis=1))  # pred_aux


def _run_fused(xp, shifts, enc_w, dec_wa, dec_w32, biases, u_t, *, C, Ca, gs):
    N, _, S, P2 = xp.shape
    s_out = u_t.shape[1]
    return pl.pallas_call(
        partial(_fused_kernel, C=C, Ca=Ca, gs=gs, eps=_EPS),
        grid=(N,),
        in_specs=[
            pl.BlockSpec((1, 2, S, P2), lambda n: (n, 0, 0, 0)),
            pl.BlockSpec(shifts.shape, lambda n: (0, 0, 0)),
            pl.BlockSpec(enc_w.shape, lambda n: (0, 0)),
            pl.BlockSpec(dec_wa.shape, lambda n: (0, 0)),
            pl.BlockSpec(dec_w32.shape, lambda n: (0, 0)),
            pl.BlockSpec(biases.shape, lambda n: (0, 0)),
            pl.BlockSpec(u_t.shape, lambda n: (0, 0)),
        ],
        out_specs=pl.BlockSpec((1, 2, 8, s_out), lambda n: (n, 0, 0, 0)),
        out_shape=jax.ShapeDtypeStruct((N, 2, 8, s_out), jnp.float32),
        compiler_params=pltpu.CompilerParams(dimension_semantics=("parallel",)),
    )(xp, shifts, enc_w, dec_wa, dec_w32, biases, u_t)


# ----------------------------- parameters -----------------------------

def _conv_init(key, kh, kw, ci, co):
    kw_, kb_ = jax.random.split(key)
    std = 1.0 / math.sqrt(kh * kw * ci)
    w = std * jax.random.normal(kw_, (kh, kw, ci, co), jnp.float32)
    b = 0.01 * jax.random.normal(kb_, (co,), jnp.float32)
    return w, b


def init_params(key, embed_dim=32, num_classes=3):
    keys = jax.random.split(key, 10)
    C = embed_dim
    enc = {
        "gn0_g": jnp.ones((1,), jnp.float32), "gn0_b": jnp.zeros((1,), jnp.float32),
        "gn1_g": jnp.ones((C,), jnp.float32), "gn1_b": jnp.zeros((C,), jnp.float32),
        "gn2_g": jnp.ones((C,), jnp.float32), "gn2_b": jnp.zeros((C,), jnp.float32),
    }
    enc["w1"], enc["b1"] = _conv_init(keys[0], 4, 4, 1, C)      # patchify conv, k=s=4
    enc["w2"], enc["b2"] = _conv_init(keys[1], 3, 3, C, C)
    enc["w3"], enc["b3"] = _conv_init(keys[2], 3, 3, C, C)
    Ca, Cin = C, 2 * C                                          # DeepLabHead(in=2C, aspp=C)
    dec = {}
    dec["aspp0_w"], dec["aspp0_b"] = _conv_init(keys[3], 1, 1, Cin, Ca)
    dec["aspp1_w"], dec["aspp1_b"] = _conv_init(keys[4], 3, 3, Cin, Ca)
    dec["aspp2_w"], dec["aspp2_b"] = _conv_init(keys[5], 3, 3, Cin, Ca)
    dec["asppP_w"], dec["asppP_b"] = _conv_init(keys[6], 1, 1, Cin, Ca)
    dec["proj_w"], dec["proj_b"] = _conv_init(keys[7], 1, 1, 4 * Ca, Ca)
    dec["head_w"], dec["head_b"] = _conv_init(keys[8], 3, 3, Ca, Ca)
    dec["cls_w"], dec["cls_b"] = _conv_init(keys[9], 1, 1, Ca, num_classes)
    return {"enc": enc, "dec": dec}


# ----------------------------- model forward -----------------------------

@partial(jax.jit, static_argnames=("patch", "num_groups", "ratio"))
def _forward_jit(params, x, shifts, u_t, *, patch, num_groups, ratio):
    # x: (N, 2, 1, H, W) with dim1 = (local, global)
    N = x.shape[0]
    H, W = x.shape[3], x.shape[4]
    hh, ww = H // patch, W // patch
    S = hh * ww
    P2 = patch * patch
    # exact im2col of the 4x4/stride-4 patchify conv
    xp = x.reshape(N, 2, 1, hh, patch, ww, patch)
    xp = xp.transpose(0, 1, 3, 5, 4, 6, 2).reshape(N, 2, S, P2).astype(jnp.float32)

    enc, dec = params["enc"], params["dec"]
    C = enc["w1"].shape[-1]
    gs = max(1, C // num_groups)
    Ca = dec["asppP_w"].shape[-1]
    ncls = dec["cls_w"].shape[-1]
    cin = 2 * C
    assert ncls <= 8  # TODO(synk): class dim padded to 8 for a full-sublane store

    # ---- encoder weight slab: [w1 (P2,C); w2 (9C,C); w3 (9C,C)], bf16 ----
    gamma0, beta0 = enc["gn0_g"][0], enc["gn0_b"][0]
    w1f = enc["w1"].reshape(P2, C)
    w1 = w1f * gamma0                                            # fold GN0 gamma (exact: no padding)
    b1 = enc["b1"] + beta0 * jnp.sum(w1f, axis=0)                # fold GN0 beta
    enc_w = jnp.concatenate([w1,
                             enc["w2"].reshape(9 * C, C),
                             enc["w3"].reshape(9 * C, C)], axis=0).astype(jnp.bfloat16)

    # ---- merged ASPP weight (18*2C, 3Ca): lanes = [1x1 | 3x3 d1 | 3x3 d2] ----
    wa = jnp.zeros((18 * cin, 3 * Ca), jnp.float32)
    wa = wa.at[0:9 * cin, Ca:2 * Ca].set(dec["aspp1_w"].reshape(9 * cin, Ca))
    wa = wa.at[9 * cin:18 * cin, 2 * Ca:3 * Ca].set(dec["aspp2_w"].reshape(9 * cin, Ca))
    wa = wa.at[4 * cin:5 * cin, 0:Ca].add(dec["aspp0_w"].reshape(cin, Ca))  # 1x1 on centre tap
    dec_wa = wa.astype(jnp.bfloat16)

    # ---- 32-lane decoder weight slab: [wh (9Ca); wp (2C); wpr3 (3Ca); wprP (Ca); wct_pad (16)] ----
    wpr = dec["proj_w"].reshape(4 * Ca, Ca)
    wct_pad = jnp.zeros((16, Ca), jnp.float32).at[0:ncls].set(
        jnp.transpose(dec["cls_w"].reshape(Ca, ncls)))
    dec_w32 = jnp.concatenate([
        dec["head_w"].reshape(9 * Ca, Ca),
        dec["asppP_w"].reshape(cin, Ca),
        wpr[0:3 * Ca],
        wpr[3 * Ca:4 * Ca],
        wct_pad], axis=0).astype(jnp.bfloat16)

    # ---- one packed bias / GN-affine slab (24, 3Ca) f32 ----
    biases = jnp.zeros((24, 3 * Ca), jnp.float32)
    biases = biases.at[0, 0:C].set(b1)
    biases = biases.at[1, 0:C].set(enc["b2"])
    biases = biases.at[2, 0:C].set(enc["b3"])
    biases = biases.at[3, 0:C].set(enc["gn1_g"])
    biases = biases.at[4, 0:C].set(enc["gn1_b"])
    biases = biases.at[5, 0:C].set(enc["gn2_g"])
    biases = biases.at[6, 0:C].set(enc["gn2_b"])
    biases = biases.at[7, 0:3 * Ca].set(
        jnp.concatenate([dec["aspp0_b"], dec["aspp1_b"], dec["aspp2_b"]]))
    biases = biases.at[8, 0:Ca].set(dec["asppP_b"])
    biases = biases.at[9, 0:Ca].set(dec["proj_b"])
    biases = biases.at[10, 0:Ca].set(dec["head_b"])
    biases = biases.at[16:16 + ncls, 0].set(dec["cls_b"])        # classifier bias as a column

    out = _run_fused(xp, shifts, enc_w, dec_wa, dec_w32, biases, u_t,
                     C=C, Ca=Ca, gs=gs)                           # (N, 2, 8, S*r*r)
    pred = out[:, 0, :ncls, :].reshape(N, ncls, hh * ratio, ww * ratio)
    pred_aux = out[:, 1, :ncls, :].reshape(N, ncls, hh * ratio, ww * ratio)
    return pred, pred_aux


def ema_mpl_forward(params, local_patch, global_img, coordinates,
                    *, num_groups=32, ratio=4, patch=4):
    """EMA_MPL.forward == student Masked_seg.forward(pseudo=True). NCHW in / NCHW out."""
    n, _, h, w = local_patch.shape
    hh, ww = h // patch, w // patch
    # TODO(synk): coordinates must be concrete ints; the zoom matrix is baked at trace time.
    c0, c1, c2, c3 = [int(v) for v in np.asarray(coordinates).reshape(-1)[:4]]
    s1 = _shift_matrices(hh, ww, 1)                               # (9, S, S), 0/1: exact in bf16
    s2 = _shift_matrices(hh, ww, 2)                               # (9, S, S)
    mz = _zoom_matrix(hh, ww, c0, c1, c2, c3)[None]               # (1, S, S)
    shifts = jnp.asarray(np.concatenate([s1, s2, mz], 0)).astype(jnp.bfloat16)
    u_t = jnp.asarray(_upsample_matrix_T(hh, ww, ratio)).astype(jnp.bfloat16)  # (S, S*r*r)
    x = jnp.stack([local_patch, global_img], axis=1)              # (N, 2, 1, H, W)
    return _forward_jit(params, x, shifts, u_t,
                        patch=patch, num_groups=num_groups, ratio=ratio)


# ----------------------------- demo -----------------------------

if __name__ == "__main__":
    key = jax.random.PRNGKey(0)
    pkey, k1, k2 = jax.random.split(key, 3)
    params = init_params(pkey, embed_dim=32, num_classes=3)

    local_patch = jax.random.normal(k1, (2, 1, 16, 16), jnp.float32)   # NCHW
    global_img = jax.random.normal(k2, (2, 1, 16, 16), jnp.float32)    # NCHW
    coordinates = np.array([1, 3, 1, 3], dtype=np.int32)               # crop of the 4x4 latent

    pred, pred_aux = ema_mpl_forward(params, local_patch, global_img, coordinates)
    pred, pred_aux = jax.block_until_ready((pred, pred_aux))

    assert pred.shape == (2, 3, 16, 16), pred.shape
    assert pred_aux.shape == (2, 3, 16, 16), pred_aux.shape
    assert bool(jnp.all(jnp.isfinite(pred))) and bool(jnp.all(jnp.isfinite(pred_aux)))
    print("KERNEL_OK")
</pallas_src>

<mosaic_0001>
module attributes {stable_mosaic.version = 11 : i64} {
  func.func @_fused_kernel(%arg0: i32, %arg1: memref<1x2x16x16xf32, #tpu.memory_space<vmem>>, %arg2: memref<19x16x16xbf16, #tpu.memory_space<vmem>>, %arg3: memref<592x32xbf16, #tpu.memory_space<vmem>>, %arg4: memref<1152x96xbf16, #tpu.memory_space<vmem>>, %arg5: memref<496x32xbf16, #tpu.memory_space<vmem>>, %arg6: memref<24x96xf32, #tpu.memory_space<vmem>>, %arg7: memref<16x256xbf16, #tpu.memory_space<vmem>>, %arg8: memref<1x2x8x256xf32, #tpu.memory_space<vmem>>) attributes {dimension_semantics = [#tpu.dimension_semantics<parallel>], iteration_bounds = array<i64: 2>, scalar_prefetch = 0 : i64, scratch_operands = 0 : i64, tpu.core_type = #tpu.core_type<tc>, window_params = [{transform_indices = @transform_0, window_bounds = array<i64: 1, 2, 16, 16>}, {pipeline_mode = #tpu.pipeline_mode<synchronous>, transform_indices = @transform_1, window_bounds = array<i64: 19, 16, 16>}, {pipeline_mode = #tpu.pipeline_mode<synchronous>, transform_indices = @transform_2, window_bounds = array<i64: 592, 32>}, {pipeline_mode = #tpu.pipeline_mode<synchronous>, transform_indices = @transform_3, window_bounds = array<i64: 1152, 96>}, {pipeline_mode = #tpu.pipeline_mode<synchronous>, transform_indices = @transform_4, window_bounds = array<i64: 496, 32>}, {pipeline_mode = #tpu.pipeline_mode<synchronous>, transform_indices = @transform_5, window_bounds = array<i64: 24, 96>}, {pipeline_mode = #tpu.pipeline_mode<synchronous>, transform_indices = @transform_6, window_bounds = array<i64: 16, 256>}, {transform_indices = @transform_7, window_bounds = array<i64: 1, 2, 8, 256>}]} {
    %c0 = arith.constant 0 : index
    %c0_0 = arith.constant 0 : index
    %c0_1 = arith.constant 0 : index
    %c0_2 = arith.constant 0 : index
    %0 = vector.load %arg1[%c0, %c0_0, %c0_1, %c0_2] : memref<1x2x16x16xf32, #tpu.memory_space<vmem>>, vector<1x1x16x16xf32>
    %1 = vector.shape_cast %0 : vector<1x1x16x16xf32> to vector<16x16xf32>
    %2 = vector.shape_cast %1 : vector<16x16xf32> to vector<1x16x16xf32>
    %cst = arith.constant dense<0.000000e+00> : vector<1xf32>
    %3 = vector.multi_reduction <add>, %2, %cst [1, 2] : vector<1x16x16xf32> to vector<1xf32>
    %4 = vector.shape_cast %3 : vector<1xf32> to vector<1x1x1xf32>
    %5 = vector.extract %4[0, 0, 0] : f32 from vector<1x1x1xf32>
    %6 = vector.broadcast %5 : f32 to vector<1x1xf32>
    %cst_3 = arith.constant 2.560000e+02 : f32
    %7 = vector.broadcast %cst_3 : f32 to vector<1x1xf32>
    %8 = arith.divf %6, %7 : vector<1x1xf32>
    %9 = vector.broadcast %8 : vector<1x1xf32> to vector<16x16xf32>
    %10 = arith.subf %1, %9 : vector<16x16xf32>
    %11 = arith.mulf %10, %10 : vector<16x16xf32>
    %12 = vector.shape_cast %11 : vector<16x16xf32> to vector<1x16x16xf32>
    %cst_4 = arith.constant dense<0.000000e+00> : vector<1xf32>
    %13 = vector.multi_reduction <add>, %12, %cst_4 [1, 2] : vector<1x16x16xf32> to vector<1xf32>
    %14 = vector.shape_cast %13 : vector<1xf32> to vector<1x1x1xf32>
    %15 = vector.extract %14[0, 0, 0] : f32 from vector<1x1x1xf32>
    %16 = vector.broadcast %15 : f32 to vector<1x1xf32>
    %cst_5 = arith.constant 2.560000e+02 : f32
    %17 = vector.broadcast %cst_5 : f32 to vector<1x1xf32>
    %18 = arith.divf %16, %17 : vector<1x1xf32>
    %cst_6 = arith.constant 9.99999974E-6 : f32
    %19 = vector.broadcast %cst_6 : f32 to vector<1x1xf32>
    %20 = arith.addf %18, %19 : vector<1x1xf32>
    %21 = math.rsqrt %20 : vector<1x1xf32>
    %22 = vector.broadcast %21 : vector<1x1xf32> to vector<16x16xf32>
    %23 = arith.mulf %10, %22 : vector<16x16xf32>
    %24 = arith.truncf %23 : vector<16x16xf32> to vector<16x16xbf16>
    %c0_7 = arith.constant 0 : index
    %c0_8 = arith.constant 0 : index
    %25 = vector.load %arg3[%c0_7, %c0_8] : memref<592x32xbf16, #tpu.memory_space<vmem>>, vector<16x32xbf16>
    %cst_9 = arith.constant dense<0.000000e+00> : vector<16x32xf32>
    %26 = tpu.matmul %24, %25, %cst_9 {dimension_numbers = #tpu.dot_dimension_numbers<[1], [0], [0], [1], [0, 0, 1, 1], [], []>} : vector<16x16xbf16>, vector<16x32xbf16>, vector<16x32xf32> -> vector<16x32xf32>
    %c0_10 = arith.constant 0 : index
    %c0_11 = arith.constant 0 : index
    %27 = vector.load %arg6[%c0_10, %c0_11] : memref<24x96xf32, #tpu.memory_space<vmem>>, vector<1x32xf32>
    %28 = vector.broadcast %27 : vector<1x32xf32> to vector<16x32xf32>
    %29 = arith.addf %26, %28 : vector<16x32xf32>
    %cst_12 = arith.constant 0.000000e+00 : f32
    %30 = vector.broadcast %cst_12 : f32 to vector<16x32xf32>
    %31 = arith.maximumf %29, %30 : vector<16x32xf32>
    %c3 = arith.constant 3 : index
    %c0_13 = arith.constant 0 : index
    %32 = vector.load %arg6[%c3, %c0_13] : memref<24x96xf32, #tpu.memory_space<vmem>>, vector<1x32xf32>
    %c4 = arith.constant 4 : index
    %c0_14 = arith.constant 0 : index
    %33 = vector.load %arg6[%c4, %c0_14] : memref<24x96xf32, #tpu.memory_space<vmem>>, vector<1x32xf32>
    %cst_15 = arith.constant dense<0.000000e+00> : vector<32xf32>
    %34 = vector.multi_reduction <add>, %31, %cst_15 [0] : vector<16x32xf32> to vector<32xf32>
    %35 = vector.shape_cast %34 : vector<32xf32> to vector<1x32xf32>
    %cst_16 = arith.constant 1.600000e+01 : f32
    %36 = vector.broadcast %cst_16 : f32 to vector<1x32xf32>
    %37 = arith.divf %35, %36 : vector<1x32xf32>
    %38 = vector.broadcast %37 : vector<1x32xf32> to vector<16x32xf32>
    %39 = arith.subf %31, %38 : vector<16x32xf32>
    %40 = arith.mulf %39, %39 : vector<16x32xf32>
    %cst_17 = arith.constant dense<0.000000e+00> : vector<32xf32>
    %41 = vector.multi_reduction <add>, %40, %cst_17 [0] : vector<16x32xf32> to vector<32xf32>
    %42 = vector.shape_cast %41 : vector<32xf32> to vector<1x32xf32>
    %cst_18 = arith.constant 1.600000e+01 : f32
    %43 = vector.broadcast %cst_18 : f32 to vector<1x32xf32>
    %44 = arith.divf %42, %43 : vector<1x32xf32>
    %cst_19 = arith.constant 9.99999974E-6 : f32
    %45 = vector.broadcast %cst_19 : f32 to vector<1x32xf32>
    %46 = arith.addf %44, %45 : vector<1x32xf32>
    %47 = math.rsqrt %46 : vector<1x32xf32>
    %48 = vector.broadcast %47 : vector<1x32xf32> to vector<16x32xf32>
    %49 = arith.mulf %39, %48 : vector<16x32xf32>
    %50 = vector.broadcast %32 : vector<1x32xf32> to vector<16x32xf32>
    %51 = arith.mulf %49, %50 : vector<16x32xf32>
    %52 = vector.broadcast %33 : vector<1x32xf32> to vector<16x32xf32>
    %53 = arith.addf %51, %52 : vector<16x32xf32>
    %54 = arith.truncf %53 : vector<16x32xf32> to vector<16x32xbf16>
    %c0_20 = arith.constant 0 : index
    %c0_21 = arith.constant 0 : index
    %c0_22 = arith.constant 0 : index
    %55 = vector.load %arg2[%c0_20, %c0_21, %c0_22] : memref<19x16x16xbf16, #tpu.memory_space<vmem>>, vector<1x16x16xbf16>
    %56 = vector.shape_cast %55 : vector<1x16x16xbf16> to vector<16x16xbf16>
    %cst_23 = arith.constant dense<0.000000e+00> : vector<16x32xf32>
    %57 = tpu.matmul %56, %54, %cst_23 {dimension_numbers = #tpu.dot_dimension_numbers<[1], [0], [0], [1], [0, 0, 1, 1], [], []>} : vector<16x16xbf16>, vector<16x32xbf16>, vector<16x32xf32> -> vector<16x32xf32>
    %c1 = arith.constant 1 : index
    %c0_24 = arith.constant 0 : index
    %c0_25 = arith.constant 0 : index
    %58 = vector.load %arg2[%c1, %c0_24, %c0_25] : memref<19x16x16xbf16, #tpu.memory_space<vmem>>, vector<1x16x16xbf16>
    %59 = vector.shape_cast %58 : vector<1x16x16xbf16> to vector<16x16xbf16>
    %cst_26 = arith.constant dense<0.000000e+00> : vector<16x32xf32>
    %60 = tpu.matmul %59, %54, %cst_26 {dimension_numbers = #tpu.dot_dimension_numbers<[1], [0], [0], [1], [0, 0, 1, 1], [], []>} : vector<16x16xbf16>, vector<16x32xbf16>, vector<16x32xf32> -> vector<16x32xf32>
    %c2 = arith.constant 2 : index
    %c0_27 = arith.constant 0 : index
    %c0_28 = arith.constant 0 : index
    %61 = vector.load %arg2[%c2, %c0_27, %c0_28] : memref<19x16x16xbf16, #tpu.memory_space<vmem>>, vector<1x16x16xbf16>
    %62 = vector.shape_cast %61 : vector<1x16x16xbf16> to vector<16x16xbf16>
    %cst_29 = arith.constant dense<0.000000e+00> : vector<16x32xf32>
    %63 = tpu.matmul %62, %54, %cst_29 {dimension_numbers = #tpu.dot_dimension_numbers<[1], [0], [0], [1], [0, 0, 1, 1], [], []>} : vector<16x16xbf16>, vector<16x32xbf16>, vector<16x32xf32> -> vector<16x32xf32>
    %c3_30 = arith.constant 3 : index
    %c0_31 = arith.constant 0 : index
    %c0_32 = arith.constant 0 : index
    %64 = vector.load %arg2[%c3_30, %c0_31, %c0_32] : memref<19x16x16xbf16, #tpu.memory_space<vmem>>, vector<1x16x16xbf16>
    %65 = vector.shape_cast %64 : vector<1x16x16xbf16> to vector<16x16xbf16>
    %cst_33 = arith.constant dense<0.000000e+00> : vector<16x32xf32>
    %66 = tpu.matmul %65, %54, %cst_33 {dimension_numbers = #tpu.dot_dimension_numbers<[1], [0], [0], [1], [0, 0, 1, 1], [], []>} : vector<16x16xbf16>, vector<16x32xbf16>, vector<16x32xf32> -> vector<16x32xf32>
    %c4_34 = arith.constant 4 : index
    %c0_35 = arith.constant 0 : index
    %c0_36 = arith.constant 0 : index
    %67 = vector.load %arg2[%c4_34, %c0_35, %c0_36] : memref<19x16x16xbf16, #tpu.memory_space<vmem>>, vector<1x16x16xbf16>
    %68 = vector.shape_cast %67 : vector<1x16x16xbf16> to vector<16x16xbf16>
    %cst_37 = arith.constant dense<0.000000e+00> : vector<16x32xf32>
    %69 = tpu.matmul %68, %54, %cst_37 {dimension_numbers = #tpu.dot_dimension_numbers<[1], [0], [0], [1], [0, 0, 1, 1], [], []>} : vector<16x16xbf16>, vector<16x32xbf16>, vector<16x32xf32> -> vector<16x32xf32>
    %c5 = arith.constant 5 : index
    %c0_38 = arith.constant 0 : index
    %c0_39 = arith.constant 0 : index
    %70 = vector.load %arg2[%c5, %c0_38, %c0_39] : memref<19x16x16xbf16, #tpu.memory_space<vmem>>, vector<1x16x16xbf16>
    %71 = vector.shape_cast %70 : vector<1x16x16xbf16> to vector<16x16xbf16>
    %cst_40 = arith.constant dense<0.000000e+00> : vector<16x32xf32>
    %72 = tpu.matmul %71, %54, %cst_40 {dimension_numbers = #tpu.dot_dimension_numbers<[1], [0], [0], [1], [0, 0, 1, 1], [], []>} : vector<16x16xbf16>, vector<16x32xbf16>, vector<16x32xf32> -> vector<16x32xf32>
    %c6 = arith.constant 6 : index
    %c0_41 = arith.constant 0 : index
    %c0_42 = arith.constant 0 : index
    %73 = vector.load %arg2[%c6, %c0_41, %c0_42] : memref<19x16x16xbf16, #tpu.memory_space<vmem>>, vector<1x16x16xbf16>
    %74 = vector.shape_cast %73 : vector<1x16x16xbf16> to vector<16x16xbf16>
    %cst_43 = arith.constant dense<0.000000e+00> : vector<16x32xf32>
    %75 = tpu.matmul %74, %54, %cst_43 {dimension_numbers = #tpu.dot_dimension_numbers<[1], [0], [0], [1], [0, 0, 1, 1], [], []>} : vector<16x16xbf16>, vector<16x32xbf16>, vector<16x32xf32> -> vector<16x32xf32>
    %c7 = arith.constant 7 : index
    %c0_44 = arith.constant 0 : index
    %c0_45 = arith.constant 0 : index
    %76 = vector.load %arg2[%c7, %c0_44, %c0_45] : memref<19x16x16xbf16, #tpu.memory_space<vmem>>, vector<1x16x16xbf16>
    %77 = vector.shape_cast %76 : vector<1x16x16xbf16> to vector<16x16xbf16>
    %cst_46 = arith.constant dense<0.000000e+00> : vector<16x32xf32>
    %78 = tpu.matmul %77, %54, %cst_46 {dimension_numbers = #tpu.dot_dimension_numbers<[1], [0], [0], [1], [0, 0, 1, 1], [], []>} : vector<16x16xbf16>, vector<16x32xbf16>, vector<16x32xf32> -> vector<16x32xf32>
    %c8 = arith.constant 8 : index
    %c0_47 = arith.constant 0 : index
    %c0_48 = arith.constant 0 : index
    %79 = vector.load %arg2[%c8, %c0_47, %c0_48] : memref<19x16x16xbf16, #tpu.memory_space<vmem>>, vector<1x16x16xbf16>
    %80 = vector.shape_cast %79 : vector<1x16x16xbf16> to vector<16x16xbf16>
    %cst_49 = arith.constant dense<0.000000e+00> : vector<16x32xf32>
    %81 = tpu.matmul %80, %54, %cst_49 {dimension_numbers = #tpu.dot_dimension_numbers<[1], [0], [0], [1], [0, 0, 1, 1], [], []>} : vector<16x16xbf16>, vector<16x32xbf16>, vector<16x32xf32> -> vector<16x32xf32>
    %82 = tpu.concatenate %57, %60, %63, %66, %69, %72, %75, %78, %81 in 1 : vector<16x32xf32>, vector<16x32xf32>, vector<16x32xf32>, vector<16x32xf32>, vector<16x32xf32>, vector<16x32xf32>, vector<16x32xf32>, vector<16x32xf32>, vector<16x32xf32> -> vector<16x288xf32>
    %83 = arith.truncf %82 : vector<16x288xf32> to vector<16x288xbf16>
    %c16 = arith.constant 16 : index
    %c0_50 = arith.constant 0 : index
    %84 = vector.load %arg3[%c16, %c0_50] : memref<592x32xbf16, #tpu.memory_space<vmem>>, vector<288x32xbf16>
    %cst_51 = arith.constant dense<0.000000e+00> : vector<16x32xf32>
    %85 = tpu.matmul %83, %84, %cst_51 {dimension_numbers = #tpu.dot_dimension_numbers<[1], [0], [0], [1], [0, 0, 1, 1], [], []>} : vector<16x288xbf16>, vector<288x32xbf16>, vector<16x32xf32> -> vector<16x32xf32>
    %c1_52 = arith.constant 1 : index
    %c0_53 = arith.constant 0 : index
    %86 = vector.load %arg6[%c1_52, %c0_53] : memref<24x96xf32, #tpu.memory_space<vmem>>, vector<1x32xf32>
    %87 = vector.broadcast %86 : vector<1x32xf32> to vector<16x32xf32>
    %88 = arith.addf %85, %87 : vector<16x32xf32>
    %cst_54 = arith.constant 0.000000e+00 : f32
    %89 = vector.broadcast %cst_54 : f32 to vector<16x32xf32>
    %90 = arith.maximumf %88, %89 : vector<16x32xf32>
    %c5_55 = arith.constant 5 : index
    %c0_56 = arith.constant 0 : index
    %91 = vector.load %arg6[%c5_55, %c0_56] : memref<24x96xf32, #tpu.memory_space<vmem>>, vector<1x32xf32>
    %c6_57 = arith.constant 6 : index
    %c0_58 = arith.constant 0 : index
    %92 = vector.load %arg6[%c6_57, %c0_58] : memref<24x96xf32, #tpu.memory_space<vmem>>, vector<1x32xf32>
    %cst_59 = arith.constant dense<0.000000e+00> : vector<32xf32>
    %93 = vector.multi_reduction <add>, %90, %cst_59 [0] : vector<16x32xf32> to vector<32xf32>
    %94 = vector.shape_cast %93 : vector<32xf32> to vector<1x32xf32>
    %cst_60 = arith.constant 1.600000e+01 : f32
    %95 = vector.broadcast %cst_60 : f32 to vector<1x32xf32>
    %96 = arith.divf %94, %95 : vector<1x32xf32>
    %97 = vector.broadcast %96 : vector<1x32xf32> to vector<16x32xf32>
    %98 = arith.subf %90, %97 : vector<16x32xf32>
    %99 = arith.mulf %98, %98 : vector<16x32xf32>
    %cst_61 = arith.constant dense<0.000000e+00> : vector<32xf32>
    %100 = vector.multi_reduction <add>, %99, %cst_61 [0] : vector<16x32xf32> to vector<32xf32>
    %101 = vector.shape_cast %100 : vector<32xf32> to vector<1x32xf32>
    %cst_62 = arith.constant 1.600000e+01 : f32
    %102 = vector.broadcast %cst_62 : f32 to vector<1x32xf32>
    %103 = arith.divf %101, %102 : vector<1x32xf32>
    %cst_63 = arith.constant 9.99999974E-6 : f32
    %104 = vector.broadcast %cst_63 : f32 to vector<1x32xf32>
    %105 = arith.addf %103, %104 : vector<1x32xf32>
    %106 = math.rsqrt %105 : vector<1x32xf32>
    %107 = vector.broadcast %106 : vector<1x32xf32> to vector<16x32xf32>
    %108 = arith.mulf %98, %107 : vector<16x32xf32>
    %109 = vector.broadcast %91 : vector<1x32xf32> to vector<16x32xf32>
    %110 = arith.mulf %108, %109 : vector<16x32xf32>
    %111 = vector.broadcast %92 : vector<1x32xf32> to vector<16x32xf32>
    %112 = arith.addf %110, %111 : vector<16x32xf32>
    %113 = arith.truncf %112 : vector<16x32xf32> to vector<16x32xbf16>
    %c0_64 = arith.constant 0 : index
    %c0_65 = arith.constant 0 : index
    %c0_66 = arith.constant 0 : index
    %114 = vector.load %arg2[%c0_64, %c0_65, %c0_66] : memref<19x16x16xbf16, #tpu.memory_space<vmem>>, vector<1x16x16xbf16>
    %115 = vector.shape_cast %114 : vector<1x16x16xbf16> to vector<16x16xbf16>
    %cst_67 = arith.constant dense<0.000000e+00> : vector<16x32xf32>
    %116 = tpu.matmul %115, %113, %cst_67 {dimension_numbers = #tpu.dot_dimension_numbers<[1], [0], [0], [1], [0, 0, 1, 1], [], []>} : vector<16x16xbf16>, vector<16x32xbf16>, vector<16x32xf32> -> vector<16x32xf32>
    %c1_68 = arith.constant 1 : index
    %c0_69 = arith.constant 0 : index
    %c0_70 = arith.constant 0 : index
    %117 = vector.load %arg2[%c1_68, %c0_69, %c0_70] : memref<19x16x16xbf16, #tpu.memory_space<vmem>>, vector<1x16x16xbf16>
    %118 = vector.shape_cast %117 : vector<1x16x16xbf16> to vector<16x16xbf16>
    %cst_71 = arith.constant dense<0.000000e+00> : vector<16x32xf32>
    %119 = tpu.matmul %118, %113, %cst_71 {dimension_numbers = #tpu.dot_dimension_numbers<[1], [0], [0], [1], [0, 0, 1, 1], [], []>} : vector<16x16xbf16>, vector<16x32xbf16>, vector<16x32xf32> -> vector<16x32xf32>
    %c2_72 = arith.constant 2 : index
    %c0_73 = arith.constant 0 : index
    %c0_74 = arith.constant 0 : index
    %120 = vector.load %arg2[%c2_72, %c0_73, %c0_74] : memref<19x16x16xbf16, #tpu.memory_space<vmem>>, vector<1x16x16xbf16>
    %121 = vector.shape_cast %120 : vector<1x16x16xbf16> to vector<16x16xbf16>
    %cst_75 = arith.constant dense<0.000000e+00> : vector<16x32xf32>
    %122 = tpu.matmul %121, %113, %cst_75 {dimension_numbers = #tpu.dot_dimension_numbers<[1], [0], [0], [1], [0, 0, 1, 1], [], []>} : vector<16x16xbf16>, vector<16x32xbf16>, vector<16x32xf32> -> vector<16x32xf32>
    %c3_76 = arith.constant 3 : index
    %c0_77 = arith.constant 0 : index
    %c0_78 = arith.constant 0 : index
    %123 = vector.load %arg2[%c3_76, %c0_77, %c0_78] : memref<19x16x16xbf16, #tpu.memory_space<vmem>>, vector<1x16x16xbf16>
    %124 = vector.shape_cast %123 : vector<1x16x16xbf16> to vector<16x16xbf16>
    %cst_79 = arith.constant dense<0.000000e+00> : vector<16x32xf32>
    %125 = tpu.matmul %124, %113, %cst_79 {dimension_numbers = #tpu.dot_dimension_numbers<[1], [0], [0], [1], [0, 0, 1, 1], [], []>} : vector<16x16xbf16>, vector<16x32xbf16>, vector<16x32xf32> -> vector<16x32xf32>
    %c4_80 = arith.constant 4 : index
    %c0_81 = arith.constant 0 : index
    %c0_82 = arith.constant 0 : index
    %126 = vector.load %arg2[%c4_80, %c0_81, %c0_82] : memref<19x16x16xbf16, #tpu.memory_space<vmem>>, vector<1x16x16xbf16>
    %127 = vector.shape_cast %126 : vector<1x16x16xbf16> to vector<16x16xbf16>
    %cst_83 = arith.constant dense<0.000000e+00> : vector<16x32xf32>
    %128 = tpu.matmul %127, %113, %cst_83 {dimension_numbers = #tpu.dot_dimension_numbers<[1], [0], [0], [1], [0, 0, 1, 1], [], []>} : vector<16x16xbf16>, vector<16x32xbf16>, vector<16x32xf32> -> vector<16x32xf32>
    %c5_84 = arith.constant 5 : index
    %c0_85 = arith.constant 0 : index
    %c0_86 = arith.constant 0 : index
    %129 = vector.load %arg2[%c5_84, %c0_85, %c0_86] : memref<19x16x16xbf16, #tpu.memory_space<vmem>>, vector<1x16x16xbf16>
    %130 = vector.shape_cast %129 : vector<1x16x16xbf16> to vector<16x16xbf16>
    %cst_87 = arith.constant dense<0.000000e+00> : vector<16x32xf32>
    %131 = tpu.matmul %130, %113, %cst_87 {dimension_numbers = #tpu.dot_dimension_numbers<[1], [0], [0], [1], [0, 0, 1, 1], [], []>} : vector<16x16xbf16>, vector<16x32xbf16>, vector<16x32xf32> -> vector<16x32xf32>
    %c6_88 = arith.constant 6 : index
    %c0_89 = arith.constant 0 : index
    %c0_90 = arith.constant 0 : index
    %132 = vector.load %arg2[%c6_88, %c0_89, %c0_90] : memref<19x16x16xbf16, #tpu.memory_space<vmem>>, vector<1x16x16xbf16>
    %133 = vector.shape_cast %132 : vector<1x16x16xbf16> to vector<16x16xbf16>
    %cst_91 = arith.constant dense<0.000000e+00> : vector<16x32xf32>
    %134 = tpu.matmul %133, %113, %cst_91 {dimension_numbers = #tpu.dot_dimension_numbers<[1], [0], [0], [1], [0, 0, 1, 1], [], []>} : vector<16x16xbf16>, vector<16x32xbf16>, vector<16x32xf32> -> vector<16x32xf32>
    %c7_92 = arith.constant 7 : index
    %c0_93 = arith.constant 0 : index
    %c0_94 = arith.constant 0 : index
    %135 = vector.load %arg2[%c7_92, %c0_93, %c0_94] : memref<19x16x16xbf16, #tpu.memory_space<vmem>>, vector<1x16x16xbf16>
    %136 = vector.shape_cast %135 : vector<1x16x16xbf16> to vector<16x16xbf16>
    %cst_95 = arith.constant dense<0.000000e+00> : vector<16x32xf32>
    %137 = tpu.matmul %136, %113, %cst_95 {dimension_numbers = #tpu.dot_dimension_numbers<[1], [0], [0], [1], [0, 0, 1, 1], [], []>} : vector<16x16xbf16>, vector<16x32xbf16>, vector<16x32xf32> -> vector<16x32xf32>
    %c8_96 = arith.constant 8 : index
    %c0_97 = arith.constant 0 : index
    %c0_98 = arith.constant 0 : index
    %138 = vector.load %arg2[%c8_96, %c0_97, %c0_98] : memref<19x16x16xbf16, #tpu.memory_space<vmem>>, vector<1x16x16xbf16>
    %139 = vector.shape_cast %138 : vector<1x16x16xbf16> to vector<16x16xbf16>
    %cst_99 = arith.constant dense<0.000000e+00> : vector<16x32xf32>
    %140 = tpu.matmul %139, %113, %cst_99 {dimension_numbers = #tpu.dot_dimension_numbers<[1], [0], [0], [1], [0, 0, 1, 1], [], []>} : vector<16x16xbf16>, vector<16x32xbf16>, vector<16x32xf32> -> vector<16x32xf32>
    %141 = tpu.concatenate %116, %119, %122, %125, %128, %131, %134, %137, %140 in 1 : vector<16x32xf32>, vector<16x32xf32>, vector<16x32xf32>, vector<16x32xf32>, vector<16x32xf32>, vector<16x32xf32>, vector<16x32xf32>, vector<16x32xf32>, vector<16x32xf32> -> vector<16x288xf32>
    %142 = arith.truncf %141 : vector<16x288xf32> to vector<16x288xbf16>
    %c304 = arith.constant 304 : index
    %c0_100 = arith.constant 0 : index
    %143 = vector.load %arg3[%c304, %c0_100] : memref<592x32xbf16, #tpu.memory_space<vmem>>, vector<288x32xbf16>
    %cst_101 = arith.constant dense<0.000000e+00> : vector<16x32xf32>
    %144 = tpu.matmul %142, %143, %cst_101 {dimension_numbers = #tpu.dot_dimension_numbers<[1], [0], [0], [1], [0, 0, 1, 1], [], []>} : vector<16x288xbf16>, vector<288x32xbf16>, vector<16x32xf32> -> vector<16x32xf32>
    %c2_102 = arith.constant 2 : index
    %c0_103 = arith.constant 0 : index
    %145 = vector.load %arg6[%c2_102, %c0_103] : memref<24x96xf32, #tpu.memory_space<vmem>>, vector<1x32xf32>
    %146 = vector.broadcast %145 : vector<1x32xf32> to vector<16x32xf32>
    %147 = arith.addf %144, %146 : vector<16x32xf32>
    %148 = arith.addf %147, %31 : vector<16x32xf32>
    %cst_104 = arith.constant 0.000000e+00 : f32
    %149 = vector.broadcast %cst_104 : f32 to vector<16x32xf32>
    %150 = arith.maximumf %148, %149 : vector<16x32xf32>
    %c0_105 = arith.constant 0 : index
    %c1_106 = arith.constant 1 : index
    %c0_107 = arith.constant 0 : index
    %c0_108 = arith.constant 0 : index
    %151 = vector.load %arg1[%c0_105, %c1_106, %c0_107, %c0_108] : memref<1x2x16x16xf32, #tpu.memory_space<vmem>>, vector<1x1x16x16xf32>
    %152 = vector.shape_cast %151 : vector<1x1x16x16xf32> to vector<16x16xf32>
    %153 = vector.shape_cast %152 : vector<16x16xf32> to vector<1x16x16xf32>
    %cst_109 = arith.constant dense<0.000000e+00> : vector<1xf32>
    %154 = vector.multi_reduction <add>, %153, %cst_109 [1, 2] : vector<1x16x16xf32> to vector<1xf32>
    %155 = vector.shape_cast %154 : vector<1xf32> to vector<1x1x1xf32>
    %156 = vector.extract %155[0, 0, 0] : f32 from vector<1x1x1xf32>
    %157 = vector.broadcast %156 : f32 to vector<1x1xf32>
    %cst_110 = arith.constant 2.560000e+02 : f32
    %158 = vector.broadcast %cst_110 : f32 to vector<1x1xf32>
    %159 = arith.divf %157, %158 : vector<1x1xf32>
    %160 = vector.broadcast %159 : vector<1x1xf32> to vector<16x16xf32>
    %161 = arith.subf %152, %160 : vector<16x16xf32>
    %162 = arith.mulf %161, %161 : vector<16x16xf32>
    %163 = vector.shape_cast %162 : vector<16x16xf32> to vector<1x16x16xf32>
    %cst_111 = arith.constant dense<0.000000e+00> : vector<1xf32>
    %164 = vector.multi_reduction <add>, %163, %cst_111 [1, 2] : vector<1x16x16xf32> to vector<1xf32>
    %165 = vector.shape_cast %164 : vector<1xf32> to vector<1x1x1xf32>
    %166 = vector.extract %165[0, 0, 0] : f32 from vector<1x1x1xf32>
    %167 = vector.broadcast %166 : f32 to vector<1x1xf32>
    %cst_112 = arith.constant 2.560000e+02 : f32
    %168 = vector.broadcast %cst_112 : f32 to vector<1x1xf32>
    %169 = arith.divf %167, %168 : vector<1x1xf32>
    %cst_113 = arith.constant 9.99999974E-6 : f32
    %170 = vector.broadcast %cst_113 : f32 to vector<1x1xf32>
    %171 = arith.addf %169, %170 : vector<1x1xf32>
    %172 = math.rsqrt %171 : vector<1x1xf32>
    %173 = vector.broadcast %172 : vector<1x1xf32> to vector<16x16xf32>
    %174 = arith.mulf %161, %173 : vector<16x16xf32>
    %175 = arith.truncf %174 : vector<16x16xf32> to vector<16x16xbf16>
    %c0_114 = arith.constant 0 : index
    %c0_115 = arith.constant 0 : index
    %176 = vector.load %arg3[%c0_114, %c0_115] : memref<592x32xbf16, #tpu.memory_space<vmem>>, vector<16x32xbf16>
    %cst_116 = arith.constant dense<0.000000e+00> : vector<16x32xf32>
    %177 = tpu.matmul %175, %176, %cst_116 {dimension_numbers = #tpu.dot_dimension_numbers<[1], [0], [0], [1], [0, 0, 1, 1], [], []>} : vector<16x16xbf16>, vector<16x32xbf16>, vector<16x32xf32> -> vector<16x32xf32>
    %c0_117 = arith.constant 0 : index
    %c0_118 = arith.constant 0 : index
    %178 = vector.load %arg6[%c0_117, %c0_118] : memref<24x96xf32, #tpu.memory_space<vmem>>, vector<1x32xf32>
    %179 = vector.broadcast %178 : vector<1x32xf32> to vector<16x32xf32>
    %180 = arith.addf %177, %179 : vector<16x32xf32>
    %cst_119 = arith.constant 0.000000e+00 : f32
    %181 = vector.broadcast %cst_119 : f32 to vector<16x32xf32>
    %182 = arith.maximumf %180, %181 : vector<16x32xf32>
    %c3_120 = arith.constant 3 : index
    %c0_121 = arith.constant 0 : index
    %183 = vector.load %arg6[%c3_120, %c0_121] : memref<24x96xf32, #tpu.memory_space<vmem>>, vector<1x32xf32>
    %c4_122 = arith.constant 4 : index
    %c0_123 = arith.constant 0 : index
    %184 = vector.load %arg6[%c4_122, %c0_123] : memref<24x96xf32, #tpu.memory_space<vmem>>, vector<1x32xf32>
    %cst_124 = arith.constant dense<0.000000e+00> : vector<32xf32>
    %185 = vector.multi_reduction <add>, %182, %cst_124 [0] : vector<16x32xf32> to vector<32xf32>
    %186 = vector.shape_cast %185 : vector<32xf32> to vector<1x32xf32>
    %cst_125 = arith.constant 1.600000e+01 : f32
    %187 = vector.broadcast %cst_125 : f32 to vector<1x32xf32>
    %188 = arith.divf %186, %187 : vector<1x32xf32>
    %189 = vector.broadcast %188 : vector<1x32xf32> to vector<16x32xf32>
    %190 = arith.subf %182, %189 : vector<16x32xf32>
    %191 = arith.mulf %190, %190 : vector<16x32xf32>
    %cst_126 = arith.constant dense<0.000000e+00> : vector<32xf32>
    %192 = vector.multi_reduction <add>, %191, %cst_126 [0] : vector<16x32xf32> to vector<32xf32>
    %193 = vector.shape_cast %192 : vector<32xf32> to vector<1x32xf32>
    %cst_127 = arith.constant 1.600000e+01 : f32
    %194 = vector.broadcast %cst_127 : f32 to vector<1x32xf32>
    %195 = arith.divf %193, %194 : vector<1x32xf32>
    %cst_128 = arith.constant 9.99999974E-6 : f32
    %196 = vector.broadcast %cst_128 : f32 to vector<1x32xf32>
    %197 = arith.addf %195, %196 : vector<1x32xf32>
    %198 = math.rsqrt %197 : vector<1x32xf32>
    %199 = vector.broadcast %198 : vector<1x32xf32> to vector<16x32xf32>
    %200 = arith.mulf %190, %199 : vector<16x32xf32>
    %201 = vector.broadcast %183 : vector<1x32xf32> to vector<16x32xf32>
    %202 = arith.mulf %200, %201 : vector<16x32xf32>
    %203 = vector.broadcast %184 : vector<1x32xf32> to vector<16x32xf32>
    %204 = arith.addf %202, %203 : vector<16x32xf32>
    %205 = arith.truncf %204 : vector<16x32xf32> to vector<16x32xbf16>
    %c0_129 = arith.constant 0 : index
    %c0_130 = arith.constant 0 : index
    %c0_131 = arith.constant 0 : index
    %206 = vector.load %arg2[%c0_129, %c0_130, %c0_131] : memref<19x16x16xbf16, #tpu.memory_space<vmem>>, vector<1x16x16xbf16>
    %207 = vector.shape_cast %206 : vector<1x16x16xbf16> to vector<16x16xbf16>
    %cst_132 = arith.constant dense<0.000000e+00> : vector<16x32xf32>
    %208 = tpu.matmul %207, %205, %cst_132 {dimension_numbers = #tpu.dot_dimension_numbers<[1], [0], [0], [1], [0, 0, 1, 1], [], []>} : vector<16x16xbf16>, vector<16x32xbf16>, vector<16x32xf32> -> vector<16x32xf32>
    %c1_133 = arith.constant 1 : index
    %c0_134 = arith.constant 0 : index
    %c0_135 = arith.constant 0 : index
    %209 = vector.load %arg2[%c1_133, %c0_134, %c0_135] : memref<19x16x16xbf16, #tpu.memory_space<vmem>>, vector<1x16x16xbf16>
    %210 = vector.shape_cast %209 : vector<1x16x16xbf16> to vector<16x16xbf16>
    %cst_136 = arith.constant dense<0.000000e+00> : vector<16x32xf32>
    %211 = tpu.matmul %210, %205, %cst_136 {dimension_numbers = #tpu.dot_dimension_numbers<[1], [0], [0], [1], [0, 0, 1, 1], [], []>} : vector<16x16xbf16>, vector<16x32xbf16>, vector<16x32xf32> -> vector<16x32xf32>
    %c2_137 = arith.constant 2 : index
    %c0_138 = arith.constant 0 : index
    %c0_139 = arith.constant 0 : index
    %212 = vector.load %arg2[%c2_137, %c0_138, %c0_139] : memref<19x16x16xbf16, #tpu.memory_space<vmem>>, vector<1x16x16xbf16>
    %213 = vector.shape_cast %212 : vector<1x16x16xbf16> to vector<16x16xbf16>
    %cst_140 = arith.constant dense<0.000000e+00> : vector<16x32xf32>
    %214 = tpu.matmul %213, %205, %cst_140 {dimension_numbers = #tpu.dot_dimension_numbers<[1], [0], [0], [1], [0, 0, 1, 1], [], []>} : vector<16x16xbf16>, vector<16x32xbf16>, vector<16x32xf32> -> vector<16x32xf32>
    %c3_141 = arith.constant 3 : index
    %c0_142 = arith.constant 0 : index
    %c0_143 = arith.constant 0 : index
    %215 = vector.load %arg2[%c3_141, %c0_142, %c0_143] : memref<19x16x16xbf16, #tpu.memory_space<vmem>>, vector<1x16x16xbf16>
    %216 = vector.shape_cast %215 : vector<1x16x16xbf16> to vector<16x16xbf16>
    %cst_144 = arith.constant dense<0.000000e+00> : vector<16x32xf32>
    %217 = tpu.matmul %216, %205, %cst_144 {dimension_numbers = #tpu.dot_dimension_numbers<[1], [0], [0], [1], [0, 0, 1, 1], [], []>} : vector<16x16xbf16>, vector<16x32xbf16>, vector<16x32xf32> -> vector<16x32xf32>
    %c4_145 = arith.constant 4 : index
    %c0_146 = arith.constant 0 : index
    %c0_147 = arith.constant 0 : index
    %218 = vector.load %arg2[%c4_145, %c0_146, %c0_147] : memref<19x16x16xbf16, #tpu.memory_space<vmem>>, vector<1x16x16xbf16>
    %219 = vector.shape_cast %218 : vector<1x16x16xbf16> to vector<16x16xbf16>
    %cst_148 = arith.constant dense<0.000000e+00> : vector<16x32xf32>
    %220 = tpu.matmul %219, %205, %cst_148 {dimension_numbers = #tpu.dot_dimension_numbers<[1], [0], [0], [1], [0, 0, 1, 1], [], []>} : vector<16x16xbf16>, vector<16x32xbf16>, vector<16x32xf32> -> vector<16x32xf32>
    %c5_149 = arith.constant 5 : index
    %c0_150 = arith.constant 0 : index
    %c0_151 = arith.constant 0 : index
    %221 = vector.load %arg2[%c5_149, %c0_150, %c0_151] : memref<19x16x16xbf16, #tpu.memory_space<vmem>>, vector<1x16x16xbf16>
    %222 = vector.shape_cast %221 : vector<1x16x16xbf16> to vector<16x16xbf16>
    %cst_152 = arith.constant dense<0.000000e+00> : vector<16x32xf32>
    %223 = tpu.matmul %222, %205, %cst_152 {dimension_numbers = #tpu.dot_dimension_numbers<[1], [0], [0], [1], [0, 0, 1, 1], [], []>} : vector<16x16xbf16>, vector<16x32xbf16>, vector<16x32xf32> -> vector<16x32xf32>
    %c6_153 = arith.constant 6 : index
    %c0_154 = arith.constant 0 : index
    %c0_155 = arith.constant 0 : index
    %224 = vector.load %arg2[%c6_153, %c0_154, %c0_155] : memref<19x16x16xbf16, #tpu.memory_space<vmem>>, vector<1x16x16xbf16>
    %225 = vector.shape_cast %224 : vector<1x16x16xbf16> to vector<16x16xbf16>
    %cst_156 = arith.constant dense<0.000000e+00> : vector<16x32xf32>
    %226 = tpu.matmul %225, %205, %cst_156 {dimension_numbers = #tpu.dot_dimension_numbers<[1], [0], [0], [1], [0, 0, 1, 1], [], []>} : vector<16x16xbf16>, vector<16x32xbf16>, vector<16x32xf32> -> vector<16x32xf32>
    %c7_157 = arith.constant 7 : index
    %c0_158 = arith.constant 0 : index
    %c0_159 = arith.constant 0 : index
    %227 = vector.load %arg2[%c7_157, %c0_158, %c0_159] : memref<19x16x16xbf16, #tpu.memory_space<vmem>>, vector<1x16x16xbf16>
    %228 = vector.shape_cast %227 : vector<1x16x16xbf16> to vector<16x16xbf16>
    %cst_160 = arith.constant dense<0.000000e+00> : vector<16x32xf32>
    %229 = tpu.matmul %228, %205, %cst_160 {dimension_numbers = #tpu.dot_dimension_numbers<[1], [0], [0], [1], [0, 0, 1, 1], [], []>} : vector<16x16xbf16>, vector<16x32xbf16>, vector<16x32xf32> -> vector<16x32xf32>
    %c8_161 = arith.constant 8 : index
    %c0_162 = arith.constant 0 : index
    %c0_163 = arith.constant 0 : index
    %230 = vector.load %arg2[%c8_161, %c0_162, %c0_163] : memref<19x16x16xbf16, #tpu.memory_space<vmem>>, vector<1x16x16xbf16>
    %231 = vector.shape_cast %230 : vector<1x16x16xbf16> to vector<16x16xbf16>
    %cst_164 = arith.constant dense<0.000000e+00> : vector<16x32xf32>
    %232 = tpu.matmul %231, %205, %cst_164 {dimension_numbers = #tpu.dot_dimension_numbers<[1], [0], [0], [1], [0, 0, 1, 1], [], []>} : vector<16x16xbf16>, vector<16x32xbf16>, vector<16x32xf32> -> vector<16x32xf32>
    %233 = tpu.concatenate %208, %211, %214, %217, %220, %223, %226, %229, %232 in 1 : vector<16x32xf32>, vector<16x32xf32>, vector<16x32xf32>, vector<16x32xf32>, vector<16x32xf32>, vector<16x32xf32>, vector<16x32xf32>, vector<16x32xf32>, vector<16x32xf32> -> vector<16x288xf32>
    %234 = arith.truncf %233 : vector<16x288xf32> to vector<16x288xbf16>
    %c16_165 = arith.constant 16 : index
    %c0_166 = arith.constant 0 : index
    %235 = vector.load %arg3[%c16_165, %c0_166] : memref<592x32xbf16, #tpu.memory_space<vmem>>, vector<288x32xbf16>
    %cst_167 = arith.constant dense<0.000000e+00> : vector<16x32xf32>
    %236 = tpu.matmul %234, %235, %cst_167 {dimension_numbers = #tpu.dot_dimension_numbers<[1], [0], [0], [1], [0, 0, 1, 1], [], []>} : vector<16x288xbf16>, vector<288x32xbf16>, vector<16x32xf32> -> vector<16x32xf32>
    %c1_168 = arith.constant 1 : index
    %c0_169 = arith.constant 0 : index
    %237 = vector.load %arg6[%c1_168, %c0_169] : memref<24x96xf32, #tpu.memory_space<vmem>>, vector<1x32xf32>
    %238 = vector.broadcast %237 : vector<1x32xf32> to vector<16x32xf32>
    %239 = arith.addf %236, %238 : vector<16x32xf32>
    %cst_170 = arith.constant 0.000000e+00 : f32
    %240 = vector.broadcast %cst_170 : f32 to vector<16x32xf32>
    %241 = arith.maximumf %239, %240 : vector<16x32xf32>
    %c5_171 = arith.constant 5 : index
    %c0_172 = arith.constant 0 : index
    %242 = vector.load %arg6[%c5_171, %c0_172] : memref<24x96xf32, #tpu.memory_space<vmem>>, vector<1x32xf32>
    %c6_173 = arith.constant 6 : index
    %c0_174 = arith.constant 0 : index
    %243 = vector.load %arg6[%c6_173, %c0_174] : memref<24x96xf32, #tpu.memory_space<vmem>>, vector<1x32xf32>
    %cst_175 = arith.constant dense<0.000000e+00> : vector<32xf32>
    %244 = vector.multi_reduction <add>, %241, %cst_175 [0] : vector<16x32xf32> to vector<32xf32>
    %245 = vector.shape_cast %244 : vector<32xf32> to vector<1x32xf32>
    %cst_176 = arith.constant 1.600000e+01 : f32
    %246 = vector.broadcast %cst_176 : f32 to vector<1x32xf32>
    %247 = arith.divf %245, %246 : vector<1x32xf32>
    %248 = vector.broadcast %247 : vector<1x32xf32> to vector<16x32xf32>
    %249 = arith.subf %241, %248 : vector<16x32xf32>
    %250 = arith.mulf %249, %249 : vector<16x32xf32>
    %cst_177 = arith.constant dense<0.000000e+00> : vector<32xf32>
    %251 = vector.multi_reduction <add>, %250, %cst_177 [0] : vector<16x32xf32> to vector<32xf32>
    %252 = vector.shape_cast %251 : vector<32xf32> to vector<1x32xf32>
    %cst_178 = arith.constant 1.600000e+01 : f32
    %253 = vector.broadcast %cst_178 : f32 to vector<1x32xf32>
    %254 = arith.divf %252, %253 : vector<1x32xf32>
    %cst_179 = arith.constant 9.99999974E-6 : f32
    %255 = vector.broadcast %cst_179 : f32 to vector<1x32xf32>
    %256 = arith.addf %254, %255 : vector<1x32xf32>
    %257 = math.rsqrt %256 : vector<1x32xf32>
    %258 = vector.broadcast %257 : vector<1x32xf32> to vector<16x32xf32>
    %259 = arith.mulf %249, %258 : vector<16x32xf32>
    %260 = vector.broadcast %242 : vector<1x32xf32> to vector<16x32xf32>
    %261 = arith.mulf %259, %260 : vector<16x32xf32>
    %262 = vector.broadcast %243 : vector<1x32xf32> to vector<16x32xf32>
    %263 = arith.addf %261, %262 : vector<16x32xf32>
    %264 = arith.truncf %263 : vector<16x32xf32> to vector<16x32xbf16>
    %c0_180 = arith.constant 0 : index
    %c0_181 = arith.constant 0 : index
    %c0_182 = arith.constant 0 : index
    %265 = vector.load %arg2[%c0_180, %c0_181, %c0_182] : memref<19x16x16xbf16, #tpu.memory_space<vmem>>, vector<1x16x16xbf16>
    %266 = vector.shape_cast %265 : vector<1x16x16xbf16> to vector<16x16xbf16>
    %cst_183 = arith.constant dense<0.000000e+00> : vector<16x32xf32>
    %267 = tpu.matmul %266, %264, %cst_183 {dimension_numbers = #tpu.dot_dimension_numbers<[1], [0], [0], [1], [0, 0, 1, 1], [], []>} : vector<16x16xbf16>, vector<16x32xbf16>, vector<16x32xf32> -> vector<16x32xf32>
    %c1_184 = arith.constant 1 : index
    %c0_185 = arith.constant 0 : index
    %c0_186 = arith.constant 0 : index
    %268 = vector.load %arg2[%c1_184, %c0_185, %c0_186] : memref<19x16x16xbf16, #tpu.memory_space<vmem>>, vector<1x16x16xbf16>
    %269 = vector.shape_cast %268 : vector<1x16x16xbf16> to vector<16x16xbf16>
    %cst_187 = arith.constant dense<0.000000e+00> : vector<16x32xf32>
    %270 = tpu.matmul %269, %264, %cst_187 {dimension_numbers = #tpu.dot_dimension_numbers<[1], [0], [0], [1], [0, 0, 1, 1], [], []>} : vector<16x16xbf16>, vector<16x32xbf16>, vector<16x32xf32> -> vector<16x32xf32>
    %c2_188 = arith.constant 2 : index
    %c0_189 = arith.constant 0 : index
    %c0_190 = arith.constant 0 : index
    %271 = vector.load %arg2[%c2_188, %c0_189, %c0_190] : memref<19x16x16xbf16, #tpu.memory_space<vmem>>, vector<1x16x16xbf16>
    %272 = vector.shape_cast %271 : vector<1x16x16xbf16> to vector<16x16xbf16>
    %cst_191 = arith.constant dense<0.000000e+00> : vector<16x32xf32>
    %273 = tpu.matmul %272, %264, %cst_191 {dimension_numbers = #tpu.dot_dimension_numbers<[1], [0], [0], [1], [0, 0, 1, 1], [], []>} : vector<16x16xbf16>, vector<16x32xbf16>, vector<16x32xf32> -> vector<16x32xf32>
    %c3_192 = arith.constant 3 : index
    %c0_193 = arith.constant 0 : index
    %c0_194 = arith.constant 0 : index
    %274 = vector.load %arg2[%c3_192, %c0_193, %c0_194] : memref<19x16x16xbf16, #tpu.memory_space<vmem>>, vector<1x16x16xbf16>
    %275 = vector.shape_cast %274 : vector<1x16x16xbf16> to vector<16x16xbf16>
    %cst_195 = arith.constant dense<0.000000e+00> : vector<16x32xf32>
    %276 = tpu.matmul %275, %264, %cst_195 {dimension_numbers = #tpu.dot_dimension_numbers<[1], [0], [0], [1], [0, 0, 1, 1], [], []>} : vector<16x16xbf16>, vector<16x32xbf16>, vector<16x32xf32> -> vector<16x32xf32>
    %c4_196 = arith.constant 4 : index
    %c0_197 = arith.constant 0 : index
    %c0_198 = arith.constant 0 : index
    %277 = vector.load %arg2[%c4_196, %c0_197, %c0_198] : memref<19x16x16xbf16, #tpu.memory_space<vmem>>, vector<1x16x16xbf16>
    %278 = vector.shape_cast %277 : vector<1x16x16xbf16> to vector<16x16xbf16>
    %cst_199 = arith.constant dense<0.000000e+00> : vector<16x32xf32>
    %279 = tpu.matmul %278, %264, %cst_199 {dimension_numbers = #tpu.dot_dimension_numbers<[1], [0], [0], [1], [0, 0, 1, 1], [], []>} : vector<16x16xbf16>, vector<16x32xbf16>, vector<16x32xf32> -> vector<16x32xf32>
    %c5_200 = arith.constant 5 : index
    %c0_201 = arith.constant 0 : index
    %c0_202 = arith.constant 0 : index
    %280 = vector.load %arg2[%c5_200, %c0_201, %c0_202] : memref<19x16x16xbf16, #tpu.memory_space<vmem>>, vector<1x16x16xbf16>
    %281 = vector.shape_cast %280 : vector<1x16x16xbf16> to vector<16x16xbf16>
    %cst_203 = arith.constant dense<0.000000e+00> : vector<16x32xf32>
    %282 = tpu.matmul %281, %264, %cst_203 {dimension_numbers = #tpu.dot_dimension_numbers<[1], [0], [0], [1], [0, 0, 1, 1], [], []>} : vector<16x16xbf16>, vector<16x32xbf16>, vector<16x32xf32> -> vector<16x32xf32>
    %c6_204 = arith.constant 6 : index
    %c0_205 = arith.constant 0 : index
    %c0_206 = arith.constant 0 : index
    %283 = vector.load %arg2[%c6_204, %c0_205, %c0_206] : memref<19x16x16xbf16, #tpu.memory_space<vmem>>, vector<1x16x16xbf16>
    %284 = vector.shape_cast %283 : vector<1x16x16xbf16> to vector<16x16xbf16>
    %cst_207 = arith.constant dense<0.000000e+00> : vector<16x32xf32>
    %285 = tpu.matmul %284, %264, %cst_207 {dimension_numbers = #tpu.dot_dimension_numbers<[1], [0], [0], [1], [0, 0, 1, 1], [], []>} : vector<16x16xbf16>, vector<16x32xbf16>, vector<16x32xf32> -> vector<16x32xf32>
    %c7_208 = arith.constant 7 : index
    %c0_209 = arith.constant 0 : index
    %c0_210 = arith.constant 0 : index
    %286 = vector.load %arg2[%c7_208, %c0_209, %c0_210] : memref<19x16x16xbf16, #tpu.memory_space<vmem>>, vector<1x16x16xbf16>
    %287 = vector.shape_cast %286 : vector<1x16x16xbf16> to vector<16x16xbf16>
    %cst_211 = arith.constant dense<0.000000e+00> : vector<16x32xf32>
    %288 = tpu.matmul %287, %264, %cst_211 {dimension_numbers = #tpu.dot_dimension_numbers<[1], [0], [0], [1], [0, 0, 1, 1], [], []>} : vector<16x16xbf16>, vector<16x32xbf16>, vector<16x32xf32> -> vector<16x32xf32>
    %c8_212 = arith.constant 8 : index
    %c0_213 = arith.constant 0 : index
    %c0_214 = arith.constant 0 : index
    %289 = vector.load %arg2[%c8_212, %c0_213, %c0_214] : memref<19x16x16xbf16, #tpu.memory_space<vmem>>, vector<1x16x16xbf16>
    %290 = vector.shape_cast %289 : vector<1x16x16xbf16> to vector<16x16xbf16>
    %cst_215 = arith.constant dense<0.000000e+00> : vector<16x32xf32>
    %291 = tpu.matmul %290, %264, %cst_215 {dimension_numbers = #tpu.dot_dimension_numbers<[1], [0], [0], [1], [0, 0, 1, 1], [], []>} : vector<16x16xbf16>, vector<16x32xbf16>, vector<16x32xf32> -> vector<16x32xf32>
    %292 = tpu.concatenate %267, %270, %273, %276, %279, %282, %285, %288, %291 in 1 : vector<16x32xf32>, vector<16x32xf32>, vector<16x32xf32>, vector<16x32xf32>, vector<16x32xf32>, vector<16x32xf32>, vector<16x32xf32>, vector<16x32xf32>, vector<16x32xf32> -> vector<16x288xf32>
    %293 = arith.truncf %292 : vector<16x288xf32> to vector<16x288xbf16>
    %c304_216 = arith.constant 304 : index
    %c0_217 = arith.constant 0 : index
    %294 = vector.load %arg3[%c304_216, %c0_217] : memref<592x32xbf16, #tpu.memory_space<vmem>>, vector<288x32xbf16>
    %cst_218 = arith.constant dense<0.000000e+00> : vector<16x32xf32>
    %295 = tpu.matmul %293, %294, %cst_218 {dimension_numbers = #tpu.dot_dimension_numbers<[1], [0], [0], [1], [0, 0, 1, 1], [], []>} : vector<16x288xbf16>, vector<288x32xbf16>, vector<16x32xf32> -> vector<16x32xf32>
    %c2_219 = arith.constant 2 : index
    %c0_220 = arith.constant 0 : index
    %296 = vector.load %arg6[%c2_219, %c0_220] : memref<24x96xf32, #tpu.memory_space<vmem>>, vector<1x32xf32>
    %297 = vector.broadcast %296 : vector<1x32xf32> to vector<16x32xf32>
    %298 = arith.addf %295, %297 : vector<16x32xf32>
    %299 = arith.addf %298, %182 : vector<16x32xf32>
    %cst_221 = arith.constant 0.000000e+00 : f32
    %300 = vector.broadcast %cst_221 : f32 to vector<16x32xf32>
    %301 = arith.maximumf %299, %300 : vector<16x32xf32>
    %c18 = arith.constant 18 : index
    %c0_222 = arith.constant 0 : index
    %c0_223 = arith.constant 0 : index
    %302 = vector.load %arg2[%c18, %c0_222, %c0_223] : memref<19x16x16xbf16, #tpu.memory_space<vmem>>, vector<1x16x16xbf16>
    %303 = vector.shape_cast %302 : vector<1x16x16xbf16> to vector<16x16xbf16>
    %304 = arith.truncf %301 : vector<16x32xf32> to vector<16x32xbf16>
    %cst_224 = arith.constant dense<0.000000e+00> : vector<16x32xf32>
    %305 = tpu.matmul %303, %304, %cst_224 {dimension_numbers = #tpu.dot_dimension_numbers<[1], [0], [0], [1], [0, 0, 1, 1], [], []>} : vector<16x16xbf16>, vector<16x32xbf16>, vector<16x32xf32> -> vector<16x32xf32>
    %306 = tpu.concatenate %150, %305 in 1 : vector<16x32xf32>, vector<16x32xf32> -> vector<16x64xf32>
    %307 = arith.truncf %306 : vector<16x64xf32> to vector<16x64xbf16>
    %c0_225 = arith.constant 0 : index
    %c0_226 = arith.constant 0 : index
    %c0_227 = arith.constant 0 : index
    %308 = vector.load %arg2[%c0_225, %c0_226, %c0_227] : memref<19x16x16xbf16, #tpu.memory_space<vmem>>, vector<1x16x16xbf16>
    %309 = vector.shape_cast %308 : vector<1x16x16xbf16> to vector<16x16xbf16>
    %cst_228 = arith.constant dense<0.000000e+00> : vector<16x64xf32>
    %310 = tpu.matmul %309, %307, %cst_228 {dimension_numbers = #tpu.dot_dimension_numbers<[1], [0], [0], [1], [0, 0, 1, 1], [], []>} : vector<16x16xbf16>, vector<16x64xbf16>, vector<16x64xf32> -> vector<16x64xf32>
    %c1_229 = arith.constant 1 : index
    %c0_230 = arith.constant 0 : index
    %c0_231 = arith.constant 0 : index
    %311 = vector.load %arg2[%c1_229, %c0_230, %c0_231] : memref<19x16x16xbf16, #tpu.memory_space<vmem>>, vector<1x16x16xbf16>
    %312 = vector.shape_cast %311 : vector<1x16x16xbf16> to vector<16x16xbf16>
    %cst_232 = arith.constant dense<0.000000e+00> : vector<16x64xf32>
    %313 = tpu.matmul %312, %307, %cst_232 {dimension_numbers = #tpu.dot_dimension_numbers<[1], [0], [0], [1], [0, 0, 1, 1], [], []>} : vector<16x16xbf16>, vector<16x64xbf16>, vector<16x64xf32> -> vector<16x64xf32>
    %c2_233 = arith.constant 2 : index
    %c0_234 = arith.constant 0 : index
    %c0_235 = arith.constant 0 : index
    %314 = vector.load %arg2[%c2_233, %c0_234, %c0_235] : memref<19x16x16xbf16, #tpu.memory_space<vmem>>, vector<1x16x16xbf16>
    %315 = vector.shape_cast %314 : vector<1x16x16xbf16> to vector<16x16xbf16>
    %cst_236 = arith.constant dense<0.000000e+00> : vector<16x64xf32>
    %316 = tpu.matmul %315, %307, %cst_236 {dimension_numbers = #tpu.dot_dimension_numbers<[1], [0], [0], [1], [0, 0, 1, 1], [], []>} : vector<16x16xbf16>, vector<16x64xbf16>, vector<16x64xf32> -> vector<16x64xf32>
    %c3_237 = arith.constant 3 : index
    %c0_238 = arith.constant 0 : index
    %c0_239 = arith.constant 0 : index
    %317 = vector.load %arg2[%c3_237, %c0_238, %c0_239] : memref<19x16x16xbf16, #tpu.memory_space<vmem>>, vector<1x16x16xbf16>
    %318 = vector.shape_cast %317 : vector<1x16x16xbf16> to vector<16x16xbf16>
    %cst_240 = arith.constant dense<0.000000e+00> : vector<16x64xf32>
    %319 = tpu.matmul %318, %307, %cst_240 {dimension_numbers = #tpu.dot_dimension_numbers<[1], [0], [0], [1], [0, 0, 1, 1], [], []>} : vector<16x16xbf16>, vector<16x64xbf16>, vector<16x64xf32> -> vector<16x64xf32>
    %c4_241 = arith.constant 4 : index
    %c0_242 = arith.constant 0 : index
    %c0_243 = arith.constant 0 : index
    %320 = vector.load %arg2[%c4_241, %c0_242, %c0_243] : memref<19x16x16xbf16, #tpu.memory_space<vmem>>, vector<1x16x16xbf16>
    %321 = vector.shape_cast %320 : vector<1x16x16xbf16> to vector<16x16xbf16>
    %cst_244 = arith.constant dense<0.000000e+00> : vector<16x64xf32>
    %322 = tpu.matmul %321, %307, %cst_244 {dimension_numbers = #tpu.dot_dimension_numbers<[1], [0], [0], [1], [0, 0, 1, 1], [], []>} : vector<16x16xbf16>, vector<16x64xbf16>, vector<16x64xf32> -> vector<16x64xf32>
    %c5_245 = arith.constant 5 : index
    %c0_246 = arith.constant 0 : index
    %c0_247 = arith.constant 0 : index
    %323 = vector.load %arg2[%c5_245, %c0_246, %c0_247] : memref<19x16x16xbf16, #tpu.memory_space<vmem>>, vector<1x16x16xbf16>
    %324 = vector.shape_cast %323 : vector<1x16x16xbf16> to vector<16x16xbf16>
    %cst_248 = arith.constant dense<0.000000e+00> : vector<16x64xf32>
    %325 = tpu.matmul %324, %307, %cst_248 {dimension_numbers = #tpu.dot_dimension_numbers<[1], [0], [0], [1], [0, 0, 1, 1], [], []>} : vector<16x16xbf16>, vector<16x64xbf16>, vector<16x64xf32> -> vector<16x64xf32>
    %c6_249 = arith.constant 6 : index
    %c0_250 = arith.constant 0 : index
    %c0_251 = arith.constant 0 : index
    %326 = vector.load %arg2[%c6_249, %c0_250, %c0_251] : memref<19x16x16xbf16, #tpu.memory_space<vmem>>, vector<1x16x16xbf16>
    %327 = vector.shape_cast %326 : vector<1x16x16xbf16> to vector<16x16xbf16>
    %cst_252 = arith.constant dense<0.000000e+00> : vector<16x64xf32>
    %328 = tpu.matmul %327, %307, %cst_252 {dimension_numbers = #tpu.dot_dimension_numbers<[1], [0], [0], [1], [0, 0, 1, 1], [], []>} : vector<16x16xbf16>, vector<16x64xbf16>, vector<16x64xf32> -> vector<16x64xf32>
    %c7_253 = arith.constant 7 : index
    %c0_254 = arith.constant 0 : index
    %c0_255 = arith.constant 0 : index
    %329 = vector.load %arg2[%c7_253, %c0_254, %c0_255] : memref<19x16x16xbf16, #tpu.memory_space<vmem>>, vector<1x16x16xbf16>
    %330 = vector.shape_cast %329 : vector<1x16x16xbf16> to vector<16x16xbf16>
    %cst_256 = arith.constant dense<0.000000e+00> : vector<16x64xf32>
    %331 = tpu.matmul %330, %307, %cst_256 {dimension_numbers = #tpu.dot_dimension_numbers<[1], [0], [0], [1], [0, 0, 1, 1], [], []>} : vector<16x16xbf16>, vector<16x64xbf16>, vector<16x64xf32> -> vector<16x64xf32>
    %c8_257 = arith.constant 8 : index
    %c0_258 = arith.constant 0 : index
    %c0_259 = arith.constant 0 : index
    %332 = vector.load %arg2[%c8_257, %c0_258, %c0_259] : memref<19x16x16xbf16, #tpu.memory_space<vmem>>, vector<1x16x16xbf16>
    %333 = vector.shape_cast %332 : vector<1x16x16xbf16> to vector<16x16xbf16>
    %cst_260 = arith.constant dense<0.000000e+00> : vector<16x64xf32>
    %334 = tpu.matmul %333, %307, %cst_260 {dimension_numbers = #tpu.dot_dimension_numbers<[1], [0], [0], [1], [0, 0, 1, 1], [], []>} : vector<16x16xbf16>, vector<16x64xbf16>, vector<16x64xf32> -> vector<16x64xf32>
    %c9 = arith.constant 9 : index
    %c0_261 = arith.constant 0 : index
    %c0_262 = arith.constant 0 : index
    %335 = vector.load %arg2[%c9, %c0_261, %c0_262] : memref<19x16x16xbf16, #tpu.memory_space<vmem>>, vector<1x16x16xbf16>
    %336 = vector.shape_cast %335 : vector<1x16x16xbf16> to vector<16x16xbf16>
    %cst_263 = arith.constant dense<0.000000e+00> : vector<16x64xf32>
    %337 = tpu.matmul %336, %307, %cst_263 {dimension_numbers = #tpu.dot_dimension_numbers<[1], [0], [0], [1], [0, 0, 1, 1], [], []>} : vector<16x16xbf16>, vector<16x64xbf16>, vector<16x64xf32> -> vector<16x64xf32>
    %c10 = arith.constant 10 : index
    %c0_264 = arith.constant 0 : index
    %c0_265 = arith.constant 0 : index
    %338 = vector.load %arg2[%c10, %c0_264, %c0_265] : memref<19x16x16xbf16, #tpu.memory_space<vmem>>, vector<1x16x16xbf16>
    %339 = vector.shape_cast %338 : vector<1x16x16xbf16> to vector<16x16xbf16>
    %cst_266 = arith.constant dense<0.000000e+00> : vector<16x64xf32>
    %340 = tpu.matmul %339, %307, %cst_266 {dimension_numbers = #tpu.dot_dimension_numbers<[1], [0], [0], [1], [0, 0, 1, 1], [], []>} : vector<16x16xbf16>, vector<16x64xbf16>, vector<16x64xf32> -> vector<16x64xf32>
    %c11 = arith.constant 11 : index
    %c0_267 = arith.constant 0 : index
    %c0_268 = arith.constant 0 : index
    %341 = vector.load %arg2[%c11, %c0_267, %c0_268] : memref<19x16x16xbf16, #tpu.memory_space<vmem>>, vector<1x16x16xbf16>
    %342 = vector.shape_cast %341 : vector<1x16x16xbf16> to vector<16x16xbf16>
    %cst_269 = arith.constant dense<0.000000e+00> : vector<16x64xf32>
    %343 = tpu.matmul %342, %307, %cst_269 {dimension_numbers = #tpu.dot_dimension_numbers<[1], [0], [0], [1], [0, 0, 1, 1], [], []>} : vector<16x16xbf16>, vector<16x64xbf16>, vector<16x64xf32> -> vector<16x64xf32>
    %c12 = arith.constant 12 : index
    %c0_270 = arith.constant 0 : index
    %c0_271 = arith.constant 0 : index
    %344 = vector.load %arg2[%c12, %c0_270, %c0_271] : memref<19x16x16xbf16, #tpu.memory_space<vmem>>, vector<1x16x16xbf16>
    %345 = vector.shape_cast %344 : vector<1x16x16xbf16> to vector<16x16xbf16>
    %cst_272 = arith.constant dense<0.000000e+00> : vector<16x64xf32>
    %346 = tpu.matmul %345, %307, %cst_272 {dimension_numbers = #tpu.dot_dimension_numbers<[1], [0], [0], [1], [0, 0, 1, 1], [], []>} : vector<16x16xbf16>, vector<16x64xbf16>, vector<16x64xf32> -> vector<16x64xf32>
    %c13 = arith.constant 13 : index
    %c0_273 = arith.constant 0 : index
    %c0_274 = arith.constant 0 : index
    %347 = vector.load %arg2[%c13, %c0_273, %c0_274] : memref<19x16x16xbf16, #tpu.memory_space<vmem>>, vector<1x16x16xbf16>
    %348 = vector.shape_cast %347 : vector<1x16x16xbf16> to vector<16x16xbf16>
    %cst_275 = arith.constant dense<0.000000e+00> : vector<16x64xf32>
    %349 = tpu.matmul %348, %307, %cst_275 {dimension_numbers = #tpu.dot_dimension_numbers<[1], [0], [0], [1], [0, 0, 1, 1], [], []>} : vector<16x16xbf16>, vector<16x64xbf16>, vector<16x64xf32> -> vector<16x64xf32>
    %c14 = arith.constant 14 : index
    %c0_276 = arith.constant 0 : index
    %c0_277 = arith.constant 0 : index
    %350 = vector.load %arg2[%c14, %c0_276, %c0_277] : memref<19x16x16xbf16, #tpu.memory_space<vmem>>, vector<1x16x16xbf16>
    %351 = vector.shape_cast %350 : vector<1x16x16xbf16> to vector<16x16xbf16>
    %cst_278 = arith.constant dense<0.000000e+00> : vector<16x64xf32>
    %352 = tpu.matmul %351, %307, %cst_278 {dimension_numbers = #tpu.dot_dimension_numbers<[1], [0], [0], [1], [0, 0, 1, 1], [], []>} : vector<16x16xbf16>, vector<16x64xbf16>, vector<16x64xf32> -> vector<16x64xf32>
    %c15 = arith.constant 15 : index
    %c0_279 = arith.constant 0 : index
    %c0_280 = arith.constant 0 : index
    %353 = vector.load %arg2[%c15, %c0_279, %c0_280] : memref<19x16x16xbf16, #tpu.memory_space<vmem>>, vector<1x16x16xbf16>
    %354 = vector.shape_cast %353 : vector<1x16x16xbf16> to vector<16x16xbf16>
    %cst_281 = arith.constant dense<0.000000e+00> : vector<16x64xf32>
    %355 = tpu.matmul %354, %307, %cst_281 {dimension_numbers = #tpu.dot_dimension_numbers<[1], [0], [0], [1], [0, 0, 1, 1], [], []>} : vector<16x16xbf16>, vector<16x64xbf16>, vector<16x64xf32> -> vector<16x64xf32>
    %c16_282 = arith.constant 16 : index
    %c0_283 = arith.constant 0 : index
    %c0_284 = arith.constant 0 : index
    %356 = vector.load %arg2[%c16_282, %c0_283, %c0_284] : memref<19x16x16xbf16, #tpu.memory_space<vmem>>, vector<1x16x16xbf16>
    %357 = vector.shape_cast %356 : vector<1x16x16xbf16> to vector<16x16xbf16>
    %cst_285 = arith.constant dense<0.000000e+00> : vector<16x64xf32>
    %358 = tpu.matmul %357, %307, %cst_285 {dimension_numbers = #tpu.dot_dimension_numbers<[1], [0], [0], [1], [0, 0, 1, 1], [], []>} : vector<16x16xbf16>, vector<16x64xbf16>, vector<16x64xf32> -> vector<16x64xf32>
    %c17 = arith.constant 17 : index
    %c0_286 = arith.constant 0 : index
    %c0_287 = arith.constant 0 : index
    %359 = vector.load %arg2[%c17, %c0_286, %c0_287] : memref<19x16x16xbf16, #tpu.memory_space<vmem>>, vector<1x16x16xbf16>
    %360 = vector.shape_cast %359 : vector<1x16x16xbf16> to vector<16x16xbf16>
    %cst_288 = arith.constant dense<0.000000e+00> : vector<16x64xf32>
    %361 = tpu.matmul %360, %307, %cst_288 {dimension_numbers = #tpu.dot_dimension_numbers<[1], [0], [0], [1], [0, 0, 1, 1], [], []>} : vector<16x16xbf16>, vector<16x64xbf16>, vector<16x64xf32> -> vector<16x64xf32>
    %362 = tpu.concatenate %310, %313, %316, %319, %322, %325, %328, %331, %334, %337, %340, %343, %346, %349, %352, %355 in 1 : vector<16x64xf32>, vector<16x64xf32>, vector<16x64xf32>, vector<16x64xf32>, vector<16x64xf32>, vector<16x64xf32>, vector<16x64xf32>, vector<16x64xf32>, vector<16x64xf32>, vector<16x64xf32>, vector<16x64xf32>, vector<16x64xf32>, vector<16x64xf32>, vector<16x64xf32>, vector<16x64xf32>, vector<16x64xf32> -> vector<16x1024xf32>
    %363 = tpu.concatenate %358, %361 in 1 : vector<16x64xf32>, vector<16x64xf32> -> vector<16x128xf32>
    %364 = tpu.concatenate %362, %363 in 1 : vector<16x1024xf32>, vector<16x128xf32> -> vector<16x1152xf32>
    %365 = arith.truncf %364 : vector<16x1152xf32> to vector<16x1152xbf16>
    %c0_289 = arith.constant 0 : index
    %c0_290 = arith.constant 0 : index
    %366 = vector.load %arg4[%c0_289, %c0_290] : memref<1152x96xbf16, #tpu.memory_space<vmem>>, vector<1152x96xbf16>
    %cst_291 = arith.constant dense<0.000000e+00> : vector<16x96xf32>
    %367 = tpu.matmul %365, %366, %cst_291 {dimension_numbers = #tpu.dot_dimension_numbers<[1], [0], [0], [1], [0, 0, 1, 1], [], []>} : vector<16x1152xbf16>, vector<1152x96xbf16>, vector<16x96xf32> -> vector<16x96xf32>
    %c7_292 = arith.constant 7 : index
    %c0_293 = arith.constant 0 : index
    %368 = vector.load %arg6[%c7_292, %c0_293] : memref<24x96xf32, #tpu.memory_space<vmem>>, vector<1x96xf32>
    %369 = vector.broadcast %368 : vector<1x96xf32> to vector<16x96xf32>
    %370 = arith.addf %367, %369 : vector<16x96xf32>
    %cst_294 = arith.constant 0.000000e+00 : f32
    %371 = vector.broadcast %cst_294 : f32 to vector<16x96xf32>
    %372 = arith.maximumf %370, %371 : vector<16x96xf32>
    %373 = arith.truncf %372 : vector<16x96xf32> to vector<16x96xbf16>
    %cst_295 = arith.constant dense<0.000000e+00> : vector<64xf32>
    %374 = vector.multi_reduction <add>, %306, %cst_295 [0] : vector<16x64xf32> to vector<64xf32>
    %375 = vector.shape_cast %374 : vector<64xf32> to vector<1x64xf32>
    %cst_296 = arith.constant 1.600000e+01 : f32
    %376 = vector.broadcast %cst_296 : f32 to vector<1x64xf32>
    %377 = arith.divf %375, %376 : vector<1x64xf32>
    %378 = arith.truncf %377 : vector<1x64xf32> to vector<1x64xbf16>
    %c288 = arith.constant 288 : index
    %c0_297 = arith.constant 0 : index
    %379 = vector.load %arg5[%c288, %c0_297] : memref<496x32xbf16, #tpu.memory_space<vmem>>, vector<64x32xbf16>
    %cst_298 = arith.constant dense<0.000000e+00> : vector<1x32xf32>
    %380 = tpu.matmul %378, %379, %cst_298 {dimension_numbers = #tpu.dot_dimension_numbers<[1], [0], [0], [1], [0, 0, 1, 1], [], []>} : vector<1x64xbf16>, vector<64x32xbf16>, vector<1x32xf32> -> vector<1x32xf32>
    %c8_299 = arith.constant 8 : index
    %c0_300 = arith.constant 0 : index
    %381 = vector.load %arg6[%c8_299, %c0_300] : memref<24x96xf32, #tpu.memory_space<vmem>>, vector<1x32xf32>
    %382 = arith.addf %380, %381 : vector<1x32xf32>
    %cst_301 = arith.constant 0.000000e+00 : f32
    %383 = vector.broadcast %cst_301 : f32 to vector<1x32xf32>
    %384 = arith.maximumf %382, %383 : vector<1x32xf32>
    %385 = arith.truncf %384 : vector<1x32xf32> to vector<1x32xbf16>
    %c448 = arith.constant 448 : index
    %c0_302 = arith.constant 0 : index
    %386 = vector.load %arg5[%c448, %c0_302] : memref<496x32xbf16, #tpu.memory_space<vmem>>, vector<32x32xbf16>
    %cst_303 = arith.constant dense<0.000000e+00> : vector<1x32xf32>
    %387 = tpu.matmul %385, %386, %cst_303 {dimension_numbers = #tpu.dot_dimension_numbers<[1], [0], [0], [1], [0, 0, 1, 1], [], []>} : vector<1x32xbf16>, vector<32x32xbf16>, vector<1x32xf32> -> vector<1x32xf32>
    %c9_304 = arith.constant 9 : index
    %c0_305 = arith.constant 0 : index
    %388 = vector.load %arg6[%c9_304, %c0_305] : memref<24x96xf32, #tpu.memory_space<vmem>>, vector<1x32xf32>
    %389 = arith.addf %387, %388 : vector<1x32xf32>
    %c352 = arith.constant 352 : index
    %c0_306 = arith.constant 0 : index
    %390 = vector.load %arg5[%c352, %c0_306] : memref<496x32xbf16, #tpu.memory_space<vmem>>, vector<96x32xbf16>
    %cst_307 = arith.constant dense<0.000000e+00> : vector<16x32xf32>
    %391 = tpu.matmul %373, %390, %cst_307 {dimension_numbers = #tpu.dot_dimension_numbers<[1], [0], [0], [1], [0, 0, 1, 1], [], []>} : vector<16x96xbf16>, vector<96x32xbf16>, vector<16x32xf32> -> vector<16x32xf32>
    %392 = vector.broadcast %389 : vector<1x32xf32> to vector<16x32xf32>
    %393 = arith.addf %391, %392 : vector<16x32xf32>
    %cst_308 = arith.constant 0.000000e+00 : f32
    %394 = vector.broadcast %cst_308 : f32 to vector<16x32xf32>
    %395 = arith.maximumf %393, %394 : vector<16x32xf32>
    %396 = arith.truncf %395 : vector<16x32xf32> to vector<16x32xbf16>
    %c0_309 = arith.constant 0 : index
    %c0_310 = arith.constant 0 : index
    %c0_311 = arith.constant 0 : index
    %397 = vector.load %arg2[%c0_309, %c0_310, %c0_311] : memref<19x16x16xbf16, #tpu.memory_space<vmem>>, vector<1x16x16xbf16>
    %398 = vector.shape_cast %397 : vector<1x16x16xbf16> to vector<16x16xbf16>
    %cst_312 = arith.constant dense<0.000000e+00> : vector<16x32xf32>
    %399 = tpu.matmul %398, %396, %cst_312 {dimension_numbers = #tpu.dot_dimension_numbers<[1], [0], [0], [1], [0, 0, 1, 1], [], []>} : vector<16x16xbf16>, vector<16x32xbf16>, vector<16x32xf32> -> vector<16x32xf32>
    %c1_313 = arith.constant 1 : index
    %c0_314 = arith.constant 0 : index
    %c0_315 = arith.constant 0 : index
    %400 = vector.load %arg2[%c1_313, %c0_314, %c0_315] : memref<19x16x16xbf16, #tpu.memory_space<vmem>>, vector<1x16x16xbf16>
    %401 = vector.shape_cast %400 : vector<1x16x16xbf16> to vector<16x16xbf16>
    %cst_316 = arith.constant dense<0.000000e+00> : vector<16x32xf32>
    %402 = tpu.matmul %401, %396, %cst_316 {dimension_numbers = #tpu.dot_dimension_numbers<[1], [0], [0], [1], [0, 0, 1, 1], [], []>} : vector<16x16xbf16>, vector<16x32xbf16>, vector<16x32xf32> -> vector<16x32xf32>
    %c2_317 = arith.constant 2 : index
    %c0_318 = arith.constant 0 : index
    %c0_319 = arith.constant 0 : index
    %403 = vector.load %arg2[%c2_317, %c0_318, %c0_319] : memref<19x16x16xbf16, #tpu.memory_space<vmem>>, vector<1x16x16xbf16>
    %404 = vector.shape_cast %403 : vector<1x16x16xbf16> to vector<16x16xbf16>
    %cst_320 = arith.constant dense<0.000000e+00> : vector<16x32xf32>
    %405 = tpu.matmul %404, %396, %cst_320 {dimension_numbers = #tpu.dot_dimension_numbers<[1], [0], [0], [1], [0, 0, 1, 1], [], []>} : vector<16x16xbf16>, vector<16x32xbf16>, vector<16x32xf32> -> vector<16x32xf32>
    %c3_321 = arith.constant 3 : index
    %c0_322 = arith.constant 0 : index
    %c0_323 = arith.constant 0 : index
    %406 = vector.load %arg2[%c3_321, %c0_322, %c0_323] : memref<19x16x16xbf16, #tpu.memory_space<vmem>>, vector<1x16x16xbf16>
    %407 = vector.shape_cast %406 : vector<1x16x16xbf16> to vector<16x16xbf16>
    %cst_324 = arith.constant dense<0.000000e+00> : vector<16x32xf32>
    %408 = tpu.matmul %407, %396, %cst_324 {dimension_numbers = #tpu.dot_dimension_numbers<[1], [0], [0], [1], [0, 0, 1, 1], [], []>} : vector<16x16xbf16>, vector<16x32xbf16>, vector<16x32xf32> -> vector<16x32xf32>
    %c4_325 = arith.constant 4 : index
    %c0_326 = arith.constant 0 : index
    %c0_327 = arith.constant 0 : index
    %409 = vector.load %arg2[%c4_325, %c0_326, %c0_327] : memref<19x16x16xbf16, #tpu.memory_space<vmem>>, vector<1x16x16xbf16>
    %410 = vector.shape_cast %409 : vector<1x16x16xbf16> to vector<16x16xbf16>
    %cst_328 = arith.constant dense<0.000000e+00> : vector<16x32xf32>
    %411 = tpu.matmul %410, %396, %cst_328 {dimension_numbers = #tpu.dot_dimension_numbers<[1], [0], [0], [1], [0, 0, 1, 1], [], []>} : vector<16x16xbf16>, vector<16x32xbf16>, vector<16x32xf32> -> vector<16x32xf32>
    %c5_329 = arith.constant 5 : index
    %c0_330 = arith.constant 0 : index
    %c0_331 = arith.constant 0 : index
    %412 = vector.load %arg2[%c5_329, %c0_330, %c0_331] : memref<19x16x16xbf16, #tpu.memory_space<vmem>>, vector<1x16x16xbf16>
    %413 = vector.shape_cast %412 : vector<1x16x16xbf16> to vector<16x16xbf16>
    %cst_332 = arith.constant dense<0.000000e+00> : vector<16x32xf32>
    %414 = tpu.matmul %413, %396, %cst_332 {dimension_numbers = #tpu.dot_dimension_numbers<[1], [0], [0], [1], [0, 0, 1, 1], [], []>} : vector<16x16xbf16>, vector<16x32xbf16>, vector<16x32xf32> -> vector<16x32xf32>
    %c6_333 = arith.constant 6 : index
    %c0_334 = arith.constant 0 : index
    %c0_335 = arith.constant 0 : index
    %415 = vector.load %arg2[%c6_333, %c0_334, %c0_335] : memref<19x16x16xbf16, #tpu.memory_space<vmem>>, vector<1x16x16xbf16>
    %416 = vector.shape_cast %415 : vector<1x16x16xbf16> to vector<16x16xbf16>
    %cst_336 = arith.constant dense<0.000000e+00> : vector<16x32xf32>
    %417 = tpu.matmul %416, %396, %cst_336 {dimension_numbers = #tpu.dot_dimension_numbers<[1], [0], [0], [1], [0, 0, 1, 1], [], []>} : vector<16x16xbf16>, vector<16x32xbf16>, vector<16x32xf32> -> vector<16x32xf32>
    %c7_337 = arith.constant 7 : index
    %c0_338 = arith.constant 0 : index
    %c0_339 = arith.constant 0 : index
    %418 = vector.load %arg2[%c7_337, %c0_338, %c0_339] : memref<19x16x16xbf16, #tpu.memory_space<vmem>>, vector<1x16x16xbf16>
    %419 = vector.shape_cast %418 : vector<1x16x16xbf16> to vector<16x16xbf16>
    %cst_340 = arith.constant dense<0.000000e+00> : vector<16x32xf32>
    %420 = tpu.matmul %419, %396, %cst_340 {dimension_numbers = #tpu.dot_dimension_numbers<[1], [0], [0], [1], [0, 0, 1, 1], [], []>} : vector<16x16xbf16>, vector<16x32xbf16>, vector<16x32xf32> -> vector<16x32xf32>
    %c8_341 = arith.constant 8 : index
    %c0_342 = arith.constant 0 : index
    %c0_343 = arith.constant 0 : index
    %421 = vector.load %arg2[%c8_341, %c0_342, %c0_343] : memref<19x16x16xbf16, #tpu.memory_space<vmem>>, vector<1x16x16xbf16>
    %422 = vector.shape_cast %421 : vector<1x16x16xbf16> to vector<16x16xbf16>
    %cst_344 = arith.constant dense<0.000000e+00> : vector<16x32xf32>
    %423 = tpu.matmul %422, %396, %cst_344 {dimension_numbers = #tpu.dot_dimension_numbers<[1], [0], [0], [1], [0, 0, 1, 1], [], []>} : vector<16x16xbf16>, vector<16x32xbf16>, vector<16x32xf32> -> vector<16x32xf32>
    %424 = tpu.concatenate %399, %402, %405, %408, %411, %414, %417, %420, %423 in 1 : vector<16x32xf32>, vector<16x32xf32>, vector<16x32xf32>, vector<16x32xf32>, vector<16x32xf32>, vector<16x32xf32>, vector<16x32xf32>, vector<16x32xf32>, vector<16x32xf32> -> vector<16x288xf32>
    %425 = arith.truncf %424 : vector<16x288xf32> to vector<16x288xbf16>
    %c0_345 = arith.constant 0 : index
    %c0_346 = arith.constant 0 : index
    %426 = vector.load %arg5[%c0_345, %c0_346] : memref<496x32xbf16, #tpu.memory_space<vmem>>, vector<288x32xbf16>
    %cst_347 = arith.constant dense<0.000000e+00> : vector<16x32xf32>
    %427 = tpu.matmul %425, %426, %cst_347 {dimension_numbers = #tpu.dot_dimension_numbers<[1], [0], [0], [1], [0, 0, 1, 1], [], []>} : vector<16x288xbf16>, vector<288x32xbf16>, vector<16x32xf32> -> vector<16x32xf32>
    %c10_348 = arith.constant 10 : index
    %c0_349 = arith.constant 0 : index
    %428 = vector.load %arg6[%c10_348, %c0_349] : memref<24x96xf32, #tpu.memory_space<vmem>>, vector<1x32xf32>
    %429 = vector.broadcast %428 : vector<1x32xf32> to vector<16x32xf32>
    %430 = arith.addf %427, %429 : vector<16x32xf32>
    %cst_350 = arith.constant 0.000000e+00 : f32
    %431 = vector.broadcast %cst_350 : f32 to vector<16x32xf32>
    %432 = arith.maximumf %430, %431 : vector<16x32xf32>
    %433 = arith.truncf %432 : vector<16x32xf32> to vector<16x32xbf16>
    %c480 = arith.constant 480 : index
    %c0_351 = arith.constant 0 : index
    %434 = vector.load %arg5[%c480, %c0_351] : memref<496x32xbf16, #tpu.memory_space<vmem>>, vector<16x32xbf16>
    %cst_352 = arith.constant dense<0.000000e+00> : vector<16x16xf32>
    %435 = tpu.matmul %434, %433, %cst_352 {dimension_numbers = #tpu.dot_dimension_numbers<[1], [1], [0], [0], [0, 0, 1, 0], [], []>} : vector<16x32xbf16>, vector<16x32xbf16>, vector<16x16xf32> -> vector<16x16xf32>
    %436 = vector.extract_strided_slice %435 {offsets = [0, 0], sizes = [8, 16], strides = [1, 1]} : vector<16x16xf32> to vector<8x16xf32>
    %c16_353 = arith.constant 16 : index
    %c0_354 = arith.constant 0 : index
    %437 = vector.load %arg6[%c16_353, %c0_354] : memref<24x96xf32, #tpu.memory_space<vmem>>, vector<8x1xf32>
    %438 = vector.broadcast %437 : vector<8x1xf32> to vector<8x16xf32>
    %439 = arith.addf %436, %438 : vector<8x16xf32>
    %440 = arith.truncf %439 : vector<8x16xf32> to vector<8x16xbf16>
    %c0_355 = arith.constant 0 : index
    %c0_356 = arith.constant 0 : index
    %441 = vector.load %arg7[%c0_355, %c0_356] : memref<16x256xbf16, #tpu.memory_space<vmem>>, vector<16x256xbf16>
    %cst_357 = arith.constant dense<0.000000e+00> : vector<8x256xf32>
    %442 = tpu.matmul %440, %441, %cst_357 {dimension_numbers = #tpu.dot_dimension_numbers<[1], [0], [0], [1], [0, 0, 1, 1], [], []>} : vector<8x16xbf16>, vector<16x256xbf16>, vector<8x256xf32> -> vector<8x256xf32>
    %c0_358 = arith.constant 0 : index
    %c0_359 = arith.constant 0 : index
    %c0_360 = arith.constant 0 : index
    %c0_361 = arith.constant 0 : index
    %443 = vector.load %arg8[%c0_358, %c0_359, %c0_360, %c0_361] : memref<1x2x8x256xf32, #tpu.memory_space<vmem>>, vector<1x1x8x256xf32>
    %444 = vector.shape_cast %443 : vector<1x1x8x256xf32> to vector<8x256xf32>
    %445 = vector.shape_cast %442 : vector<8x256xf32> to vector<1x1x8x256xf32>
    tpu.vector_store %arg8[%c0_358, %c0_359, %c0_360, %c0_361], %445 {strides = array<i32>} : memref<1x2x8x256xf32, #tpu.memory_space<vmem>>, vector<1x1x8x256xf32>,
    %446 = tpu.concatenate %301, %301 in 1 : vector<16x32xf32>, vector<16x32xf32> -> vector<16x64xf32>
    %447 = arith.truncf %446 : vector<16x64xf32> to vector<16x64xbf16>
    %c0_362 = arith.constant 0 : index
    %c0_363 = arith.constant 0 : index
    %c0_364 = arith.constant 0 : index
    %448 = vector.load %arg2[%c0_362, %c0_363, %c0_364] : memref<19x16x16xbf16, #tpu.memory_space<vmem>>, vector<1x16x16xbf16>
    %449 = vector.shape_cast %448 : vector<1x16x16xbf16> to vector<16x16xbf16>
    %cst_365 = arith.constant dense<0.000000e+00> : vector<16x64xf32>
    %450 = tpu.matmul %449, %447, %cst_365 {dimension_numbers = #tpu.dot_dimension_numbers<[1], [0], [0], [1], [0, 0, 1, 1], [], []>} : vector<16x16xbf16>, vector<16x64xbf16>, vector<16x64xf32> -> vector<16x64xf32>
    %c1_366 = arith.constant 1 : index
    %c0_367 = arith.constant 0 : index
    %c0_368 = arith.constant 0 : index
    %451 = vector.load %arg2[%c1_366, %c0_367, %c0_368] : memref<19x16x16xbf16, #tpu.memory_space<vmem>>, vector<1x16x16xbf16>
    %452 = vector.shape_cast %451 : vector<1x16x16xbf16> to vector<16x16xbf16>
    %cst_369 = arith.constant dense<0.000000e+00> : vector<16x64xf32>
    %453 = tpu.matmul %452, %447, %cst_369 {dimension_numbers = #tpu.dot_dimension_numbers<[1], [0], [0], [1], [0, 0, 1, 1], [], []>} : vector<16x16xbf16>, vector<16x64xbf16>, vector<16x64xf32> -> vector<16x64xf32>
    %c2_370 = arith.constant 2 : index
    %c0_371 = arith.constant 0 : index
    %c0_372 = arith.constant 0 : index
    %454 = vector.load %arg2[%c2_370, %c0_371, %c0_372] : memref<19x16x16xbf16, #tpu.memory_space<vmem>>, vector<1x16x16xbf16>
    %455 = vector.shape_cast %454 : vector<1x16x16xbf16> to vector<16x16xbf16>
    %cst_373 = arith.constant dense<0.000000e+00> : vector<16x64xf32>
    %456 = tpu.matmul %455, %447, %cst_373 {dimension_numbers = #tpu.dot_dimension_numbers<[1], [0], [0], [1], [0, 0, 1, 1], [], []>} : vector<16x16xbf16>, vector<16x64xbf16>, vector<16x64xf32> -> vector<16x64xf32>
    %c3_374 = arith.constant 3 : index
    %c0_375 = arith.constant 0 : index
    %c0_376 = arith.constant 0 : index
    %457 = vector.load %arg2[%c3_374, %c0_375, %c0_376] : memref<19x16x16xbf16, #tpu.memory_space<vmem>>, vector<1x16x16xbf16>
    %458 = vector.shape_cast %457 : vector<1x16x16xbf16> to vector<16x16xbf16>
    %cst_377 = arith.constant dense<0.000000e+00> : vector<16x64xf32>
    %459 = tpu.matmul %458, %447, %cst_377 {dimension_numbers = #tpu.dot_dimension_numbers<[1], [0], [0], [1], [0, 0, 1, 1], [], []>} : vector<16x16xbf16>, vector<16x64xbf16>, vector<16x64xf32> -> vector<16x64xf32>
    %c4_378 = arith.constant 4 : index
    %c0_379 = arith.constant 0 : index
    %c0_380 = arith.constant 0 : index
    %460 = vector.load %arg2[%c4_378, %c0_379, %c0_380] : memref<19x16x16xbf16, #tpu.memory_space<vmem>>, vector<1x16x16xbf16>
    %461 = vector.shape_cast %460 : vector<1x16x16xbf16> to vector<16x16xbf16>
    %cst_381 = arith.constant dense<0.000000e+00> : vector<16x64xf32>
    %462 = tpu.matmul %461, %447, %cst_381 {dimension_numbers = #tpu.dot_dimension_numbers<[1], [0], [0], [1], [0, 0, 1, 1], [], []>} : vector<16x16xbf16>, vector<16x64xbf16>, vector<16x64xf32> -> vector<16x64xf32>
    %c5_382 = arith.constant 5 : index
    %c0_383 = arith.constant 0 : index
    %c0_384 = arith.constant 0 : index
    %463 = vector.load %arg2[%c5_382, %c0_383, %c0_384] : memref<19x16x16xbf16, #tpu.memory_space<vmem>>, vector<1x16x16xbf16>
    %464 = vector.shape_cast %463 : vector<1x16x16xbf16> to vector<16x16xbf16>
    %cst_385 = arith.constant dense<0.000000e+00> : vector<16x64xf32>
    %465 = tpu.matmul %464, %447, %cst_385 {dimension_numbers = #tpu.dot_dimension_numbers<[1], [0], [0], [1], [0, 0, 1, 1], [], []>} : vector<16x16xbf16>, vector<16x64xbf16>, vector<16x64xf32> -> vector<16x64xf32>
    %c6_386 = arith.constant 6 : index
    %c0_387 = arith.constant 0 : index
    %c0_388 = arith.constant 0 : index
    %466 = vector.load %arg2[%c6_386, %c0_387, %c0_388] : memref<19x16x16xbf16, #tpu.memory_space<vmem>>, vector<1x16x16xbf16>
    %467 = vector.shape_cast %466 : vector<1x16x16xbf16> to vector<16x16xbf16>
    %cst_389 = arith.constant dense<0.000000e+00> : vector<16x64xf32>
    %468 = tpu.matmul %467, %447, %cst_389 {dimension_numbers = #tpu.dot_dimension_numbers<[1], [0], [0], [1], [0, 0, 1, 1], [], []>} : vector<16x16xbf16>, vector<16x64xbf16>, vector<16x64xf32> -> vector<16x64xf32>
    %c7_390 = arith.constant 7 : index
    %c0_391 = arith.constant 0 : index
    %c0_392 = arith.constant 0 : index
    %469 = vector.load %arg2[%c7_390, %c0_391, %c0_392] : memref<19x16x16xbf16, #tpu.memory_space<vmem>>, vector<1x16x16xbf16>
    %470 = vector.shape_cast %469 : vector<1x16x16xbf16> to vector<16x16xbf16>
    %cst_393 = arith.constant dense<0.000000e+00> : vector<16x64xf32>
    %471 = tpu.matmul %470, %447, %cst_393 {dimension_numbers = #tpu.dot_dimension_numbers<[1], [0], [0], [1], [0, 0, 1, 1], [], []>} : vector<16x16xbf16>, vector<16x64xbf16>, vector<16x64xf32> -> vector<16x64xf32>
    %c8_394 = arith.constant 8 : index
    %c0_395 = arith.constant 0 : index
    %c0_396 = arith.constant 0 : index
    %472 = vector.load %arg2[%c8_394, %c0_395, %c0_396] : memref<19x16x16xbf16, #tpu.memory_space<vmem>>, vector<1x16x16xbf16>
    %473 = vector.shape_cast %472 : vector<1x16x16xbf16> to vector<16x16xbf16>
    %cst_397 = arith.constant dense<0.000000e+00> : vector<16x64xf32>
    %474 = tpu.matmul %473, %447, %cst_397 {dimension_numbers = #tpu.dot_dimension_numbers<[1], [0], [0], [1], [0, 0, 1, 1], [], []>} : vector<16x16xbf16>, vector<16x64xbf16>, vector<16x64xf32> -> vector<16x64xf32>
    %c9_398 = arith.constant 9 : index
    %c0_399 = arith.constant 0 : index
    %c0_400 = arith.constant 0 : index
    %475 = vector.load %arg2[%c9_398, %c0_399, %c0_400] : memref<19x16x16xbf16, #tpu.memory_space<vmem>>, vector<1x16x16xbf16>
    %476 = vector.shape_cast %475 : vector<1x16x16xbf16> to vector<16x16xbf16>
    %cst_401 = arith.constant dense<0.000000e+00> : vector<16x64xf32>
    %477 = tpu.matmul %476, %447, %cst_401 {dimension_numbers = #tpu.dot_dimension_numbers<[1], [0], [0], [1], [0, 0, 1, 1], [], []>} : vector<16x16xbf16>, vector<16x64xbf16>, vector<16x64xf32> -> vector<16x64xf32>
    %c10_402 = arith.constant 10 : index
    %c0_403 = arith.constant 0 : index
    %c0_404 = arith.constant 0 : index
    %478 = vector.load %arg2[%c10_402, %c0_403, %c0_404] : memref<19x16x16xbf16, #tpu.memory_space<vmem>>, vector<1x16x16xbf16>
    %479 = vector.shape_cast %478 : vector<1x16x16xbf16> to vector<16x16xbf16>
    %cst_405 = arith.constant dense<0.000000e+00> : vector<16x64xf32>
    %480 = tpu.matmul %479, %447, %cst_405 {dimension_numbers = #tpu.dot_dimension_numbers<[1], [0], [0], [1], [0, 0, 1, 1], [], []>} : vector<16x16xbf16>, vector<16x64xbf16>, vector<16x64xf32> -> vector<16x64xf32>
    %c11_406 = arith.constant 11 : index
    %c0_407 = arith.constant 0 : index
    %c0_408 = arith.constant 0 : index
    %481 = vector.load %arg2[%c11_406, %c0_407, %c0_408] : memref<19x16x16xbf16, #tpu.memory_space<vmem>>, vector<1x16x16xbf16>
    %482 = vector.shape_cast %481 : vector<1x16x16xbf16> to vector<16x16xbf16>
    %cst_409 = arith.constant dense<0.000000e+00> : vector<16x64xf32>
    %483 = tpu.matmul %482, %447, %cst_409 {dimension_numbers = #tpu.dot_dimension_numbers<[1], [0], [0], [1], [0, 0, 1, 1], [], []>} : vector<16x16xbf16>, vector<16x64xbf16>, vector<16x64xf32> -> vector<16x64xf32>
    %c12_410 = arith.constant 12 : index
    %c0_411 = arith.constant 0 : index
    %c0_412 = arith.constant 0 : index
    %484 = vector.load %arg2[%c12_410, %c0_411, %c0_412] : memref<19x16x16xbf16, #tpu.memory_space<vmem>>, vector<1x16x16xbf16>
    %485 = vector.shape_cast %484 : vector<1x16x16xbf16> to vector<16x16xbf16>
    %cst_413 = arith.constant dense<0.000000e+00> : vector<16x64xf32>
    %486 = tpu.matmul %485, %447, %cst_413 {dimension_numbers = #tpu.dot_dimension_numbers<[1], [0], [0], [1], [0, 0, 1, 1], [], []>} : vector<16x16xbf16>, vector<16x64xbf16>, vector<16x64xf32> -> vector<16x64xf32>
    %c13_414 = arith.constant 13 : index
    %c0_415 = arith.constant 0 : index
    %c0_416 = arith.constant 0 : index
    %487 = vector.load %arg2[%c13_414, %c0_415, %c0_416] : memref<19x16x16xbf16, #tpu.memory_space<vmem>>, vector<1x16x16xbf16>
    %488 = vector.shape_cast %487 : vector<1x16x16xbf16> to vector<16x16xbf16>
    %cst_417 = arith.constant dense<0.000000e+00> : vector<16x64xf32>
    %489 = tpu.matmul %488, %447, %cst_417 {dimension_numbers = #tpu.dot_dimension_numbers<[1], [0], [0], [1], [0, 0, 1, 1], [], []>} : vector<16x16xbf16>, vector<16x64xbf16>, vector<16x64xf32> -> vector<16x64xf32>
    %c14_418 = arith.constant 14 : index
    %c0_419 = arith.constant 0 : index
    %c0_420 = arith.constant 0 : index
    %490 = vector.load %arg2[%c14_418, %c0_419, %c0_420] : memref<19x16x16xbf16, #tpu.memory_space<vmem>>, vector<1x16x16xbf16>
    %491 = vector.shape_cast %490 : vector<1x16x16xbf16> to vector<16x16xbf16>
    %cst_421 = arith.constant dense<0.000000e+00> : vector<16x64xf32>
    %492 = tpu.matmul %491, %447, %cst_421 {dimension_numbers = #tpu.dot_dimension_numbers<[1], [0], [0], [1], [0, 0, 1, 1], [], []>} : vector<16x16xbf16>, vector<16x64xbf16>, vector<16x64xf32> -> vector<16x64xf32>
    %c15_422 = arith.constant 15 : index
    %c0_423 = arith.constant 0 : index
    %c0_424 = arith.constant 0 : index
    %493 = vector.load %arg2[%c15_422, %c0_423, %c0_424] : memref<19x16x16xbf16, #tpu.memory_space<vmem>>, vector<1x16x16xbf16>
    %494 = vector.shape_cast %493 : vector<1x16x16xbf16> to vector<16x16xbf16>
    %cst_425 = arith.constant dense<0.000000e+00> : vector<16x64xf32>
    %495 = tpu.matmul %494, %447, %cst_425 {dimension_numbers = #tpu.dot_dimension_numbers<[1], [0], [0], [1], [0, 0, 1, 1], [], []>} : vector<16x16xbf16>, vector<16x64xbf16>, vector<16x64xf32> -> vector<16x64xf32>
    %c16_426 = arith.constant 16 : index
    %c0_427 = arith.constant 0 : index
    %c0_428 = arith.constant 0 : index
    %496 = vector.load %arg2[%c16_426, %c0_427, %c0_428] : memref<19x16x16xbf16, #tpu.memory_space<vmem>>, vector<1x16x16xbf16>
    %497 = vector.shape_cast %496 : vector<1x16x16xbf16> to vector<16x16xbf16>
    %cst_429 = arith.constant dense<0.000000e+00> : vector<16x64xf32>
    %498 = tpu.matmul %497, %447, %cst_429 {dimension_numbers = #tpu.dot_dimension_numbers<[1], [0], [0], [1], [0, 0, 1, 1], [], []>} : vector<16x16xbf16>, vector<16x64xbf16>, vector<16x64xf32> -> vector<16x64xf32>
    %c17_430 = arith.constant 17 : index
    %c0_431 = arith.constant 0 : index
    %c0_432 = arith.constant 0 : index
    %499 = vector.load %arg2[%c17_430, %c0_431, %c0_432] : memref<19x16x16xbf16, #tpu.memory_space<vmem>>, vector<1x16x16xbf16>
    %500 = vector.shape_cast %499 : vector<1x16x16xbf16> to vector<16x16xbf16>
    %cst_433 = arith.constant dense<0.000000e+00> : vector<16x64xf32>
    %501 = tpu.matmul %500, %447, %cst_433 {dimension_numbers = #tpu.dot_dimension_numbers<[1], [0], [0], [1], [0, 0, 1, 1], [], []>} : vector<16x16xbf16>, vector<16x64xbf16>, vector<16x64xf32> -> vector<16x64xf32>
    %502 = tpu.concatenate %450, %453, %456, %459, %462, %465, %468, %471, %474, %477, %480, %483, %486, %489, %492, %495 in 1 : vector<16x64xf32>, vector<16x64xf32>, vector<16x64xf32>, vector<16x64xf32>, vector<16x64xf32>, vector<16x64xf32>, vector<16x64xf32>, vector<16x64xf32>, vector<16x64xf32>, vector<16x64xf32>, vector<16x64xf32>, vector<16x64xf32>, vector<16x64xf32>, vector<16x64xf32>, vector<16x64xf32>, vector<16x64xf32> -> vector<16x1024xf32>
    %503 = tpu.concatenate %498, %501 in 1 : vector<16x64xf32>, vector<16x64xf32> -> vector<16x128xf32>
    %504 = tpu.concatenate %502, %503 in 1 : vector<16x1024xf32>, vector<16x128xf32> -> vector<16x1152xf32>
    %505 = arith.truncf %504 : vector<16x1152xf32> to vector<16x1152xbf16>
    %c0_434 = arith.constant 0 : index
    %c0_435 = arith.constant 0 : index
    %506 = vector.load %arg4[%c0_434, %c0_435] : memref<1152x96xbf16, #tpu.memory_space<vmem>>, vector<1152x96xbf16>
    %cst_436 = arith.constant dense<0.000000e+00> : vector<16x96xf32>
    %507 = tpu.matmul %505, %506, %cst_436 {dimension_numbers = #tpu.dot_dimension_numbers<[1], [0], [0], [1], [0, 0, 1, 1], [], []>} : vector<16x1152xbf16>, vector<1152x96xbf16>, vector<16x96xf32> -> vector<16x96xf32>
    %c7_437 = arith.constant 7 : index
    %c0_438 = arith.constant 0 : index
    %508 = vector.load %arg6[%c7_437, %c0_438] : memref<24x96xf32, #tpu.memory_space<vmem>>, vector<1x96xf32>
    %509 = vector.broadcast %508 : vector<1x96xf32> to vector<16x96xf32>
    %510 = arith.addf %507, %509 : vector<16x96xf32>
    %cst_439 = arith.constant 0.000000e+00 : f32
    %511 = vector.broadcast %cst_439 : f32 to vector<16x96xf32>
    %512 = arith.maximumf %510, %511 : vector<16x96xf32>
    %513 = arith.truncf %512 : vector<16x96xf32> to vector<16x96xbf16>
    %cst_440 = arith.constant dense<0.000000e+00> : vector<64xf32>
    %514 = vector.multi_reduction <add>, %446, %cst_440 [0] : vector<16x64xf32> to vector<64xf32>
    %515 = vector.shape_cast %514 : vector<64xf32> to vector<1x64xf32>
    %cst_441 = arith.constant 1.600000e+01 : f32
    %516 = vector.broadcast %cst_441 : f32 to vector<1x64xf32>
    %517 = arith.divf %515, %516 : vector<1x64xf32>
    %518 = arith.truncf %517 : vector<1x64xf32> to vector<1x64xbf16>
    %c288_442 = arith.constant 288 : index
    %c0_443 = arith.constant 0 : index
    %519 = vector.load %arg5[%c288_442, %c0_443] : memref<496x32xbf16, #tpu.memory_space<vmem>>, vector<64x32xbf16>
    %cst_444 = arith.constant dense<0.000000e+00> : vector<1x32xf32>
    %520 = tpu.matmul %518, %519, %cst_444 {dimension_numbers = #tpu.dot_dimension_numbers<[1], [0], [0], [1], [0, 0, 1, 1], [], []>} : vector<1x64xbf16>, vector<64x32xbf16>, vector<1x32xf32> -> vector<1x32xf32>
    %c8_445 = arith.constant 8 : index
    %c0_446 = arith.constant 0 : index
    %521 = vector.load %arg6[%c8_445, %c0_446] : memref<24x96xf32, #tpu.memory_space<vmem>>, vector<1x32xf32>
    %522 = arith.addf %520, %521 : vector<1x32xf32>
    %cst_447 = arith.constant 0.000000e+00 : f32
    %523 = vector.broadcast %cst_447 : f32 to vector<1x32xf32>
    %524 = arith.maximumf %522, %523 : vector<1x32xf32>
    %525 = arith.truncf %524 : vector<1x32xf32> to vector<1x32xbf16>
    %c448_448 = arith.constant 448 : index
    %c0_449 = arith.constant 0 : index
    %526 = vector.load %arg5[%c448_448, %c0_449] : memref<496x32xbf16, #tpu.memory_space<vmem>>, vector<32x32xbf16>
    %cst_450 = arith.constant dense<0.000000e+00> : vector<1x32xf32>
    %527 = tpu.matmul %525, %526, %cst_450 {dimension_numbers = #tpu.dot_dimension_numbers<[1], [0], [0], [1], [0, 0, 1, 1], [], []>} : vector<1x32xbf16>, vector<32x32xbf16>, vector<1x32xf32> -> vector<1x32xf32>
    %c9_451 = arith.constant 9 : index
    %c0_452 = arith.constant 0 : index
    %528 = vector.load %arg6[%c9_451, %c0_452] : memref<24x96xf32, #tpu.memory_space<vmem>>, vector<1x32xf32>
    %529 = arith.addf %527, %528 : vector<1x32xf32>
    %c352_453 = arith.constant 352 : index
    %c0_454 = arith.constant 0 : index
    %530 = vector.load %arg5[%c352_453, %c0_454] : memref<496x32xbf16, #tpu.memory_space<vmem>>, vector<96x32xbf16>
    %cst_455 = arith.constant dense<0.000000e+00> : vector<16x32xf32>
    %531 = tpu.matmul %513, %530, %cst_455 {dimension_numbers = #tpu.dot_dimension_numbers<[1], [0], [0], [1], [0, 0, 1, 1], [], []>} : vector<16x96xbf16>, vector<96x32xbf16>, vector<16x32xf32> -> vector<16x32xf32>
    %532 = vector.broadcast %529 : vector<1x32xf32> to vector<16x32xf32>
    %533 = arith.addf %531, %532 : vector<16x32xf32>
    %cst_456 = arith.constant 0.000000e+00 : f32
    %534 = vector.broadcast %cst_456 : f32 to vector<16x32xf32>
    %535 = arith.maximumf %533, %534 : vector<16x32xf32>
    %536 = arith.truncf %535 : vector<16x32xf32> to vector<16x32xbf16>
    %c0_457 = arith.constant 0 : index
    %c0_458 = arith.constant 0 : index
    %c0_459 = arith.constant 0 : index
    %537 = vector.load %arg2[%c0_457, %c0_458, %c0_459] : memref<19x16x16xbf16, #tpu.memory_space<vmem>>, vector<1x16x16xbf16>
    %538 = vector.shape_cast %537 : vector<1x16x16xbf16> to vector<16x16xbf16>
    %cst_460 = arith.constant dense<0.000000e+00> : vector<16x32xf32>
    %539 = tpu.matmul %538, %536, %cst_460 {dimension_numbers = #tpu.dot_dimension_numbers<[1], [0], [0], [1], [0, 0, 1, 1], [], []>} : vector<16x16xbf16>, vector<16x32xbf16>, vector<16x32xf32> -> vector<16x32xf32>
    %c1_461 = arith.constant 1 : index
    %c0_462 = arith.constant 0 : index
    %c0_463 = arith.constant 0 : index
    %540 = vector.load %arg2[%c1_461, %c0_462, %c0_463] : memref<19x16x16xbf16, #tpu.memory_space<vmem>>, vector<1x16x16xbf16>
    %541 = vector.shape_cast %540 : vector<1x16x16xbf16> to vector<16x16xbf16>
    %cst_464 = arith.constant dense<0.000000e+00> : vector<16x32xf32>
    %542 = tpu.matmul %541, %536, %cst_464 {dimension_numbers = #tpu.dot_dimension_numbers<[1], [0], [0], [1], [0, 0, 1, 1], [], []>} : vector<16x16xbf16>, vector<16x32xbf16>, vector<16x32xf32> -> vector<16x32xf32>
    %c2_465 = arith.constant 2 : index
    %c0_466 = arith.constant 0 : index
    %c0_467 = arith.constant 0 : index
    %543 = vector.load %arg2[%c2_465, %c0_466, %c0_467] : memref<19x16x16xbf16, #tpu.memory_space<vmem>>, vector<1x16x16xbf16>
    %544 = vector.shape_cast %543 : vector<1x16x16xbf16> to vector<16x16xbf16>
    %cst_468 = arith.constant dense<0.000000e+00> : vector<16x32xf32>
    %545 = tpu.matmul %544, %536, %cst_468 {dimension_numbers = #tpu.dot_dimension_numbers<[1], [0], [0], [1], [0, 0, 1, 1], [], []>} : vector<16x16xbf16>, vector<16x32xbf16>, vector<16x32xf32> -> vector<16x32xf32>
    %c3_469 = arith.constant 3 : index
    %c0_470 = arith.constant 0 : index
    %c0_471 = arith.constant 0 : index
    %546 = vector.load %arg2[%c3_469, %c0_470, %c0_471] : memref<19x16x16xbf16, #tpu.memory_space<vmem>>, vector<1x16x16xbf16>
    %547 = vector.shape_cast %546 : vector<1x16x16xbf16> to vector<16x16xbf16>
    %cst_472 = arith.constant dense<0.000000e+00> : vector<16x32xf32>
    %548 = tpu.matmul %547, %536, %cst_472 {dimension_numbers = #tpu.dot_dimension_numbers<[1], [0], [0], [1], [0, 0, 1, 1], [], []>} : vector<16x16xbf16>, vector<16x32xbf16>, vector<16x32xf32> -> vector<16x32xf32>
    %c4_473 = arith.constant 4 : index
    %c0_474 = arith.constant 0 : index
    %c0_475 = arith.constant 0 : index
    %549 = vector.load %arg2[%c4_473, %c0_474, %c0_475] : memref<19x16x16xbf16, #tpu.memory_space<vmem>>, vector<1x16x16xbf16>
    %550 = vector.shape_cast %549 : vector<1x16x16xbf16> to vector<16x16xbf16>
    %cst_476 = arith.constant dense<0.000000e+00> : vector<16x32xf32>
    %551 = tpu.matmul %550, %536, %cst_476 {dimension_numbers = #tpu.dot_dimension_numbers<[1], [0], [0], [1], [0, 0, 1, 1], [], []>} : vector<16x16xbf16>, vector<16x32xbf16>, vector<16x32xf32> -> vector<16x32xf32>
    %c5_477 = arith.constant 5 : index
    %c0_478 = arith.constant 0 : index
    %c0_479 = arith.constant 0 : index
    %552 = vector.load %arg2[%c5_477, %c0_478, %c0_479] : memref<19x16x16xbf16, #tpu.memory_space<vmem>>, vector<1x16x16xbf16>
    %553 = vector.shape_cast %552 : vector<1x16x16xbf16> to vector<16x16xbf16>
    %cst_480 = arith.constant dense<0.000000e+00> : vector<16x32xf32>
    %554 = tpu.matmul %553, %536, %cst_480 {dimension_numbers = #tpu.dot_dimension_numbers<[1], [0], [0], [1], [0, 0, 1, 1], [], []>} : vector<16x16xbf16>, vector<16x32xbf16>, vector<16x32xf32> -> vector<16x32xf32>
    %c6_481 = arith.constant 6 : index
    %c0_482 = arith.constant 0 : index
    %c0_483 = arith.constant 0 : index
    %555 = vector.load %arg2[%c6_481, %c0_482, %c0_483] : memref<19x16x16xbf16, #tpu.memory_space<vmem>>, vector<1x16x16xbf16>
    %556 = vector.shape_cast %555 : vector<1x16x16xbf16> to vector<16x16xbf16>
    %cst_484 = arith.constant dense<0.000000e+00> : vector<16x32xf32>
    %557 = tpu.matmul %556, %536, %cst_484 {dimension_numbers = #tpu.dot_dimension_numbers<[1], [0], [0], [1], [0, 0, 1, 1], [], []>} : vector<16x16xbf16>, vector<16x32xbf16>, vector<16x32xf32> -> vector<16x32xf32>
    %c7_485 = arith.constant 7 : index
    %c0_486 = arith.constant 0 : index
    %c0_487 = arith.constant 0 : index
    %558 = vector.load %arg2[%c7_485, %c0_486, %c0_487] : memref<19x16x16xbf16, #tpu.memory_space<vmem>>, vector<1x16x16xbf16>
    %559 = vector.shape_cast %558 : vector<1x16x16xbf16> to vector<16x16xbf16>
    %cst_488 = arith.constant dense<0.000000e+00> : vector<16x32xf32>
    %560 = tpu.matmul %559, %536, %cst_488 {dimension_numbers = #tpu.dot_dimension_numbers<[1], [0], [0], [1], [0, 0, 1, 1], [], []>} : vector<16x16xbf16>, vector<16x32xbf16>, vector<16x32xf32> -> vector<16x32xf32>
    %c8_489 = arith.constant 8 : index
    %c0_490 = arith.constant 0 : index
    %c0_491 = arith.constant 0 : index
    %561 = vector.load %arg2[%c8_489, %c0_490, %c0_491] : memref<19x16x16xbf16, #tpu.memory_space<vmem>>, vector<1x16x16xbf16>
    %562 = vector.shape_cast %561 : vector<1x16x16xbf16> to vector<16x16xbf16>
    %cst_492 = arith.constant dense<0.000000e+00> : vector<16x32xf32>
    %563 = tpu.matmul %562, %536, %cst_492 {dimension_numbers = #tpu.dot_dimension_numbers<[1], [0], [0], [1], [0, 0, 1, 1], [], []>} : vector<16x16xbf16>, vector<16x32xbf16>, vector<16x32xf32> -> vector<16x32xf32>
    %564 = tpu.concatenate %539, %542, %545, %548, %551, %554, %557, %560, %563 in 1 : vector<16x32xf32>, vector<16x32xf32>, vector<16x32xf32>, vector<16x32xf32>, vector<16x32xf32>, vector<16x32xf32>, vector<16x32xf32>, vector<16x32xf32>, vector<16x32xf32> -> vector<16x288xf32>
    %565 = arith.truncf %564 : vector<16x288xf32> to vector<16x288xbf16>
    %c0_493 = arith.constant 0 : index
    %c0_494 = arith.constant 0 : index
    %566 = vector.load %arg5[%c0_493, %c0_494] : memref<496x32xbf16, #tpu.memory_space<vmem>>, vector<288x32xbf16>
    %cst_495 = arith.constant dense<0.000000e+00> : vector<16x32xf32>
    %567 = tpu.matmul %565, %566, %cst_495 {dimension_numbers = #tpu.dot_dimension_numbers<[1], [0], [0], [1], [0, 0, 1, 1], [], []>} : vector<16x288xbf16>, vector<288x32xbf16>, vector<16x32xf32> -> vector<16x32xf32>
    %c10_496 = arith.constant 10 : index
    %c0_497 = arith.constant 0 : index
    %568 = vector.load %arg6[%c10_496, %c0_497] : memref<24x96xf32, #tpu.memory_space<vmem>>, vector<1x32xf32>
    %569 = vector.broadcast %568 : vector<1x32xf32> to vector<16x32xf32>
    %570 = arith.addf %567, %569 : vector<16x32xf32>
    %cst_498 = arith.constant 0.000000e+00 : f32
    %571 = vector.broadcast %cst_498 : f32 to vector<16x32xf32>
    %572 = arith.maximumf %570, %571 : vector<16x32xf32>
    %573 = arith.truncf %572 : vector<16x32xf32> to vector<16x32xbf16>
    %c480_499 = arith.constant 480 : index
    %c0_500 = arith.constant 0 : index
    %574 = vector.load %arg5[%c480_499, %c0_500] : memref<496x32xbf16, #tpu.memory_space<vmem>>, vector<16x32xbf16>
    %cst_501 = arith.constant dense<0.000000e+00> : vector<16x16xf32>
    %575 = tpu.matmul %574, %573, %cst_501 {dimension_numbers = #tpu.dot_dimension_numbers<[1], [1], [0], [0], [0, 0, 1, 0], [], []>} : vector<16x32xbf16>, vector<16x32xbf16>, vector<16x16xf32> -> vector<16x16xf32>
    %576 = vector.extract_strided_slice %575 {offsets = [0, 0], sizes = [8, 16], strides = [1, 1]} : vector<16x16xf32> to vector<8x16xf32>
    %c16_502 = arith.constant 16 : index
    %c0_503 = arith.constant 0 : index
    %577 = vector.load %arg6[%c16_502, %c0_503] : memref<24x96xf32, #tpu.memory_space<vmem>>, vector<8x1xf32>
    %578 = vector.broadcast %577 : vector<8x1xf32> to vector<8x16xf32>
    %579 = arith.addf %576, %578 : vector<8x16xf32>
    %580 = arith.truncf %579 : vector<8x16xf32> to vector<8x16xbf16>
    %c0_504 = arith.constant 0 : index
    %c0_505 = arith.constant 0 : index
    %581 = vector.load %arg7[%c0_504, %c0_505] : memref<16x256xbf16, #tpu.memory_space<vmem>>, vector<16x256xbf16>
    %cst_506 = arith.constant dense<0.000000e+00> : vector<8x256xf32>
    %582 = tpu.matmul %580, %581, %cst_506 {dimension_numbers = #tpu.dot_dimension_numbers<[1], [0], [0], [1], [0, 0, 1, 1], [], []>} : vector<8x16xbf16>, vector<16x256xbf16>, vector<8x256xf32> -> vector<8x256xf32>
    %c0_507 = arith.constant 0 : index
    %c1_508 = arith.constant 1 : index
    %c0_509 = arith.constant 0 : index
    %c0_510 = arith.constant 0 : index
    %583 = vector.load %arg8[%c0_507, %c1_508, %c0_509, %c0_510] : memref<1x2x8x256xf32, #tpu.memory_space<vmem>>, vector<1x1x8x256xf32>
    %584 = vector.shape_cast %583 : vector<1x1x8x256xf32> to vector<8x256xf32>
    %585 = vector.shape_cast %582 : vector<8x256xf32> to vector<1x1x8x256xf32>
    tpu.vector_store %arg8[%c0_507, %c1_508, %c0_509, %c0_510], %585 {strides = array<i32>} : memref<1x2x8x256xf32, #tpu.memory_space<vmem>>, vector<1x1x8x256xf32>,
    return
  }
  func.func @transform_0(%arg0: i32) -> (i32, i32, i32, i32) {
    %c0_i32 = arith.constant 0 : i32
    %c0_i32_0 = arith.constant 0 : i32
    %c0_i32_1 = arith.constant 0 : i32
    %c0_i32_2 = arith.constant 0 : i32
    return %arg0, %c0_i32, %c0_i32_0, %c0_i32_1 : i32, i32, i32, i32
  }
  func.func @transform_1(%arg0: i32) -> (i32, i32, i32) {
    %c0_i32 = arith.constant 0 : i32
    %c0_i32_0 = arith.constant 0 : i32
    %c0_i32_1 = arith.constant 0 : i32
    %c0_i32_2 = arith.constant 0 : i32
    return %c0_i32, %c0_i32_0, %c0_i32_1 : i32, i32, i32
  }
  func.func @transform_2(%arg0: i32) -> (i32, i32) {
    %c0_i32 = arith.constant 0 : i32
    %c0_i32_0 = arith.constant 0 : i32
    %c0_i32_1 = arith.constant 0 : i32
    return %c0_i32, %c0_i32_0 : i32, i32
  }
  func.func @transform_3(%arg0: i32) -> (i32, i32) {
    %c0_i32 = arith.constant 0 : i32
    %c0_i32_0 = arith.constant 0 : i32
    %c0_i32_1 = arith.constant 0 : i32
    return %c0_i32, %c0_i32_0 : i32, i32
  }
  func.func @transform_4(%arg0: i32) -> (i32, i32) {
    %c0_i32 = arith.constant 0 : i32
    %c0_i32_0 = arith.constant 0 : i32
    %c0_i32_1 = arith.constant 0 : i32
    return %c0_i32, %c0_i32_0 : i32, i32
  }
  func.func @transform_5(%arg0: i32) -> (i32, i32) {
    %c0_i32 = arith.constant 0 : i32
    %c0_i32_0 = arith.constant 0 : i32
    %c0_i32_1 = arith.constant 0 : i32
    return %c0_i32, %c0_i32_0 : i32, i32
  }
  func.func @transform_6(%arg0: i32) -> (i32, i32) {
    %c0_i32 = arith.constant 0 : i32
    %c0_i32_0 = arith.constant 0 : i32
    %c0_i32_1 = arith.constant 0 : i32
    return %c0_i32, %c0_i32_0 : i32, i32
  }
  func.func @transform_7(%arg0: i32) -> (i32, i32, i32, i32) {
    %c0_i32 = arith.constant 0 : i32
    %c0_i32_0 = arith.constant 0 : i32
    %c0_i32_1 = arith.constant 0 : i32
    %c0_i32_2 = arith.constant 0 : i32
    return %arg0, %c0_i32, %c0_i32_0, %c0_i32_1 : i32, i32, i32, i32
  }
}

</mosaic_0001>

<bundles_post_ra>
// kernel: _forward_jit.1
= control target key start
LH: loop header
LB: loop body
LE: loop exit
PB: predicated region body
PF: predicated region fallthrough
CT: control target
= control target key end

     0   :  { %s11287_s24 = smov 0   ;;  %s13475_s0 = inlined_call_operand.vmem [shape: f32[2,2,16,16], index: 0, kind: input, shape index: {}]   ;;  %s13476_s1 = inlined_call_operand.vmem [shape: bf16[19,16,16], index: 1, kind: input, shape index: {}]   ;;  %s13477_s2 = inlined_call_operand.vmem [shape: bf16[592,32], index: 2, kind: input, shape index: {}]   ;;  %s13478_s3 = inlined_call_operand.vmem [shape: bf16[1152,96], index: 3, kind: input, shape index: {}]   ;;  %s13479_s4 = inlined_call_operand.vmem [shape: bf16[496,32], index: 4, kind: input, shape index: {}]   ;;  %s13480_s5 = inlined_call_operand.vmem [shape: f32[24,96], index: 5, kind: input, shape index: {}]   ;;  %s13481_s6 = inlined_call_operand.vmem [shape: bf16[16,256], index: 6, kind: input, shape index: {}]   ;;  %s13482_s7 = inlined_call_operand.vmem [shape: f32[2,2,8,256], index: 7, kind: output, shape index: {}]  }
   0x1 LB: > { %s8832_s25 = sadd.s32 4294967295, %s11239_s24   ;;  %p8836_p0 = scmp.ge.s32.totalorder %s11239_s24, 1  ;;  %s11239_s24 = sphi %s11287_s24, %s17_s24  }
   0x2   : > { %p237_p1 = scmp.lt.s32.totalorder %s11239_s24, 3 }
   0x4   : > { %p238_p2 = pnand %p8836_p0, %p237_p1 }
   0x6   : > { %241 = sbr.rel (%p238_p2) target bundleno = 7029 (0x1b75), region = 48 }
   0xd   : > { %p269_p3 = scmp.lt.s32.totalorder %s8832_s25, 1  ;;  %vm282_vm0 = vcmask 130048   ;;  %v11316_v23 = vld [vmem:[%s13477_s2] sm:$0xff]   ;;  %v13483_v24 = vmov 0.0   ;;  %vm11242_vm1 = vmmov 0   ;;  %vm382_vm2 = vcmask 261120  }
   0xe   : > { %9887 = vmatprep.subr.bf16.mxu0 %v13483_v24  ;;  %9889 = vmatprep.mubr.msk.bf16.mxu0 %vm11242_vm1, %v13483_v24  ;;  %v11332_v39 = vld [vmem:[%s13480_s5] ss:$0 sm:$0xff]  ;;  %s11243_s13 = smov 32   ;;  %s11244_s16 = smov 64   ;;  %vm942_vm3 = vcmask 523264   ;;  %vm945_vm4 = vcmask 785408  }
   0xf   : > { %s13529_s25 = smov (!%p269_p3, %s8832_s25), 1  ;;  %9888 = vmatpush3.bf16.msra.mxu0 %v11316_v23  ;;  %9893 = vmatprep.subr.bf16.mxu1 %v13483_v24  ;;  %s11245_s17 = smov 96  }
  0x10   : > { %s9321_s26 = sshll.u32 %s13529_s25, 5  ;;  %9899 = vmatprep.subr.bf16.mxu0 %v13483_v24  ;;  %9895 = vmatprep.mubr.msk.bf16.mxu1 %vm11242_vm1, %v13483_v24 }
  0x11   : > { %s11303_s29 = scalar_lea.vmem %s13475_s0, %s9321_s26  ;;  %s13086_s20 = scalar_lea.vmem %s13482_s7, %s9321_s26 }
  0x12   : > { %v280_v0 = vld [vmem:[%s11303_s29] sm:$0xff]  ;;  %v281_v1 = vld [vmem:[%s11303_s29 + $0x8] sm:$0xff] }
  0x13   : > { %v283_v2 = vsel %vm282_vm0, %v280_v0, 0.0  ;;  %v284_v3 = vsel %vm282_vm0, %v281_v1, 0.0  ;;  %v11209_v14 = vld [vmem:[%s11303_s29] sm:$0xff]  ;;  %v11210_v16 = vld [vmem:[%s11303_s29 + $0x8] sm:$0xff] }
  0x14   : > { %v285_v4 = vadd.f32 %v284_v3, %v283_v2 }
  0x16   : > { %286 = vadd.xlane.f32.xlu0 %v285_v4 }
  0xa3   : > { %v287_v5 = vpop.xlane.xlu0 %286 }
  0xa4   : > { %v288_v6 = vrot.slane %v287_v5, 4 }
  0xa6   : > { %v289_v7 = vadd.f32 %v288_v6, %v287_v5 }
  0xa8   : > { %v290_v8 = vrot.slane %v289_v7, 2 }
  0xaa   : > { %v291_v9 = vadd.f32 %v290_v8, %v289_v7 }
  0xac   : > { %v292_v10 = vrot.slane %v291_v9, 1 }
  0xae   : > { %v293_v11 = vadd.f32 %v292_v10, %v291_v9  ;;  %v11351_v10 = vld [vmem:[%s13480_s5 + $0x3] ss:$0 sm:$0xff] }
  0xb0   : > { %10617 = vpush %v293_v11 }
  0xe1   : > { %s10618_s30 = spop %10617 }
  0xe2   : > { %v295_v12 = vstv %s10618_s30 }
  0xe3   : > { %v297_v13 = vmul.f32 0.00390625, %v295_v12 }
  0xe5   : > { %v298_v15 = vsub.f32 %v11209_v14, %v297_v13  ;;  %v299_v17 = vsub.f32 %v11210_v16, %v297_v13  ;;  %v11356_v13 = vld [vmem:[%s13480_s5 + $0x4] ss:$0 sm:$0xff] }
  0xe7   : > { %v300_v18 = vmul.f32 %v298_v15, %v298_v15  ;;  %v301_v19 = vmul.f32 %v299_v17, %v299_v17 }
  0xe9   : > { %v302_v20 = vsel %vm282_vm0, %v300_v18, 0.0  ;;  %v303_v21 = vsel %vm282_vm0, %v301_v19, 0.0  ;;  %v11365_v19 = vld [vmem:[%s13476_s1] sm:$0xff]  }
  0xea   : > { %v304_v22 = vadd.f32 %v303_v21, %v302_v20  ;;  %v11370_v20 = vld [vmem:[%s13476_s1 + $0x8] sm:$0xff]   ;;  %v11387_v21 = vld [vmem:[%s13476_s1 + $0x10] sm:$0xff]  }
  0xec   : > { %305 = vadd.xlane.f32.xlu0 %v304_v22  ;;  %v11392_v22 = vld [vmem:[%s13476_s1 + $0x18] sm:$0xff]  }
 0x179   : > { %v306_v25 = vpop.xlane.xlu0 %305 }
 0x17a   : > { %v307_v26 = vrot.slane %v306_v25, 4 }
 0x17c   : > { %v308_v27 = vadd.f32 %v307_v26, %v306_v25  ;;  %v11407_v25 = vld [vmem:[%s13476_s1 + $0x20] sm:$0xff]   ;;  %v11412_v26 = vld [vmem:[%s13476_s1 + $0x28] sm:$0xff]  }
 0x17e   : > { %v309_v28 = vrot.slane %v308_v27, 2 }
 0x180   : > { %v310_v29 = vadd.f32 %v309_v28, %v308_v27  ;;  %v11426_v27 = vld [vmem:[%s13476_s1 + $0x30] sm:$0xff]   ;;  %v11431_v28 = vld [vmem:[%s13476_s1 + $0x38] sm:$0xff]  }
 0x182   : > { %v311_v30 = vrot.slane %v310_v29, 1 }
 0x184   : > { %v312_v31 = vadd.f32 %v311_v30, %v310_v29  ;;  %v11443_v29 = vld [vmem:[%s13476_s1 + $0x40] sm:$0xff]   ;;  %v11452_v30 = vld [vmem:[%s13477_s2 + $0x48] sm:$0xff]  }
 0x186   : > { %10619 = vpush %v312_v31  ;;  %v11457_v31 = vld [vmem:[%s13477_s2 + $0x8] sm:$0xff]  }
 0x1b7   : > { %s10620_s10 = spop %10619 }
 0x1b8   : > { %v314_v32 = vstv %s10620_s10 }
 0x1b9   : > { %v315_v33 = vmul.f32 0.00390625, %v314_v32  ;;  %v11463_v32 = vld [vmem:[%s13477_s2 + $0x50] sm:$0xff]  }
 0x1bb   : > { %v316_v34 = vadd.f32 1e-05, %v315_v33  ;;  %v11469_v33 = vld [vmem:[%s13477_s2 + $0x10] sm:$0xff]  }
 0x1bd   : > { %11197 = vrsqrt.f32 %v316_v34  ;;  %v11475_v34 = vld [vmem:[%s13477_s2 + $0x58] sm:$0xff]  }
 0x1c7   : > { %v11198_v35 = vpop.eup %11197 }
 0x1c8   : > { %v318_v36 = vmul.f32 %v11198_v35, %v298_v15  ;;  %v319_v37 = vmul.f32 %v11198_v35, %v299_v17  ;;  %v11481_v35 = vld [vmem:[%s13477_s2 + $0x18] sm:$0xff]  }
 0x1ca   : > { %v320_v38 = vpack.c.bf16 %v319_v37, %v318_v36 }
 0x1cc   : > { %9890 = vmatmul.mubr.msk.bf16.vlgmr.msra.gmra.mrb[0].mxu0 %vm282_vm0, %v320_v38  ;;  %v11489_v38 = vld [vmem:[%s13477_s2 + $0x60] sm:$0xff]  }
 0x1cd   : > { %9901 = vmatprep.mubr.msk.bf16.mxu0 %vm11242_vm1, %v13483_v24 }
 0x29f   : > { %v371_v40 = vpop.f32.mrb[0].mxu0 }
 0x2a0   : > { %v372_v41 = vadd.f32 %v11332_v39, %v371_v40  ;;  %v9891_v42 = vpop.f32.mrb[1].mxu0 }
 0x2a1   : > { %v374_v43 = vpop.f32.mrb[2].mxu0 }
 0x2a2   : > { %v11335_v44 = vmax.f32 %v372_v41, 0.0  ;;  %v375_v45 = vadd.f32 %v11332_v39, %v374_v43  ;;  %v9892_v46 = vpop.f32.mrb[3].mxu0 }
 0x2a4   : > { %13499 = vst [vmem:[#allocation2_spill] sm:$0xff] %v11335_v44  ;;  %v11338_v47 = vmax.f32 %v375_v45, 0.0  ;;  %v383_v48 = vsel %vm382_vm2, %v11335_v44, 0.0 }
 0x2a6   : > { %13500 = vst [vmem:[#allocation3_spill] sm:$0xff] %v11338_v47  ;;  %v384_v49 = vsel %vm382_vm2, %v11338_v47, 0.0 }
 0x2a7   : > { %v385_v50 = vadd.f32 %v384_v49, %v383_v48  ;;  %v11497_v49 = vld [vmem:[%s13477_s2 + $0x20] sm:$0xff]  }
 0x2a9   : > { %v386_v51 = vrot.slane %v385_v50, 4 }
 0x2ab   : > { %v387_v52 = vadd.f32 %v386_v51, %v385_v50 }
 0x2ad   : > { %v388_v53 = vrot.slane %v387_v52, 2 }
 0x2af   : > { %v389_v54 = vadd.f32 %v388_v53, %v387_v52  ;;  %v11505_v52 = vld [vmem:[%s13477_s2 + $0x68] sm:$0xff]  }
 0x2b1   : > { %v390_v55 = vrot.slane %v389_v54, 1 }
 0x2b3   : > { %v391_v56 = vadd.f32 %v390_v55, %v389_v54  ;;  %v11510_v55 = vld [vmem:[%s13477_s2 + $0x28] sm:$0xff]  }
 0x2b5   : > { %v393_v57 = vmul.f32 0.0625, %v391_v56 }
 0x2b7   : > { %v394_v58 = vsub.f32 %v11335_v44, %v393_v57  ;;  %v395_v59 = vsub.f32 %v11338_v47, %v393_v57  ;;  %v13513_v44 = vmov 0.0  }
 0x2b9   : > { %v396_v60 = vmul.f32 %v394_v58, %v394_v58  ;;  %v397_v61 = vmul.f32 %v395_v59, %v395_v59 }
 0x2bb   : > { %v398_v62 = vsel %vm382_vm2, %v396_v60, 0.0  ;;  %v399_v63 = vsel %vm382_vm2, %v397_v61, 0.0 }
 0x2bc   : > { %v400_v0 = vadd.f32 %v399_v63, %v398_v62  ;;  %v11517_v62 = vld [vmem:[%s13477_s2 + $0x70] sm:$0xff]  }
 0x2bd   : > { %v11522_v63 = vld [vmem:[%s13477_s2 + $0x30] sm:$0xff]  }
 0x2be   : > { %v401_v1 = vrot.slane %v400_v0, 4 }
 0x2c0   : > { %v402_v2 = vadd.f32 %v401_v1, %v400_v0 }
 0x2c2   : > { %v403_v3 = vrot.slane %v402_v2, 2 }
 0x2c4   : > { %v404_v4 = vadd.f32 %v403_v3, %v402_v2  ;;  %v11531_v2 = vld [vmem:[%s13477_s2 + $0x78] sm:$0xff]  }
 0x2c6   : > { %v405_v5 = vrot.slane %v404_v4, 1 }
 0x2c8   : > { %v406_v6 = vadd.f32 %v405_v5, %v404_v4  ;;  %v11536_v5 = vld [vmem:[%s13477_s2 + $0x38] sm:$0xff]  }
 0x2ca   : > { %v407_v7 = vmul.f32 0.0625, %v406_v6  ;;  %v11541_v6 = vld [vmem:[%s13477_s2 + $0x88] sm:$0xff]  }
 0x2cc   : > { %v408_v8 = vadd.f32 1e-05, %v407_v7 }
 0x2ce   : > { %11199 = vrsqrt.f32 %v408_v8 }
 0x2d8   : > { %v11200_v9 = vpop.eup %11199 }
 0x2d9   : > { %v410_v11 = vmul.f32 %v11200_v9, %v394_v58  ;;  %v411_v12 = vmul.f32 %v11200_v9, %v395_v59 }
 0x2db   : > { %v416_v14 = vmul.f32 %v11351_v10, %v410_v11  ;;  %v417_v15 = vmul.f32 %v11351_v10, %v411_v12 }
 0x2dd   : > { %v422_v16 = vadd.f32 %v11356_v13, %v416_v14  ;;  %v423_v17 = vadd.f32 %v11356_v13, %v417_v15  ;;  %v11551_v14 = vld [vmem:[%s13477_s2 + $0x80] sm:$0xff]  }
 0x2de   : > { %v11558_v15 = vld [vmem:[%s13477_s2 + $0x40] sm:$0xff]  }
 0x2df   : > { %v424_v18 = vpack.c.bf16 %v423_v17, %v422_v16  ;;  %v11563_v16 = vld [vmem:[%s13477_s2 + $0x90] sm:$0xff]  }
 0x2e1   : > { %9894 = vmatpush3.bf16.msra.mxu1 %v424_v18  ;;  %9900 = vmatpush3.bf16.msra.mxu0 %v424_v18 }
 0x2e2   : > { %9905 = vmatprep.subr.bf16.mxu1 %v13483_v24  ;;  %9911 = vmatprep.subr.bf16.mxu0 %v13483_v24 }
 0x2e4   : > { %9896 = vmatmul.mubr.msk.bf16.vlgmr.msra.gmra.mrb[0].mxu1 %vm282_vm0, %v11365_v19  ;;  %9902 = vmatmul.mubr.msk.bf16.vlgmr.msra.gmra.mrb[4].mxu0 %vm282_vm0, %v11370_v20 }
 0x2e5   : > { %9906 = vmatpush3.bf16.msra.mxu1 %v424_v18  ;;  %9912 = vmatpush3.bf16.msra.mxu0 %v424_v18 }
 0x2e6   : > { %9907 = vmatprep.mubr.msk.bf16.mxu1 %vm11242_vm1, %v13483_v24  ;;  %9913 = vmatprep.mubr.msk.bf16.mxu0 %vm11242_vm1, %v13483_v24 }
 0x2e7   : > { %9917 = vmatprep.subr.bf16.mxu1 %v13483_v24  ;;  %9923 = vmatprep.subr.bf16.mxu0 %v13483_v24 }
 0x2ec   : > { %9908 = vmatmul.mubr.msk.bf16.vlgmr.msra.gmra.mrb[4].mxu1 %vm282_vm0, %v11387_v21  ;;  %9914 = vmatmul.mubr.msk.bf16.vlgmr.msra.gmra.mrb[8].mxu0 %vm282_vm0, %v11392_v22 }
 0x2ed   : > { %9918 = vmatpush3.bf16.msra.mxu1 %v424_v18  ;;  %9924 = vmatpush3.bf16.msra.mxu0 %v424_v18 }
 0x2ee   : > { %9919 = vmatprep.mubr.msk.bf16.mxu1 %vm11242_vm1, %v13483_v24  ;;  %9925 = vmatprep.mubr.msk.bf16.mxu0 %vm11242_vm1, %v13483_v24 }
 0x2ef   : > { %9929 = vmatprep.subr.bf16.mxu1 %v13483_v24  ;;  %9935 = vmatprep.subr.bf16.mxu0 %v13483_v24 }
 0x2f4   : > { %9920 = vmatmul.mubr.msk.bf16.vlgmr.msra.gmra.mrb[8].mxu1 %vm282_vm0, %v11407_v25  ;;  %9926 = vmatmul.mubr.msk.bf16.vlgmr.msra.gmra.mrb[12].mxu0 %vm282_vm0, %v11412_v26 }
 0x2f5   : > { %9930 = vmatpush3.bf16.msra.mxu1 %v424_v18  ;;  %9936 = vmatpush3.bf16.msra.mxu0 %v424_v18 }
 0x2f6   : > { %9931 = vmatprep.mubr.msk.bf16.mxu1 %vm11242_vm1, %v13483_v24  ;;  %9937 = vmatprep.mubr.msk.bf16.mxu0 %vm11242_vm1, %v13483_v24 }
 0x2f7   : > { %9941 = vmatprep.subr.bf16.mxu1 %v13483_v24  ;;  %9343 = vmatprep.subr.bf16.mxu0 %v11452_v30 }
 0x2fc   : > { %9932 = vmatmul.mubr.msk.bf16.vlgmr.msra.gmra.mrb[12].mxu1 %vm282_vm0, %v11426_v27  ;;  %9938 = vmatmul.mubr.msk.bf16.vlgmr.msra.gmra.mrb[16].mxu0 %vm282_vm0, %v11431_v28 }
 0x2fd   : > { %9942 = vmatpush3.bf16.msra.mxu1 %v424_v18  ;;  %9943 = vmatprep.mubr.msk.bf16.mxu1 %vm11242_vm1, %v13483_v24 }
 0x2fe   : > { %9947 = vmatprep.subr.bf16.mxu1 %v13483_v24  ;;  %9344 = vmatpush3.bf16.msra.mxu0 %v11457_v31 }
 0x2ff   : > { %9345 = vmatprep.subr.bf16.mxu0 %v11463_v32 }
 0x302   : > { %9346 = vmatpush3.bf16.msra.mxu0 %v11469_v33 }
 0x303   : > { %9347 = vmatprep.subr.bf16.mxu0 %v11475_v34 }
 0x304   : > { %9944 = vmatmul.mubr.msk.bf16.vlgmr.msra.gmra.mrb[16].mxu1 %vm282_vm0, %v11443_v29 }
 0x305   : > { %9951 = vmatprep.mubr.msk.bf16.mxu1 %vm11242_vm1, %v13483_v24  ;;  %9948 = vmatpush3.bf16.msra.mxu1 %v11541_v6 }
 0x306   : > { %9348 = vmatpush3.bf16.msra.mxu0 %v11481_v35  ;;  %9949 = vmatprep.subr.bf16.mxu1 %v13483_v24 }
 0x307   : > { %9349 = vmatprep.subr.bf16.mxu0 %v11489_v38 }
 0x309   : > { %9950 = vmatpush3.bf16.msra.mxu1 %v11563_v16 }
 0x30a   : > { %9350 = vmatpush3.bf16.msra.mxu0 %v11497_v49  ;;  %9955 = vmatprep.subr.bf16.mxu1 %v13483_v24 }
 0x30b   : > { %9351 = vmatprep.subr.bf16.mxu0 %v11505_v52 }
 0x30e   : > { %9352 = vmatpush3.bf16.msra.mxu0 %v11510_v55 }
 0x30f   : > { %9353 = vmatprep.subr.bf16.mxu0 %v11517_v62 }
 0x312   : > { %9354 = vmatpush3.bf16.msra.mxu0 %v11522_v63 }
 0x313   : > { %9355 = vmatprep.subr.bf16.mxu0 %v11531_v2 }
 0x316   : > { %9356 = vmatpush3.bf16.msra.mxu0 %v11536_v5 }
 0x317   : > { %9357 = vmatprep.subr.bf16.mxu0 %v11551_v14 }
 0x31a   : > { %9358 = vmatpush3.bf16.msra.mxu0 %v11558_v15 }
 0x31b   : > { %9973 = vmatprep.subr.bf16.mxu0 %v13483_v24 }
 0x3b7   : > { %v11483_v36 = vpop.f32.mrb[0].mxu1  ;;  %v521_v37 = vpop.f32.mrb[4].mxu0 }
 0x3b8   : > { %v9897_v40 = vpop.f32.mrb[1].mxu1  ;;  %v9903_v41 = vpop.f32.mrb[5].mxu0 }
 0x3b9   : > { %v11491_v42 = vpop.f32.mrb[2].mxu1  ;;  %v524_v43 = vpop.f32.mrb[6].mxu0 }
 0x3ba   : > { %v10639_v45 = vpack.i.bf16 %v524_v43, %v521_v37  ;;  %v9898_v46 = vpop.f32.mrb[3].mxu1  ;;  %v9904_v48 = vpop.f32.mrb[7].mxu0 }
 0x3bc   : > { %10640 = vrot.lane.b32.xlu1 %v10639_v45, %s11243_s13 }
 0x3bf   : > { %v573_v50 = vpop.f32.mrb[4].mxu1  ;;  %v625_v51 = vpop.f32.mrb[8].mxu0 }
 0x3c0   : > { %v9909_v53 = vpop.f32.mrb[5].mxu1  ;;  %v9915_v54 = vpop.f32.mrb[9].mxu0 }
 0x3c1   : > { %v576_v56 = vpop.f32.mrb[6].mxu1  ;;  %v628_v57 = vpop.f32.mrb[10].mxu0 }
 0x3c2   : > { %v10654_v58 = vpack.i.bf16 %v576_v56, %v573_v50  ;;  %v10664_v59 = vpack.i.bf16 %v628_v57, %v625_v51  ;;  %v9910_v60 = vpop.f32.mrb[7].mxu1  ;;  %v9916_v61 = vpop.f32.mrb[11].mxu0 }
 0x3c3   : > { %v8932_v60 = vld [vmem:[%s11303_s29 + $0x18] sm:$0xff] }
 0x3c7   : > { %v11526_v0 = vpop.f32.mrb[8].mxu1  ;;  %v729_v1 = vpop.f32.mrb[12].mxu0 }
 0x3c8   : > { %v9921_v3 = vpop.f32.mrb[9].mxu1  ;;  %v9927_v4 = vpop.f32.mrb[13].mxu0 }
 0x3c9   : > { %v11543_v7 = vpop.f32.mrb[10].mxu1  ;;  %v732_v8 = vpop.f32.mrb[14].mxu0 }
 0x3ca   : > { %v10644_v9 = vpack.i.bf16 %v732_v8, %v729_v1  ;;  %v9922_v11 = vpop.f32.mrb[11].mxu1  ;;  %v9928_v12 = vpop.f32.mrb[15].mxu0  ;;  %v1910_v1 = vsel %vm282_vm0, %v8932_v60, 0.0 }
 0x3cc   : > { %10645 = vrot.lane.b32.xlu1 %v10644_v9, %s11243_s13 }
 0x3cf   : > { %v781_v17 = vpop.f32.mrb[12].mxu1  ;;  %v833_v18 = vpop.f32.mrb[16].mxu0 }
 0x3d0   : > { %v9933_v37 = vpop.f32.mrb[13].mxu1  ;;  %10655 = vrot.lane.b32.xlu1 %v10654_v58, %s11244_s16  ;;  %v9939_v40 = vpop.f32.mrb[17].mxu0  ;;  %v8931_v58 = vld [vmem:[%s11303_s29 + $0x10] sm:$0xff] }
 0x3d1   : > { %v784_v41 = vpop.f32.mrb[14].mxu1  ;;  %v836_v43 = vpop.f32.mrb[18].mxu0  ;;  %v1909_v61 = vsel %vm282_vm0, %v8931_v58, 0.0 }
 0x3d2   : > { %v10649_v45 = vpack.i.bf16 %v784_v41, %v781_v17  ;;  %v10659_v46 = vpack.i.bf16 %v836_v43, %v833_v18  ;;  %v9934_v48 = vpop.f32.mrb[15].mxu1  ;;  %v9940_v50 = vpop.f32.mrb[19].mxu0  ;;  %v1911_v3 = vadd.f32 %v1910_v1, %v1909_v61 }
 0x3d4   : > { %10650 = vrot.lane.b32.xlu0 %v10649_v45, %s11244_s16  ;;  %10660 = vrot.lane.b32.xlu1 %v10659_v46, %s11245_s17 }
 0x3d7   : > { %v885_v51 = vpop.f32.mrb[16].mxu1 }
 0x3d8   : > { %10665 = vrot.lane.b32.xlu1 %v10664_v59, %s11245_s17  ;;  %v9945_v53 = vpop.f32.mrb[17].mxu1 }
 0x3d9   : > { %v888_v54 = vpop.f32.mrb[18].mxu1 }
 0x3da   : > { %v956_v56 = vpack.c.bf16 %v888_v54, %v885_v51  ;;  %v9946_v57 = vpop.f32.mrb[19].mxu1 }
 0x3dc   : > { %9952 = vmatmul.mubr.msk.bf16.vlgmr.msra.gmra.mrb[20].mxu1 %vm382_vm2, %v956_v56 }
 0x3dd   : > { %9957 = vmatprep.mubr.msk.bf16.mxu1 %vm11242_vm1, %v13483_v24 }
 0x3fc   : > { %1912 = vadd.xlane.f32.xlu1 %v1911_v3 }
 0x42e   : > { %v10641_v4 = vpop.permute.xlu1 %10640 }
 0x42f   : > { %v10643_v12 = vunpack.i.h.bf16 %v10641_v4  ;;  %v10642_v17 = vunpack.i.l.bf16 %v10641_v4 }
 0x431   : > { %v941_v56 = vsel %vm382_vm2, %v11491_v42, %v10643_v12 }
 0x43e   : > { %v10646_v8 = vpop.permute.xlu1 %10645 }
 0x43f   : > { %v10648_v9 = vunpack.i.h.bf16 %v10646_v8  ;;  %v10647_v11 = vunpack.i.l.bf16 %v10646_v8 }
 0x441   : > { %v949_v46 = vsel %vm382_vm2, %v11543_v7, %v10648_v9  ;;  %v948_v48 = vsel %vm382_vm2, %v11526_v0, %v10647_v11  ;;  %v940_v7 = vsel %vm382_vm2, %v11483_v36, %v10642_v17 }
 0x442   : > { %v10656_v59 = vpop.permute.xlu1 %10655 }
 0x443   : > { %v10658_v50 = vunpack.i.h.bf16 %v10656_v59  ;;  %v10657_v51 = vunpack.i.l.bf16 %v10656_v59 }
 0x445   : > { %v944_v8 = vsel %vm942_vm3, %v941_v56, %v10658_v50  ;;  %v943_v59 = vsel %vm942_vm3, %v940_v7, %v10657_v51 }
 0x446   : > { %v10651_v18 = vpop.permute.xlu0 %10650  ;;  %v10661_v37 = vpop.permute.xlu1 %10660 }
 0x447   : > { %v10653_v40 = vunpack.i.h.bf16 %v10651_v18  ;;  %v10652_v41 = vunpack.i.l.bf16 %v10651_v18  ;;  %v10663_v43 = vunpack.i.h.bf16 %v10661_v37  ;;  %v10662_v45 = vunpack.i.l.bf16 %v10661_v37 }
 0x449   : > { %v950_v53 = vsel %vm942_vm3, %v948_v48, %v10652_v41  ;;  %v951_v54 = vsel %vm942_vm3, %v949_v46, %v10653_v40 }
 0x44a   : > { %v10666_v57 = vpop.permute.xlu1 %10665  ;;  %v952_v61 = vsel %vm945_vm4, %v950_v53, %v10662_v45  ;;  %v953_v1 = vsel %vm945_vm4, %v951_v54, %v10663_v43 }
 0x44b   : > { %v10668_v3 = vunpack.i.h.bf16 %v10666_v57  ;;  %v10667_v4 = vunpack.i.l.bf16 %v10666_v57  ;;  %v955_v0 = vpack.c.bf16 %v953_v1, %v952_v61 }
 0x44d   : > { %v947_v9 = vsel %vm945_vm4, %v944_v8, %v10668_v3  ;;  %v946_v11 = vsel %vm945_vm4, %v943_v59, %v10667_v4  ;;  %1141 = vmatprep.mubr.bf16.mxu0 %v955_v0 }
 0x44e   : > { %v954_v42 = vpack.c.bf16 %v947_v9, %v946_v11 }
 0x450   : > { %1142 = vmatmul.mubr.bf16.vlgmr.msra.gmra.mrb[20].mxu0 %v954_v42 }
 0x451   : > { %9975 = vmatprep.mubr.msk.bf16.mxu0 %vm11242_vm1, %v13483_v24 }
 0x489   : > { %v1913_v12 = vpop.xlane.xlu1 %1912 }
 0x48a   : > { %v1914_v18 = vrot.slane %v1913_v12, 4 }
 0x48c   : > { %v1915_v36 = vadd.f32 %v1914_v18, %v1913_v12 }
 0x48e   : > { %v1916_v17 = vrot.slane %v1915_v36, 2 }
 0x490   : > { %v1917_v37 = vadd.f32 %v1916_v17, %v1915_v36 }
 0x492   : > { %v1918_v40 = vrot.slane %v1917_v37, 1 }
 0x494   : > { %v1919_v41 = vadd.f32 %v1918_v40, %v1917_v37 }
 0x496   : > { %10621 = vpush %v1919_v41 }
 0x4af   : > { %v1184_v43 = vpop.f32.mrb[20].mxu1 }
 0x4b0   : > { %v9953_v45 = vpop.f32.mrb[21].mxu1 }
 0x4b1   : > { %v1187_v46 = vpop.f32.mrb[22].mxu1 }
 0x4b2   : > { %v9954_v48 = vpop.f32.mrb[23].mxu1 }
 0x4c7   : > { %s10622_s29 = spop %10621 }
 0x4c8   : > { %v1921_v50 = vstv %s10622_s29 }
 0x4c9   : > { %v1922_v51 = vmul.f32 0.00390625, %v1921_v50 }
 0x4cb   : > { %v11599_v53 = vsub.f32 %v8931_v58, %v1922_v51  ;;  %v11601_v54 = vsub.f32 %v8932_v60, %v1922_v51  ;;  %v11612_v58 = vld [vmem:[%s13480_s5 + $0x1] ss:$0 sm:$0xff] }
 0x4cd   : > { %v1925_v56 = vmul.f32 %v11599_v53, %v11599_v53  ;;  %v1926_v57 = vmul.f32 %v11601_v54, %v11601_v54 }
 0x4cf   : > { %v1927_v61 = vsel %vm282_vm0, %v1925_v56, 0.0  ;;  %v1928_v1 = vsel %vm282_vm0, %v1926_v57, 0.0 }
 0x4d0   : > { %v1929_v7 = vadd.f32 %v1928_v1, %v1927_v61 }
 0x4d2   : > { %1930 = vadd.xlane.f32.xlu0 %v1929_v7 }
 0x523   : > { %v9359_v3 = vpop.f32.mrb[20].mxu0 }
 0x524   : > { %v9360_v60 = vpop.f32.mrb[21].mxu0 }
 0x525   : > { %v9361_v4 = vadd.f32 %v9360_v60, %v9359_v3  ;;  %v9362_v0 = vpop.f32.mrb[22].mxu0 }
 0x526   : > { %v9363_v8 = vpop.f32.mrb[23].mxu0 }
 0x527   : > { %v1144_v59 = vadd.f32 %v9361_v4, %v11612_v58  ;;  %v9364_v9 = vadd.f32 %v9363_v8, %v9362_v0 }
 0x529   : > { %v1185_v11 = vadd.f32 %v1184_v43, %v1144_v59  ;;  %v1147_v42 = vadd.f32 %v9364_v9, %v11612_v58 }
 0x52b   : > { %v1191_v12 = vmax.f32 %v1185_v11, 0.0  ;;  %v1188_v18 = vadd.f32 %v1187_v46, %v1147_v42 }
 0x52d   : > { %v1192_v36 = vmax.f32 %v1188_v18, 0.0  ;;  %v1195_v17 = vsel %vm382_vm2, %v1191_v12, 0.0 }
 0x52f   : > { %v1196_v37 = vsel %vm382_vm2, %v1192_v36, 0.0 }
 0x530   : > { %v1197_v40 = vadd.f32 %v1196_v37, %v1195_v17 }
 0x532   : > { %v1198_v41 = vrot.slane %v1197_v40, 4 }
 0x534   : > { %v1199_v45 = vadd.f32 %v1198_v41, %v1197_v40 }
 0x536   : > { %v1200_v48 = vrot.slane %v1199_v45, 2 }
 0x538   : > { %v1201_v50 = vadd.f32 %v1200_v48, %v1199_v45  ;;  %v11628_v48 = vld [vmem:[%s13480_s5 + $0x6] ss:$0 sm:$0xff] }
 0x53a   : > { %v1202_v51 = vrot.slane %v1201_v50, 1 }
 0x53c   : > { %v1203_v56 = vadd.f32 %v1202_v51, %v1201_v50 }
 0x53e   : > { %v1204_v57 = vmul.f32 0.0625, %v1203_v56 }
 0x540   : > { %v1205_v61 = vsub.f32 %v1191_v12, %v1204_v57  ;;  %v1206_v1 = vsub.f32 %v1192_v36, %v1204_v57  ;;  %v11623_v36 = vld [vmem:[%s13480_s5 + $0x5] ss:$0 sm:$0xff] }
 0x542   : > { %v1207_v43 = vmul.f32 %v1205_v61, %v1205_v61  ;;  %v1208_v7 = vmul.f32 %v1206_v1, %v1206_v1 }
 0x544   : > { %v1209_v3 = vsel %vm382_vm2, %v1207_v43, 0.0  ;;  %v1210_v46 = vsel %vm382_vm2, %v1208_v7, 0.0 }
 0x545   : > { %v1211_v60 = vadd.f32 %v1210_v46, %v1209_v3 }
 0x547   : > { %v1212_v4 = vrot.slane %v1211_v60, 4 }
 0x549   : > { %v1213_v0 = vadd.f32 %v1212_v4, %v1211_v60  ;;  %v11686_v60 = vld [vmem:[%s13477_s2 + $0x120] sm:$0xff]  }
 0x54a   : > { %13502 = vst [vmem:[#allocation5_spill] sm:$0xff] %v11686_v60 }
 0x54b   : > { %v1214_v8 = vrot.slane %v1213_v0, 2 }
 0x54d   : > { %v1215_v59 = vadd.f32 %v1214_v8, %v1213_v0 }
 0x54f   : > { %v1216_v9 = vrot.slane %v1215_v59, 1 }
 0x551   : > { %v1217_v11 = vadd.f32 %v1216_v9, %v1215_v59  ;;  %v11695_v9 = vld [vmem:[%s13477_s2 + $0xd8] sm:$0xff]  }
 0x553   : > { %v1218_v42 = vmul.f32 0.0625, %v1217_v11 }
 0x555   : > { %v1219_v18 = vadd.f32 1e-05, %v1218_v42 }
 0x557   : > { %11201 = vrsqrt.f32 %v1219_v18  ;;  %v11702_v18 = vld [vmem:[%s13477_s2 + $0x98] sm:$0xff]  }
 0x55f   : > { %v1931_v17 = vpop.xlane.xlu0 %1930 }
 0x560   : > { %v1932_v37 = vrot.slane %v1931_v17, 4 }
 0x561   : > { %v11202_v12 = vpop.eup %11201 }
 0x562   : > { %v1221_v40 = vmul.f32 %v11202_v12, %v1205_v61  ;;  %v1222_v41 = vmul.f32 %v11202_v12, %v1206_v1  ;;  %v1933_v45 = vadd.f32 %v1932_v37, %v1931_v17  ;;  %v11679_v1 = vld [vmem:[%s13477_s2 + $0x118] sm:$0xff]   ;;  %v11707_v17 = vld [vmem:[%s13477_s2 + $0xe0] sm:$0xff]  }
 0x563   : > { %13501 = vst [vmem:[#allocation4_spill] sm:$0xff] %v11679_v1 }
 0x564   : > { %v1227_v50 = vmul.f32 %v11623_v36, %v1221_v40  ;;  %v1228_v51 = vmul.f32 %v11623_v36, %v1222_v41  ;;  %v1934_v56 = vrot.slane %v1933_v45, 2  ;;  %v11714_v41 = vld [vmem:[%s13477_s2 + $0xa0] sm:$0xff]  }
 0x566   : > { %v1233_v57 = vadd.f32 %v11628_v48, %v1227_v50  ;;  %v1234_v43 = vadd.f32 %v11628_v48, %v1228_v51  ;;  %v1935_v7 = vadd.f32 %v1934_v56, %v1933_v45 }
 0x568   : > { %v1235_v3 = vpack.c.bf16 %v1234_v43, %v1233_v57  ;;  %v1936_v46 = vrot.slane %v1935_v7, 1  ;;  %v11721_v57 = vld [vmem:[%s13477_s2 + $0xe8] sm:$0xff]  }
 0x56a   : > { %9956 = vmatpush3.bf16.msra.mxu1 %v1235_v3  ;;  %9974 = vmatpush3.bf16.msra.mxu0 %v1235_v3  ;;  %v1937_v61 = vadd.f32 %v1936_v46, %v1935_v7 }
 0x56b   : > { %9961 = vmatprep.subr.bf16.mxu1 %v13483_v24  ;;  %9985 = vmatprep.subr.bf16.mxu0 %v13483_v24 }
 0x56c   : > { %10623 = vpush %v1937_v61 }
 0x56d   : > { %9958 = vmatmul.mubr.msk.bf16.vlgmr.msra.gmra.mrb[24].mxu1 %vm282_vm0, %v11365_v19  ;;  %9976 = vmatmul.mubr.msk.bf16.vlgmr.msra.gmra.mrb[24].mxu0 %vm282_vm0, %v11392_v22 }
 0x56e   : > { %9962 = vmatpush3.bf16.msra.mxu1 %v1235_v3  ;;  %9986 = vmatpush3.bf16.msra.mxu0 %v1235_v3 }
 0x56f   : > { %9963 = vmatprep.mubr.msk.bf16.mxu1 %vm11242_vm1, %v13483_v24  ;;  %9967 = vmatprep.subr.bf16.mxu1 %v13483_v24 }
 0x570   : > { %9987 = vmatprep.mubr.msk.bf16.mxu0 %vm11242_vm1, %v13483_v24  ;;  %9997 = vmatprep.subr.bf16.mxu0 %v13483_v24 }
 0x575   : > { %9964 = vmatmul.mubr.msk.bf16.vlgmr.msra.gmra.mrb[28].mxu1 %vm282_vm0, %v11370_v20  ;;  %9988 = vmatmul.mubr.msk.bf16.vlgmr.msra.gmra.mrb[28].mxu0 %vm282_vm0, %v11412_v26 }
 0x576   : > { %9968 = vmatpush3.bf16.msra.mxu1 %v1235_v3  ;;  %9998 = vmatpush3.bf16.msra.mxu0 %v1235_v3 }
 0x577   : > { %9969 = vmatprep.mubr.msk.bf16.mxu1 %vm11242_vm1, %v13483_v24  ;;  %9979 = vmatprep.subr.bf16.mxu1 %v13483_v24 }
 0x578   : > { %9999 = vmatprep.mubr.msk.bf16.mxu0 %vm11242_vm1, %v13483_v24  ;;  %9386 = vmatprep.subr.bf16.mxu0 %v11695_v9 }
 0x57d   : > { %9970 = vmatmul.mubr.msk.bf16.vlgmr.msra.gmra.mrb[32].mxu1 %vm282_vm0, %v11387_v21  ;;  %10000 = vmatmul.mubr.msk.bf16.vlgmr.msra.gmra.mrb[32].mxu0 %vm282_vm0, %v11431_v28 }
 0x57e   : > { %9980 = vmatpush3.bf16.msra.mxu1 %v1235_v3  ;;  %9981 = vmatprep.mubr.msk.bf16.mxu1 %vm11242_vm1, %v13483_v24 }
 0x57f   : > { %9991 = vmatprep.subr.bf16.mxu1 %v13483_v24  ;;  %9387 = vmatpush3.bf16.msra.mxu0 %v11702_v18 }
 0x580   : > { %9388 = vmatprep.subr.bf16.mxu0 %v11707_v17 }
 0x583   : > { %9389 = vmatpush3.bf16.msra.mxu0 %v11714_v41 }
 0x584   : > { %9390 = vmatprep.subr.bf16.mxu0 %v11721_v57 }
 0x585   : > { %9982 = vmatmul.mubr.msk.bf16.vlgmr.msra.gmra.mrb[36].mxu1 %vm282_vm0, %v11407_v25 }
 0x586   : > { %9992 = vmatpush3.bf16.msra.mxu1 %v1235_v3  ;;  %9993 = vmatprep.mubr.msk.bf16.mxu1 %vm11242_vm1, %v13483_v24 }
 0x587   : > { %10003 = vmatprep.subr.bf16.mxu1 %v13483_v24 }
 0x58d   : > { %9994 = vmatmul.mubr.msk.bf16.vlgmr.msra.gmra.mrb[40].mxu1 %vm282_vm0, %v11426_v27 }
 0x58e   : > { %10004 = vmatpush3.bf16.msra.mxu1 %v1235_v3  ;;  %10005 = vmatprep.mubr.msk.bf16.mxu1 %vm11242_vm1, %v13483_v24  ;;  %v11726_v3 = vld [vmem:[%s13477_s2 + $0xa8] sm:$0xff]  }
 0x58f   : > { %10009 = vmatprep.subr.bf16.mxu1 %v13483_v24  ;;  %9391 = vmatpush3.bf16.msra.mxu0 %v11726_v3 }
 0x595   : > { %10006 = vmatmul.mubr.msk.bf16.vlgmr.msra.gmra.mrb[44].mxu1 %vm282_vm0, %v11443_v29 }
 0x596   : > { %10013 = vmatprep.mubr.msk.bf16.mxu1 %vm11242_vm1, %v13483_v24  ;;  %10010 = vmatpush3.bf16.msra.mxu1 %v11679_v1 }
 0x597   : > { %10011 = vmatprep.subr.bf16.mxu1 %v13483_v24 }
 0x59a   : > { %10012 = vmatpush3.bf16.msra.mxu1 %v11686_v60 }
 0x59b   : > { %10017 = vmatprep.subr.bf16.mxu1 %v13483_v24 }
 0x59d   : > { %s10624_s15 = spop %10623 }
 0x640   : > { %v11690_v4 = vpop.f32.mrb[24].mxu1  ;;  %v1393_v0 = vpop.f32.mrb[24].mxu0 }
 0x641   : > { %v9959_v8 = vpop.f32.mrb[25].mxu1  ;;  %v9977_v59 = vpop.f32.mrb[25].mxu0 }
 0x642   : > { %v11697_v11 = vpop.f32.mrb[26].mxu1  ;;  %v1396_v42 = vpop.f32.mrb[26].mxu0  ;;  %v11733_v59 = vld [vmem:[%s13477_s2 + $0xf0] sm:$0xff]  }
 0x643   : > { %v9960_v37 = vpop.f32.mrb[27].mxu1  ;;  %v10694_v12 = vpack.i.bf16 %v1396_v42, %v1393_v0  ;;  %v9978_v40 = vpop.f32.mrb[27].mxu0  ;;  %13503 = vst [vmem:[#allocation6_spill] sm:$0xff] %v11733_v59  ;;  %v11738_v42 = vld [vmem:[%s13477_s2 + $0xb0] sm:$0xff]   ;;  %9392 = vmatprep.subr.bf16.mxu0 %v11733_v59 }
 0x644   : > { %13504 = vst [vmem:[#allocation7_spill] sm:$0xff] %v11738_v42  ;;  %v11745_v37 = vld [vmem:[%s13477_s2 + $0xf8] sm:$0xff]   ;;  %9393 = vmatpush3.bf16.msra.mxu0 %v11738_v42 }
 0x645   : > { %13505 = vst [vmem:[#allocation8_spill] sm:$0xff] %v11745_v37  ;;  %9394 = vmatprep.subr.bf16.mxu0 %v11745_v37 }
 0x648   : > { %v1311_v45 = vpop.f32.mrb[28].mxu1  ;;  %v1475_v50 = vpop.f32.mrb[28].mxu0 }
 0x649   : > { %v9965_v51 = vpop.f32.mrb[29].mxu1  ;;  %v9989_v56 = vpop.f32.mrb[29].mxu0 }
 0x64a   : > { %v1314_v43 = vpop.f32.mrb[30].mxu1  ;;  %v1478_v7 = vpop.f32.mrb[30].mxu0 }
 0x64b   : > { %v10674_v46 = vpack.i.bf16 %v1314_v43, %v1311_v45  ;;  %v10669_v61 = vpack.i.bf16 %v1478_v7, %v1475_v50  ;;  %v9966_v0 = vpop.f32.mrb[31].mxu1  ;;  %v9990_v8 = vpop.f32.mrb[31].mxu0  ;;  %v11752_v50 = vld [vmem:[%s13477_s2 + $0xb8] sm:$0xff]   ;;  %v11759_v43 = vld [vmem:[%s13477_s2 + $0x100] sm:$0xff]  }
 0x64c   : > { %13506 = vst [vmem:[#allocation9_spill] sm:$0xff] %v11752_v50  ;;  %13507 = vst [vmem:[#allocation10_spill] sm:$0xff] %v11759_v43  ;;  %9395 = vmatpush3.bf16.msra.mxu0 %v11752_v50 }
 0x64d   : > { %10670 = vrot.lane.b32.xlu1 %v10669_v61, %s11243_s13  ;;  %10675 = vrot.lane.b32.xlu0 %v10674_v46, %s11243_s13 }
 0x64e   : > { %9396 = vmatprep.subr.bf16.mxu0 %v11759_v43 }
 0x650   : > { %v1352_v40 = vpop.f32.mrb[32].mxu1  ;;  %v1557_v45 = vpop.f32.mrb[32].mxu0 }
 0x651   : > { %v9971_v51 = vpop.f32.mrb[33].mxu1  ;;  %10695 = vrot.lane.b32.xlu0 %v10694_v12, %s11245_s17  ;;  %v10001_v56 = vpop.f32.mrb[33].mxu0  ;;  %v11765_v12 = vld [vmem:[%s13477_s2 + $0xc0] sm:$0xff]  }
 0x652   : > { %v1355_v7 = vpop.f32.mrb[34].mxu1  ;;  %v1560_v46 = vpop.f32.mrb[34].mxu0  ;;  %13508 = vst [vmem:[#allocation11_spill] sm:$0xff] %v11765_v12  ;;  %v1939_v51 = vstv %s10624_s15  ;;  %9397 = vmatpush3.bf16.msra.mxu0 %v11765_v12 }
 0x653   : > { %v10679_v61 = vpack.i.bf16 %v1355_v7, %v1352_v40  ;;  %v9972_v0 = vpop.f32.mrb[35].mxu1  ;;  %v10689_v8 = vpack.i.bf16 %v1560_v46, %v1557_v45  ;;  %v10002_v24 = vpop.f32.mrb[35].mxu0  ;;  %v1940_v45 = vmul.f32 0.00390625, %v1939_v51  ;;  %v11780_v46 = vld [vmem:[%s13477_s2 + $0xc8] sm:$0xff]   ;;  %v11792_v51 = vld [vmem:[%s13477_s2 + $0xd0] sm:$0xff]  }
 0x654   : > { %v11775_v24 = vld [vmem:[%s13477_s2 + $0x108] sm:$0xff]   ;;  %13510 = vst [vmem:[#allocation13_spill] sm:$0xff] %v11780_v46  ;;  %v11787_v0 = vld [vmem:[%s13477_s2 + $0x110] sm:$0xff]   ;;  %13512 = vst [vmem:[#allocation15_spill] sm:$0xff] %v11792_v51 }
 0x655   : > { %10680 = vrot.lane.b32.xlu1 %v10679_v61, %s11244_s16  ;;  %13509 = vst [vmem:[#allocation12_spill] sm:$0xff] %v11775_v24  ;;  %9398 = vmatprep.subr.bf16.mxu0 %v11775_v24  ;;  %13511 = vst [vmem:[#allocation14_spill] sm:$0xff] %v11787_v0 }
 0x656   : > { %9399 = vmatpush3.bf16.msra.mxu0 %v11780_v46 }
 0x657   : > { %9400 = vmatprep.subr.bf16.mxu0 %v11787_v0 }
 0x658   : > { %v11769_v56 = vpop.f32.mrb[36].mxu1 }
 0x659   : > { %v9983_v40 = vpop.f32.mrb[37].mxu1 }
 0x65a   : > { %v1437_v7 = vpop.f32.mrb[38].mxu1  ;;  %v1941_v40 = vadd.f32 1e-05, %v1940_v45  ;;  %9401 = vmatpush3.bf16.msra.mxu0 %v11792_v51 }
 0x65b   : > { %v9984_v61 = vpop.f32.mrb[39].mxu1  ;;  %10035 = vmatprep.subr.bf16.mxu0 %v13513_v44 }
 0x65c   : > { %11203 = vrsqrt.f32 %v1941_v40 }
 0x660   : > { %v1516_v47 = vpop.f32.mrb[40].mxu1 }
 0x661   : > { %v9995_v61 = vpop.f32.mrb[41].mxu1 }
 0x662   : > { %v1519_v60 = vpop.f32.mrb[42].mxu1 }
 0x663   : > { %v10684_v46 = vpack.i.bf16 %v1519_v60, %v1516_v47  ;;  %v9996_v1 = vpop.f32.mrb[43].mxu1 }
 0x665   : > { %10685 = vrot.lane.b32.xlu1 %v10684_v46, %s11244_s16 }
 0x666   : > { %v11204_v0 = vpop.eup %11203 }
 0x667   : > { %v1943_v47 = vmul.f32 %v11204_v0, %v11599_v53  ;;  %v1944_v1 = vmul.f32 %v11204_v0, %v11601_v54 }
 0x668   : > { %v1598_v24 = vpop.f32.mrb[44].mxu1 }
 0x669   : > { %10690 = vrot.lane.b32.xlu1 %v10689_v8, %s11245_s17  ;;  %v10007_v12 = vpop.f32.mrb[45].mxu1  ;;  %v1945_v60 = vpack.c.bf16 %v1944_v1, %v1943_v47 }
 0x66a   : > { %v1601_v43 = vpop.f32.mrb[46].mxu1 }
 0x66b   : > { %v1667_v45 = vpack.c.bf16 %v1601_v43, %v1598_v24  ;;  %v10008_v50 = vpop.f32.mrb[47].mxu1 }
 0x66d   : > { %10014 = vmatmul.mubr.msk.bf16.vlgmr.msra.gmra.mrb[48].mxu1 %vm382_vm2, %v1667_v45 }
 0x66e   : > { %10018 = vmatpush3.bf16.msra.mxu1 %v11316_v23  ;;  %10019 = vmatprep.mubr.msk.bf16.mxu1 %vm11242_vm1, %v13513_v44 }
 0x66f   : > { %10023 = vmatprep.subr.bf16.mxu1 %v13513_v44 }
 0x675   : > { %10020 = vmatmul.mubr.msk.bf16.vlgmr.msra.gmra.mrb[52].mxu1 %vm282_vm0, %v1945_v60 }
 0x676   : > { %10025 = vmatprep.mubr.msk.bf16.mxu1 %vm11242_vm1, %v13513_v44 }
 0x6bf   : > { %v10676_v50 = vpop.permute.xlu0 %10675  ;;  %v10671_v43 = vpop.permute.xlu1 %10670 }
 0x6c0   : > { %v10678_v12 = vunpack.i.h.bf16 %v10676_v50  ;;  %v10677_v23 = vunpack.i.l.bf16 %v10676_v50  ;;  %v10673_v37 = vunpack.i.h.bf16 %v10671_v43 }
 0x6c2   : > { %v1654_v54 = vsel %vm382_vm2, %v11697_v11, %v10678_v12  ;;  %v1653_v0 = vsel %vm382_vm2, %v11690_v4, %v10677_v23  ;;  %v1660_v4 = vsel %vm382_vm2, %v1437_v7, %v10673_v37 }
 0x6c3   : > { %v10696_v8 = vpop.permute.xlu0 %10695 }
 0x6c4   : > { %v10698_v46 = vunpack.i.h.bf16 %v10696_v8  ;;  %v10697_v40 = vunpack.i.l.bf16 %v10696_v8  ;;  %v10672_v8 = vunpack.i.l.bf16 %v10671_v43 }
 0x6c6   : > { %v1659_v11 = vsel %vm382_vm2, %v11769_v56, %v10672_v8 }
 0x6c7   : > { %v10681_v24 = vpop.permute.xlu1 %10680 }
 0x6c8   : > { %v10683_v61 = vunpack.i.h.bf16 %v10681_v24  ;;  %v10682_v53 = vunpack.i.l.bf16 %v10681_v24 }
 0x6ca   : > { %v1656_v45 = vsel %vm942_vm3, %v1654_v54, %v10683_v61  ;;  %v1655_v47 = vsel %vm942_vm3, %v1653_v0, %v10682_v53 }
 0x6cb   : > { %v1657_v1 = vsel %vm945_vm4, %v1655_v47, %v10697_v40  ;;  %v1658_v60 = vsel %vm945_vm4, %v1656_v45, %v10698_v46 }
 0x6cc   : > { %v1665_v50 = vpack.c.bf16 %v1658_v60, %v1657_v1 }
 0x6d7   : > { %v10686_v51 = vpop.permute.xlu1 %10685 }
 0x6d8   : > { %v10688_v42 = vunpack.i.h.bf16 %v10686_v51  ;;  %v10687_v24 = vunpack.i.l.bf16 %v10686_v51 }
 0x6da   : > { %v1662_v61 = vsel %vm942_vm3, %v1660_v4, %v10688_v42  ;;  %v1661_v40 = vsel %vm942_vm3, %v1659_v11, %v10687_v24 }
 0x6db   : > { %v10691_v59 = vpop.permute.xlu1 %10690 }
 0x6dc   : > { %v10693_v12 = vunpack.i.h.bf16 %v10691_v59  ;;  %v10692_v23 = vunpack.i.l.bf16 %v10691_v59 }
 0x6de   : > { %v1663_v46 = vsel %vm945_vm4, %v1661_v40, %v10692_v23  ;;  %v1664_v53 = vsel %vm945_vm4, %v1662_v61, %v10693_v12 }
 0x6df   : > { %v1666_v54 = vpack.c.bf16 %v1664_v53, %v1663_v46 }
 0x6e1   : > { %1852 = vmatprep.mubr.bf16.mxu0 %v1666_v54 }
 0x6e2   : > { %1853 = vmatmul.mubr.bf16.vlgmr.msra.gmra.mrb[36].mxu0 %v1665_v50 }
 0x6e3   : > { %10037 = vmatprep.mubr.msk.bf16.mxu0 %vm11242_vm1, %v13513_v44 }
 0x740   : > { %v11826_v51 = vpop.f32.mrb[48].mxu1 }
 0x741   : > { %v10015_v56 = vpop.f32.mrb[49].mxu1 }
 0x742   : > { %v11828_v37 = vpop.f32.mrb[50].mxu1 }
 0x743   : > { %v10016_v59 = vpop.f32.mrb[51].mxu1 }
 0x748   : > { %v1983_v7 = vpop.f32.mrb[52].mxu1 }
 0x749   : > { %v1984_v42 = vadd.f32 %v11332_v39, %v1983_v7  ;;  %v10021_v43 = vpop.f32.mrb[53].mxu1 }
 0x74a   : > { %v1986_v0 = vpop.f32.mrb[54].mxu1 }
 0x74b   : > { %v11831_v45 = vmax.f32 %v1984_v42, 0.0  ;;  %v1987_v47 = vadd.f32 %v11332_v39, %v1986_v0  ;;  %v10022_v1 = vpop.f32.mrb[55].mxu1 }
 0x74d   : > { %v11834_v60 = vmax.f32 %v1987_v47, 0.0  ;;  %v1992_v50 = vsel %vm382_vm2, %v11831_v45, 0.0 }
 0x74f   : > { %v1993_v8 = vsel %vm382_vm2, %v11834_v60, 0.0 }
 0x750   : > { %v1994_v24 = vadd.f32 %v1993_v8, %v1992_v50 }
 0x752   : > { %v1995_v11 = vrot.slane %v1994_v24, 4 }
 0x754   : > { %v1996_v4 = vadd.f32 %v1995_v11, %v1994_v24 }
 0x756   : > { %v1997_v12 = vrot.slane %v1996_v4, 2 }
 0x758   : > { %v1998_v23 = vadd.f32 %v1997_v12, %v1996_v4 }
 0x75a   : > { %v1999_v61 = vrot.slane %v1998_v23, 1 }
 0x75c   : > { %v2000_v40 = vadd.f32 %v1999_v61, %v1998_v23 }
 0x75e   : > { %v2001_v46 = vmul.f32 0.0625, %v2000_v40 }
 0x760   : > { %v2002_v53 = vsub.f32 %v11831_v45, %v2001_v46  ;;  %v2003_v39 = vsub.f32 %v11834_v60, %v2001_v46 }
 0x762   : > { %v2004_v54 = vmul.f32 %v2002_v53, %v2002_v53  ;;  %v2005_v56 = vmul.f32 %v2003_v39, %v2003_v39 }
 0x764   : > { %v2006_v59 = vsel %vm382_vm2, %v2004_v54, 0.0  ;;  %v2007_v7 = vsel %vm382_vm2, %v2005_v56, 0.0 }
 0x765   : > { %v2008_v42 = vadd.f32 %v2007_v7, %v2006_v59 }
 0x767   : > { %v2009_v43 = vrot.slane %v2008_v42, 4 }
 0x769   : > { %v2010_v0 = vadd.f32 %v2009_v43, %v2008_v42 }
 0x76b   : > { %v2011_v47 = vrot.slane %v2010_v0, 2 }
 0x76d   : > { %v2012_v1 = vadd.f32 %v2011_v47, %v2010_v0 }
 0x76f   : > { %v2013_v50 = vrot.slane %v2012_v1, 1 }
 0x771   : > { %v2014_v8 = vadd.f32 %v2013_v50, %v2012_v1 }
 0x773   : > { %v2015_v24 = vmul.f32 0.0625, %v2014_v8 }
 0x775   : > { %v2016_v11 = vadd.f32 1e-05, %v2015_v24 }
 0x777   : > { %11205 = vrsqrt.f32 %v2016_v11 }
 0x781   : > { %v11206_v4 = vpop.eup %11205 }
 0x782   : > { %v2018_v12 = vmul.f32 %v11206_v4, %v2002_v53  ;;  %v2019_v23 = vmul.f32 %v11206_v4, %v2003_v39 }
 0x784   : > { %v2020_v61 = vmul.f32 %v11351_v10, %v2018_v12  ;;  %v2021_v40 = vmul.f32 %v11351_v10, %v2019_v23 }
 0x786   : > { %v2022_v46 = vadd.f32 %v11356_v13, %v2020_v61  ;;  %v2023_v54 = vadd.f32 %v11356_v13, %v2021_v40  ;;  %v11902_v13 = vld [vmem:[%s13480_s5 + $0x2] ss:$0 sm:$0xff] }
 0x788   : > { %v2024_v56 = vpack.c.bf16 %v2023_v54, %v2022_v46 }
 0x78a   : > { %10024 = vmatpush3.bf16.msra.mxu1 %v2024_v56  ;;  %10036 = vmatpush3.bf16.msra.mxu0 %v2024_v56 }
 0x78b   : > { %10029 = vmatprep.subr.bf16.mxu1 %v13513_v44  ;;  %10047 = vmatprep.subr.bf16.mxu0 %v13513_v44 }
 0x78d   : > { %10026 = vmatmul.mubr.msk.bf16.vlgmr.msra.gmra.mrb[56].mxu1 %vm282_vm0, %v11365_v19  ;;  %10038 = vmatmul.mubr.msk.bf16.vlgmr.msra.gmra.mrb[40].mxu0 %vm282_vm0, %v11387_v21 }
 0x78e   : > { %10030 = vmatpush3.bf16.msra.mxu1 %v2024_v56  ;;  %10048 = vmatpush3.bf16.msra.mxu0 %v2024_v56 }
 0x78f   : > { %10031 = vmatprep.mubr.msk.bf16.mxu1 %vm11242_vm1, %v13513_v44  ;;  %10041 = vmatprep.subr.bf16.mxu1 %v13513_v44 }
 0x790   : > { %10049 = vmatprep.mubr.msk.bf16.mxu0 %vm11242_vm1, %v13513_v44  ;;  %10059 = vmatprep.subr.bf16.mxu0 %v13513_v44 }
 0x795   : > { %10032 = vmatmul.mubr.msk.bf16.vlgmr.msra.gmra.mrb[60].mxu1 %vm282_vm0, %v11370_v20  ;;  %10050 = vmatmul.mubr.msk.bf16.vlgmr.msra.gmra.mrb[44].mxu0 %vm282_vm0, %v11407_v25 }
 0x796   : > { %10042 = vmatpush3.bf16.msra.mxu1 %v2024_v56  ;;  %10060 = vmatpush3.bf16.msra.mxu0 %v2024_v56 }
 0x797   : > { %10043 = vmatprep.mubr.msk.bf16.mxu1 %vm11242_vm1, %v13513_v44  ;;  %10053 = vmatprep.subr.bf16.mxu1 %v13513_v44 }
 0x798   : > { %10061 = vmatprep.mubr.msk.bf16.mxu0 %vm11242_vm1, %v13513_v44  ;;  %10071 = vmatprep.subr.bf16.mxu0 %v13513_v44 }
 0x79d   : > { %10044 = vmatmul.mubr.msk.bf16.vlgmr.msra.gmra.mrb[64].mxu1 %vm282_vm0, %v11392_v22  ;;  %10062 = vmatmul.mubr.msk.bf16.vlgmr.msra.gmra.mrb[48].mxu0 %vm282_vm0, %v11426_v27 }
 0x79e   : > { %10054 = vmatpush3.bf16.msra.mxu1 %v2024_v56  ;;  %10072 = vmatpush3.bf16.msra.mxu0 %v2024_v56 }
 0x79f   : > { %10055 = vmatprep.mubr.msk.bf16.mxu1 %vm11242_vm1, %v13513_v44  ;;  %10065 = vmatprep.subr.bf16.mxu1 %v13513_v44 }
 0x7a0   : > { %10073 = vmatprep.mubr.msk.bf16.mxu0 %vm11242_vm1, %v13513_v44  ;;  %10077 = vmatprep.subr.bf16.mxu0 %v13513_v44 }
 0x7a5   : > { %10056 = vmatmul.mubr.msk.bf16.vlgmr.msra.gmra.mrb[68].mxu1 %vm282_vm0, %v11412_v26  ;;  %10074 = vmatmul.mubr.msk.bf16.vlgmr.msra.gmra.mrb[52].mxu0 %vm282_vm0, %v11443_v29 }
 0x7a6   : > { %10066 = vmatpush3.bf16.msra.mxu1 %v2024_v56  ;;  %10067 = vmatprep.mubr.msk.bf16.mxu1 %vm11242_vm1, %v13513_v44 }
 0x7a7   : > { %9431 = vmatprep.subr.bf16.mxu1 %v11452_v30  ;;  %10078 = vmatpush3.bf16.msra.mxu0 %v11541_v6 }
 0x7a8   : > { %10079 = vmatprep.subr.bf16.mxu0 %v13513_v44  ;;  %10081 = vmatprep.mubr.msk.bf16.mxu0 %vm11242_vm1, %v13513_v44 }
 0x7ab   : > { %10080 = vmatpush3.bf16.msra.mxu0 %v11563_v16 }
 0x7ac   : > { %10085 = vmatprep.subr.bf16.mxu0 %v13513_v44 }
 0x7ad   : > { %10068 = vmatmul.mubr.msk.bf16.vlgmr.msra.gmra.mrb[72].mxu1 %vm282_vm0, %v11431_v28 }
 0x7ae   : > { %9432 = vmatpush3.bf16.msra.mxu1 %v11457_v31 }
 0x7af   : > { %9433 = vmatprep.subr.bf16.mxu1 %v11463_v32 }
 0x7b2   : > { %9434 = vmatpush3.bf16.msra.mxu1 %v11469_v33 }
 0x7b3   : > { %9435 = vmatprep.subr.bf16.mxu1 %v11475_v34 }
 0x7b5   : > { %v9402_v10 = vpop.f32.mrb[36].mxu0 }
 0x7b6   : > { %v9403_v19 = vpop.f32.mrb[37].mxu0  ;;  %9436 = vmatpush3.bf16.msra.mxu1 %v11481_v35 }
 0x7b7   : > { %v9404_v20 = vadd.f32 %v9403_v19, %v9402_v10  ;;  %v9405_v21 = vpop.f32.mrb[38].mxu0  ;;  %9437 = vmatprep.subr.bf16.mxu1 %v11489_v38 }
 0x7b8   : > { %v9406_v22 = vpop.f32.mrb[39].mxu0 }
 0x7b9   : > { %v1855_v25 = vadd.f32 %v9404_v20, %v11902_v13  ;;  %v9407_v26 = vadd.f32 %v9406_v22, %v9405_v21 }
 0x7ba   : > { %9438 = vmatpush3.bf16.msra.mxu1 %v11497_v49 }
 0x7bb   : > { %v11909_v27 = vadd.f32 %v11826_v51, %v1855_v25  ;;  %v1858_v28 = vadd.f32 %v9407_v26, %v11902_v13  ;;  %9439 = vmatprep.subr.bf16.mxu1 %v11505_v52 }
 0x7bd   : > { %v11914_v29 = vadd.f32 %v11828_v37, %v1858_v28 }
 0x7be   : > { %9440 = vmatpush3.bf16.msra.mxu1 %v11510_v55 }
 0x7bf   : > { %9441 = vmatprep.subr.bf16.mxu1 %v11517_v62 }
 0x7c2   : > { %9442 = vmatpush3.bf16.msra.mxu1 %v11522_v63 }
 0x7c3   : > { %9443 = vmatprep.subr.bf16.mxu1 %v11531_v2 }
 0x7c6   : > { %9444 = vmatpush3.bf16.msra.mxu1 %v11536_v5 }
 0x7c7   : > { %9445 = vmatprep.subr.bf16.mxu1 %v11551_v14 }
 0x7ca   : > { %9446 = vmatpush3.bf16.msra.mxu1 %v11558_v15 }
 0x7cb   : > { %10103 = vmatprep.subr.bf16.mxu1 %v13513_v44 }
 0x860   : > { %v2059_v30 = vpop.f32.mrb[56].mxu1  ;;  %v2141_v31 = vpop.f32.mrb[40].mxu0 }
 0x861   : > { %v10027_v32 = vpop.f32.mrb[57].mxu1  ;;  %v10039_v33 = vpop.f32.mrb[41].mxu0 }
 0x862   : > { %v2062_v34 = vpop.f32.mrb[58].mxu1  ;;  %v2144_v35 = vpop.f32.mrb[42].mxu0 }
 0x863   : > { %v10028_v38 = vpop.f32.mrb[59].mxu1  ;;  %v10699_v49 = vpack.i.bf16 %v2144_v35, %v2141_v31  ;;  %v10040_v52 = vpop.f32.mrb[43].mxu0 }
 0x865   : > { %10700 = vrot.lane.b32.xlu0 %v10699_v49, %s11244_s16 }
 0x868   : > { %v2100_v55 = vpop.f32.mrb[60].mxu1  ;;  %v2223_v62 = vpop.f32.mrb[44].mxu0 }
 0x869   : > { %v10033_v63 = vpop.f32.mrb[61].mxu1  ;;  %v10051_v2 = vpop.f32.mrb[45].mxu0 }
 0x86a   : > { %v2103_v5 = vpop.f32.mrb[62].mxu1  ;;  %v2226_v6 = vpop.f32.mrb[46].mxu0 }
 0x86b   : > { %v10704_v14 = vpack.i.bf16 %v2103_v5, %v2100_v55  ;;  %v10034_v15 = vpop.f32.mrb[63].mxu1  ;;  %v10052_v16 = vpop.f32.mrb[47].mxu0 }
 0x86d   : > { %10705 = vrot.lane.b32.xlu0 %v10704_v14, %s11243_s13 }
 0x870   : > { %v2182_v51 = vpop.f32.mrb[64].mxu1  ;;  %v2305_v37 = vpop.f32.mrb[48].mxu0 }
 0x871   : > { %v10045_v53 = vpop.f32.mrb[65].mxu1  ;;  %v10063_v39 = vpop.f32.mrb[49].mxu0 }
 0x872   : > { %v2185_v59 = vpop.f32.mrb[66].mxu1  ;;  %v2308_v7 = vpop.f32.mrb[50].mxu0 }
 0x873   : > { %v10724_v42 = vpack.i.bf16 %v2185_v59, %v2182_v51  ;;  %v10046_v43 = vpop.f32.mrb[67].mxu1  ;;  %v10709_v0 = vpack.i.bf16 %v2308_v7, %v2305_v37  ;;  %v10064_v47 = vpop.f32.mrb[51].mxu0 }
 0x875   : > { %10725 = vrot.lane.b32.xlu0 %v10724_v42, %s11245_s17  ;;  %10710 = vrot.lane.b32.xlu1 %v10709_v0, %s11244_s16 }
 0x878   : > { %v2264_v1 = vpop.f32.mrb[68].mxu1  ;;  %v2387_v50 = vpop.f32.mrb[52].mxu0 }
 0x879   : > { %v10057_v8 = vpop.f32.mrb[69].mxu1  ;;  %v10075_v24 = vpop.f32.mrb[53].mxu0 }
 0x87a   : > { %v2267_v11 = vpop.f32.mrb[70].mxu1  ;;  %v2390_v4 = vpop.f32.mrb[54].mxu0 }
 0x87b   : > { %v10714_v12 = vpack.i.bf16 %v2267_v11, %v2264_v1  ;;  %v10058_v23 = vpop.f32.mrb[71].mxu1  ;;  %v2456_v61 = vpack.c.bf16 %v2390_v4, %v2387_v50  ;;  %v10076_v40 = vpop.f32.mrb[55].mxu0 }
 0x87d   : > { %10715 = vrot.lane.b32.xlu1 %v10714_v12, %s11243_s13  ;;  %10082 = vmatmul.mubr.msk.bf16.vlgmr.msra.gmra.mrb[56].mxu0 %vm382_vm2, %v2456_v61 }
 0x87e   : > { %10087 = vmatprep.mubr.msk.bf16.mxu0 %vm11242_vm1, %v13513_v44 }
 0x880   : > { %v2346_v46 = vpop.f32.mrb[72].mxu1 }
 0x881   : > { %v10069_v54 = vpop.f32.mrb[73].mxu1 }
 0x882   : > { %v2349_v56 = vpop.f32.mrb[74].mxu1 }
 0x883   : > { %v10719_v10 = vpack.i.bf16 %v2349_v56, %v2346_v46  ;;  %v10070_v19 = vpop.f32.mrb[75].mxu1 }
 0x885   : > { %10720 = vrot.lane.b32.xlu1 %v10719_v10, %s11245_s17 }
 0x8d7   : > { %v10701_v20 = vpop.permute.xlu0 %10700 }
 0x8d8   : > { %v10703_v31 = vunpack.i.h.bf16 %v10701_v20  ;;  %v10702_v32 = vunpack.i.l.bf16 %v10701_v20 }
 0x8df   : > { %v10706_v21 = vpop.permute.xlu0 %10705 }
 0x8e0   : > { %v10708_v22 = vunpack.i.h.bf16 %v10706_v21  ;;  %v10707_v25 = vunpack.i.l.bf16 %v10706_v21 }
 0x8e2   : > { %v2443_v26 = vsel %vm382_vm2, %v2062_v34, %v10708_v22  ;;  %v2442_v28 = vsel %vm382_vm2, %v2059_v30, %v10707_v25 }
 0x8e3   : > { %v2444_v49 = vsel %vm942_vm3, %v2442_v28, %v10702_v32  ;;  %v2445_v52 = vsel %vm942_vm3, %v2443_v26, %v10703_v31 }
 0x8e7   : > { %v10726_v33 = vpop.permute.xlu0 %10725  ;;  %v10711_v55 = vpop.permute.xlu1 %10710 }
 0x8e8   : > { %v10728_v35 = vunpack.i.h.bf16 %v10726_v33  ;;  %v10727_v38 = vunpack.i.l.bf16 %v10726_v33  ;;  %v10713_v51 = vunpack.i.h.bf16 %v10711_v55  ;;  %v10712_v37 = vunpack.i.l.bf16 %v10711_v55 }
 0x8ea   : > { %v2447_v63 = vsel %vm945_vm4, %v2445_v52, %v10728_v35  ;;  %v2446_v2 = vsel %vm945_vm4, %v2444_v49, %v10727_v38 }
 0x8eb   : > { %v2454_v5 = vpack.c.bf16 %v2447_v63, %v2446_v2 }
 0x8ef   : > { %v10716_v14 = vpop.permute.xlu1 %10715 }
 0x8f0   : > { %v10718_v15 = vunpack.i.h.bf16 %v10716_v14  ;;  %v10717_v34 = vunpack.i.l.bf16 %v10716_v14 }
 0x8f2   : > { %v2449_v30 = vsel %vm382_vm2, %v2226_v6, %v10718_v15  ;;  %v2448_v16 = vsel %vm382_vm2, %v2223_v62, %v10717_v34 }
 0x8f3   : > { %v2450_v7 = vsel %vm942_vm3, %v2448_v16, %v10712_v37  ;;  %v2451_v42 = vsel %vm942_vm3, %v2449_v30, %v10713_v51 }
 0x8f7   : > { %v10721_v53 = vpop.permute.xlu1 %10720 }
 0x8f8   : > { %v10723_v39 = vunpack.i.h.bf16 %v10721_v53  ;;  %v10722_v59 = vunpack.i.l.bf16 %v10721_v53 }
 0x8fa   : > { %v2452_v43 = vsel %vm945_vm4, %v2450_v7, %v10722_v59  ;;  %v2453_v0 = vsel %vm945_vm4, %v2451_v42, %v10723_v39 }
 0x8fb   : > { %v2455_v47 = vpack.c.bf16 %v2453_v0, %v2452_v43 }
 0x8fd   : > { %2492 = vmatprep.mubr.bf16.mxu1 %v2455_v47  ;;  %v11962_v47 = vld [vmem:[%s13476_s1] sm:$0xff]  }
 0x8fe   : > { %2493 = vmatmul.mubr.bf16.vlgmr.msra.gmra.mrb[76].mxu1 %v2454_v5 }
 0x8ff   : > { %10105 = vmatprep.mubr.msk.bf16.mxu1 %vm11242_vm1, %v13513_v44 }
 0x950   : > { %v2535_v62 = vpop.f32.mrb[56].mxu0 }
 0x951   : > { %v10083_v6 = vpop.f32.mrb[57].mxu0 }
 0x952   : > { %v2538_v1 = vpop.f32.mrb[58].mxu0  ;;  %v12002_v6 = vld [vmem:[%s13476_s1 + $0x10] sm:$0xff]  }
 0x953   : > { %v10084_v50 = vpop.f32.mrb[59].mxu0 }
 0x954   : > { %v13517_v50 = vld [vmem:[#allocation9_spill] sm:$0xff] }
 0x9d1   : > { %v9447_v8 = vpop.f32.mrb[76].mxu1 }
 0x9d2   : > { %v9448_v24 = vpop.f32.mrb[77].mxu1 }
 0x9d3   : > { %v9449_v11 = vadd.f32 %v9448_v24, %v9447_v8  ;;  %v9450_v4 = vpop.f32.mrb[78].mxu1  ;;  %v13519_v8 = vld [vmem:[#allocation11_spill] sm:$0xff]  ;;  %v13520_v24 = vld [vmem:[#allocation12_spill] sm:$0xff] }
 0x9d4   : > { %v9451_v12 = vpop.f32.mrb[79].mxu1 }
 0x9d5   : > { %v2495_v23 = vadd.f32 %v9449_v11, %v11612_v58  ;;  %v9452_v61 = vadd.f32 %v9451_v12, %v9450_v4  ;;  %v12051_v11 = vld [vmem:[%s13476_s1 + $0x40] sm:$0xff]   ;;  %v13521_v4 = vld [vmem:[#allocation4_spill] sm:$0xff]  ;;  %v13522_v12 = vld [vmem:[#allocation13_spill] sm:$0xff] }
 0x9d7   : > { %v2536_v40 = vadd.f32 %v2535_v62, %v2495_v23  ;;  %v2498_v46 = vadd.f32 %v9452_v61, %v11612_v58  ;;  %v11989_v62 = vld [vmem:[%s13476_s1 + $0x28] sm:$0xff]   ;;  %v13523_v23 = vld [vmem:[#allocation14_spill] sm:$0xff]  ;;  %v13524_v61 = vld [vmem:[#allocation5_spill] sm:$0xff] }
 0x9d9   : > { %v2542_v54 = vmax.f32 %v2536_v40, 0.0  ;;  %v2539_v56 = vadd.f32 %v2538_v1, %v2498_v46  ;;  %v12009_v1 = vld [vmem:[%s13476_s1 + $0x38] sm:$0xff]   ;;  %v13525_v40 = vld [vmem:[#allocation15_spill] sm:$0xff] }
 0x9db   : > { %v2543_v10 = vmax.f32 %v2539_v56, 0.0  ;;  %v2544_v19 = vsel %vm382_vm2, %v2542_v54, 0.0 }
 0x9dd   : > { %v2545_v20 = vsel %vm382_vm2, %v2543_v10, 0.0 }
 0x9de   : > { %v2546_v21 = vadd.f32 %v2545_v20, %v2544_v19 }
 0x9e0   : > { %v2547_v22 = vrot.slane %v2546_v21, 4 }
 0x9e2   : > { %v2548_v25 = vadd.f32 %v2547_v22, %v2546_v21 }
 0x9e4   : > { %v2549_v26 = vrot.slane %v2548_v25, 2 }
 0x9e6   : > { %v2550_v28 = vadd.f32 %v2549_v26, %v2548_v25 }
 0x9e8   : > { %v2551_v31 = vrot.slane %v2550_v28, 1 }
 0x9ea   : > { %v2552_v32 = vadd.f32 %v2551_v31, %v2550_v28 }
 0x9ec   : > { %v2553_v33 = vmul.f32 0.0625, %v2552_v32 }
 0x9ee   : > { %v2554_v35 = vsub.f32 %v2542_v54, %v2553_v33  ;;  %v2555_v38 = vsub.f32 %v2543_v10, %v2553_v33 }
 0x9f0   : > { %v2556_v49 = vmul.f32 %v2554_v35, %v2554_v35  ;;  %v2557_v52 = vmul.f32 %v2555_v38, %v2555_v38 }
 0x9f2   : > { %v2558_v58 = vsel %vm382_vm2, %v2556_v49, 0.0  ;;  %v2559_v55 = vsel %vm382_vm2, %v2557_v52, 0.0 }
 0x9f3   : > { %v2560_v63 = vadd.f32 %v2559_v55, %v2558_v58 }
 0x9f5   : > { %v2561_v2 = vrot.slane %v2560_v63, 4 }
 0x9f7   : > { %v2562_v5 = vadd.f32 %v2561_v2, %v2560_v63 }
 0x9f9   : > { %v2563_v14 = vrot.slane %v2562_v5, 2 }
 0x9fb   : > { %v2564_v15 = vadd.f32 %v2563_v14, %v2562_v5 }
 0x9fd   : > { %v2565_v34 = vrot.slane %v2564_v15, 1 }
 0x9ff   : > { %v2566_v30 = vadd.f32 %v2565_v34, %v2564_v15 }
 0xa01   : > { %v2567_v16 = vmul.f32 0.0625, %v2566_v30 }
 0xa03   : > { %v2568_v51 = vadd.f32 1e-05, %v2567_v16 }
 0xa05   : > { %11207 = vrsqrt.f32 %v2568_v51 }
 0xa0f   : > { %v11208_v37 = vpop.eup %11207 }
 0xa10   : > { %v2570_v53 = vmul.f32 %v11208_v37, %v2554_v35  ;;  %v2571_v39 = vmul.f32 %v11208_v37, %v2555_v38 }
 0xa12   : > { %v2572_v59 = vmul.f32 %v11623_v36, %v2570_v53  ;;  %v2573_v7 = vmul.f32 %v11623_v36, %v2571_v39  ;;  %v11969_v36 = vld [vmem:[%s13476_s1 + $0x18] sm:$0xff]  }
 0xa14   : > { %v2574_v42 = vadd.f32 %v11628_v48, %v2572_v59  ;;  %v2575_v43 = vadd.f32 %v11628_v48, %v2573_v7  ;;  %v11982_v48 = vld [vmem:[%s13476_s1 + $0x8] sm:$0xff]  }
 0xa16   : > { %v2576_v0 = vpack.c.bf16 %v2575_v43, %v2574_v42 }
 0xa18   : > { %10086 = vmatpush3.bf16.msra.mxu0 %v2576_v0  ;;  %10104 = vmatpush3.bf16.msra.mxu1 %v2576_v0 }
 0xa19   : > { %10091 = vmatprep.subr.bf16.mxu0 %v13513_v44  ;;  %10115 = vmatprep.subr.bf16.mxu1 %v13513_v44 }
 0xa1b   : > { %10088 = vmatmul.mubr.msk.bf16.vlgmr.msra.gmra.mrb[60].mxu0 %vm282_vm0, %v11962_v47  ;;  %10106 = vmatmul.mubr.msk.bf16.vlgmr.msra.gmra.mrb[80].mxu1 %vm282_vm0, %v11969_v36 }
 0xa1c   : > { %10092 = vmatpush3.bf16.msra.mxu0 %v2576_v0  ;;  %10116 = vmatpush3.bf16.msra.mxu1 %v2576_v0 }
 0xa1d   : > { %10093 = vmatprep.mubr.msk.bf16.mxu0 %vm11242_vm1, %v13513_v44  ;;  %10097 = vmatprep.subr.bf16.mxu0 %v13513_v44 }
 0xa1e   : > { %10117 = vmatprep.mubr.msk.bf16.mxu1 %vm11242_vm1, %v13513_v44  ;;  %10127 = vmatprep.subr.bf16.mxu1 %v13513_v44 }
 0xa23   : > { %10094 = vmatmul.mubr.msk.bf16.vlgmr.msra.gmra.mrb[64].mxu0 %vm282_vm0, %v11982_v48  ;;  %10118 = vmatmul.mubr.msk.bf16.vlgmr.msra.gmra.mrb[84].mxu1 %vm282_vm0, %v11989_v62 }
 0xa24   : > { %10098 = vmatpush3.bf16.msra.mxu0 %v2576_v0  ;;  %10128 = vmatpush3.bf16.msra.mxu1 %v2576_v0 }
 0xa25   : > { %10099 = vmatprep.mubr.msk.bf16.mxu0 %vm11242_vm1, %v13513_v44  ;;  %10109 = vmatprep.subr.bf16.mxu0 %v13513_v44 }
 0xa26   : > { %10129 = vmatprep.mubr.msk.bf16.mxu1 %vm11242_vm1, %v13513_v44  ;;  %9474 = vmatprep.subr.bf16.mxu1 %v11695_v9  ;;  %v12023_v9 = vld [vmem:[%s13476_s1 + $0x20] sm:$0xff]  }
 0xa2b   : > { %10100 = vmatmul.mubr.msk.bf16.vlgmr.msra.gmra.mrb[68].mxu0 %vm282_vm0, %v12002_v6  ;;  %10130 = vmatmul.mubr.msk.bf16.vlgmr.msra.gmra.mrb[88].mxu1 %vm282_vm0, %v12009_v1 }
 0xa2c   : > { %10110 = vmatpush3.bf16.msra.mxu0 %v2576_v0  ;;  %10111 = vmatprep.mubr.msk.bf16.mxu0 %vm11242_vm1, %v13513_v44 }
 0xa2d   : > { %10121 = vmatprep.subr.bf16.mxu0 %v13513_v44  ;;  %9475 = vmatpush3.bf16.msra.mxu1 %v11702_v18  ;;  %v13514_v18 = vld [vmem:[#allocation6_spill] sm:$0xff] }
 0xa2e   : > { %9476 = vmatprep.subr.bf16.mxu1 %v11707_v17  ;;  %v13515_v17 = vld [vmem:[#allocation7_spill] sm:$0xff] }
 0xa31   : > { %9477 = vmatpush3.bf16.msra.mxu1 %v11714_v41  ;;  %v13516_v41 = vld [vmem:[#allocation8_spill] sm:$0xff] }
 0xa32   : > { %9478 = vmatprep.subr.bf16.mxu1 %v11721_v57  ;;  %v12037_v57 = vld [vmem:[%s13476_s1 + $0x30] sm:$0xff]  }
 0xa33   : > { %10112 = vmatmul.mubr.msk.bf16.vlgmr.msra.gmra.mrb[72].mxu0 %vm282_vm0, %v12023_v9 }
 0xa34   : > { %10122 = vmatpush3.bf16.msra.mxu0 %v2576_v0  ;;  %10123 = vmatprep.mubr.msk.bf16.mxu0 %vm11242_vm1, %v13513_v44 }
 0xa35   : > { %10133 = vmatprep.subr.bf16.mxu0 %v13513_v44  ;;  %9479 = vmatpush3.bf16.msra.mxu1 %v11726_v3  ;;  %v13518_v3 = vld [vmem:[#allocation10_spill] sm:$0xff] }
 0xa36   : > { %9480 = vmatprep.subr.bf16.mxu1 %v13514_v18 }
 0xa39   : > { %9481 = vmatpush3.bf16.msra.mxu1 %v13515_v17 }
 0xa3a   : > { %9482 = vmatprep.subr.bf16.mxu1 %v13516_v41 }
 0xa3b   : > { %10124 = vmatmul.mubr.msk.bf16.vlgmr.msra.gmra.mrb[76].mxu0 %vm282_vm0, %v12037_v57 }
 0xa3c   : > { %10134 = vmatpush3.bf16.msra.mxu0 %v2576_v0  ;;  %10135 = vmatprep.mubr.msk.bf16.mxu0 %vm11242_vm1, %v13513_v44 }
 0xa3d   : > { %9483 = vmatpush3.bf16.msra.mxu1 %v13517_v50  ;;  %10139 = vmatprep.subr.bf16.mxu0 %v13513_v44 }
 0xa3e   : > { %9484 = vmatprep.subr.bf16.mxu1 %v13518_v3 }
 0xa41   : > { %9485 = vmatpush3.bf16.msra.mxu1 %v13519_v8 }
 0xa42   : > { %9486 = vmatprep.subr.bf16.mxu1 %v13520_v24 }
 0xa43   : > { %10136 = vmatmul.mubr.msk.bf16.vlgmr.msra.gmra.mrb[80].mxu0 %vm282_vm0, %v12051_v11 }
 0xa44   : > { %10140 = vmatpush3.bf16.msra.mxu0 %v13521_v4  ;;  %10143 = vmatprep.mubr.msk.bf16.mxu0 %vm11242_vm1, %v13513_v44 }
 0xa45   : > { %9487 = vmatpush3.bf16.msra.mxu1 %v13522_v12  ;;  %10141 = vmatprep.subr.bf16.mxu0 %v13513_v44 }
 0xa46   : > { %9488 = vmatprep.subr.bf16.mxu1 %v13523_v23 }
 0xa48   : > { %10142 = vmatpush3.bf16.msra.mxu0 %v13524_v61 }
 0xa49   : > { %9489 = vmatpush3.bf16.msra.mxu1 %v13525_v40  ;;  %10147 = vmatprep.subr.bf16.mxu0 %v13513_v44 }
 0xa4a   : > { %10165 = vmatprep.subr.bf16.mxu1 %v13513_v44 }
 0xaee   : > { %v2611_v46 = vpop.f32.mrb[60].mxu0  ;;  %v2734_v54 = vpop.f32.mrb[80].mxu1 }
 0xaef   : > { %v10089_v56 = vpop.f32.mrb[61].mxu0  ;;  %v10107_v10 = vpop.f32.mrb[81].mxu1 }
 0xaf0   : > { %v2614_v19 = vpop.f32.mrb[62].mxu0  ;;  %v2737_v20 = vpop.f32.mrb[82].mxu1 }
 0xaf1   : > { %v10090_v21 = vpop.f32.mrb[63].mxu0  ;;  %v10754_v22 = vpack.i.bf16 %v2737_v20, %v2734_v54  ;;  %v10108_v25 = vpop.f32.mrb[83].mxu1 }
 0xaf6   : > { %v2652_v26 = vpop.f32.mrb[64].mxu0  ;;  %v2816_v28 = vpop.f32.mrb[84].mxu1 }
 0xaf7   : > { %v10095_v31 = vpop.f32.mrb[65].mxu0  ;;  %v10119_v32 = vpop.f32.mrb[85].mxu1 }
 0xaf8   : > { %v2655_v33 = vpop.f32.mrb[66].mxu0  ;;  %v2819_v35 = vpop.f32.mrb[86].mxu1 }
 0xaf9   : > { %v10734_v38 = vpack.i.bf16 %v2655_v33, %v2652_v26  ;;  %v10729_v49 = vpack.i.bf16 %v2819_v35, %v2816_v28  ;;  %v10096_v52 = vpop.f32.mrb[67].mxu0  ;;  %v10120_v58 = vpop.f32.mrb[87].mxu1 }
 0xafb   : > { %10730 = vrot.lane.b32.xlu1 %v10729_v49, %s11243_s13  ;;  %10735 = vrot.lane.b32.xlu0 %v10734_v38, %s11243_s13 }
 0xafe   : > { %v2693_v55 = vpop.f32.mrb[68].mxu0  ;;  %v2898_v63 = vpop.f32.mrb[88].mxu1 }
 0xaff   : > { %v10101_v2 = vpop.f32.mrb[69].mxu0  ;;  %v10131_v5 = vpop.f32.mrb[89].mxu1 }
 0xb00   : > { %v2696_v14 = vpop.f32.mrb[70].mxu0  ;;  %v2901_v15 = vpop.f32.mrb[90].mxu1 }
 0xb01   : > { %v10739_v34 = vpack.i.bf16 %v2696_v14, %v2693_v55  ;;  %v10102_v30 = vpop.f32.mrb[71].mxu0  ;;  %v10749_v16 = vpack.i.bf16 %v2901_v15, %v2898_v63  ;;  %v10132_v51 = vpop.f32.mrb[91].mxu1 }
 0xb03   : > { %10740 = vrot.lane.b32.xlu0 %v10739_v34, %s11244_s16 }
 0xb06   : > { %v2775_v37 = vpop.f32.mrb[72].mxu0 }
 0xb07   : > { %10755 = vrot.lane.b32.xlu0 %v10754_v22, %s11245_s17  ;;  %v10113_v53 = vpop.f32.mrb[73].mxu0 }
 0xb08   : > { %v2778_v39 = vpop.f32.mrb[74].mxu0 }
 0xb09   : > { %v10114_v59 = vpop.f32.mrb[75].mxu0 }
 0xb0e   : > { %v2857_v7 = vpop.f32.mrb[76].mxu0 }
 0xb0f   : > { %v10125_v42 = vpop.f32.mrb[77].mxu0 }
 0xb10   : > { %v2860_v43 = vpop.f32.mrb[78].mxu0 }
 0xb11   : > { %v10744_v0 = vpack.i.bf16 %v2860_v43, %v2857_v7  ;;  %v10126_v18 = vpop.f32.mrb[79].mxu0 }
 0xb13   : > { %10745 = vrot.lane.b32.xlu1 %v10744_v0, %s11244_s16 }
 0xb16   : > { %v2939_v17 = vpop.f32.mrb[80].mxu0 }
 0xb17   : > { %10750 = vrot.lane.b32.xlu1 %v10749_v16, %s11245_s17  ;;  %v10137_v41 = vpop.f32.mrb[81].mxu0 }
 0xb18   : > { %v2942_v50 = vpop.f32.mrb[82].mxu0 }
 0xb19   : > { %v3008_v3 = vpack.c.bf16 %v2942_v50, %v2939_v17  ;;  %v10138_v8 = vpop.f32.mrb[83].mxu0 }
 0xb1b   : > { %10144 = vmatmul.mubr.msk.bf16.vlgmr.msra.gmra.mrb[84].mxu0 %vm382_vm2, %v3008_v3 }
 0xb1c   : > { %10149 = vmatprep.mubr.msk.bf16.mxu0 %vm11242_vm1, %v13513_v44 }
 0xb6d   : > { %v10736_v24 = vpop.permute.xlu0 %10735  ;;  %v10731_v32 = vpop.permute.xlu1 %10730 }
 0xb6e   : > { %v10738_v12 = vunpack.i.h.bf16 %v10736_v24  ;;  %v10737_v23 = vunpack.i.l.bf16 %v10736_v24  ;;  %v10733_v35 = vunpack.i.h.bf16 %v10731_v32  ;;  %v10732_v38 = vunpack.i.l.bf16 %v10731_v32 }
 0xb70   : > { %v2995_v56 = vsel %vm382_vm2, %v2614_v19, %v10738_v12  ;;  %v2994_v10 = vsel %vm382_vm2, %v2611_v46, %v10737_v23  ;;  %v3000_v46 = vsel %vm382_vm2, %v2775_v37, %v10732_v38  ;;  %v3001_v58 = vsel %vm382_vm2, %v2778_v39, %v10733_v35  ;;  %v10957_v12 = vld [vmem:[%s13476_s1 + $0x90] sm:$0xff]   ;;  %v10969_v35 = vld [vmem:[%s13478_s3 + $0x40] sm:$0xff]   ;;  %v10970_v38 = vld [vmem:[%s13478_s3 + $0xc8] sm:$0xff]  }
 0xb75   : > { %v10741_v4 = vpop.permute.xlu0 %10740 }
 0xb76   : > { %v10743_v61 = vunpack.i.h.bf16 %v10741_v4  ;;  %v10742_v40 = vunpack.i.l.bf16 %v10741_v4 }
 0xb78   : > { %v2997_v22 = vsel %vm942_vm3, %v2995_v56, %v10743_v61  ;;  %v2996_v25 = vsel %vm942_vm3, %v2994_v10, %v10742_v40  ;;  %v13526_v61 = vld [vmem:[#allocation2_spill] sm:$0xff] }
 0xb79   : > { %v10756_v54 = vpop.permute.xlu0 %10755  ;;  %v1902_v40 = vadd.f32 %v11909_v27, %v13526_v61  ;;  %v10958_v27 = vld [vmem:[%s13476_s1 + $0x50] sm:$0xff]  }
 0xb7a   : > { %v10758_v20 = vunpack.i.h.bf16 %v10756_v54  ;;  %v10757_v21 = vunpack.i.l.bf16 %v10756_v54  ;;  %v13527_v54 = vld [vmem:[#allocation3_spill] sm:$0xff] }
 0xb7b   : > { %v1903_v56 = vadd.f32 %v11914_v29, %v13527_v54  ;;  %v1904_v10 = vmax.f32 %v1902_v40, 0.0  ;;  %v10959_v29 = vld [vmem:[%s13476_s1 + $0x48] sm:$0xff]   ;;  %v10987_v40 = vld [vmem:[%s13478_s3 + $0x20] sm:$0xff]  }
 0xb7c   : > { %v2998_v26 = vsel %vm945_vm4, %v2996_v25, %v10757_v21  ;;  %v2999_v28 = vsel %vm945_vm4, %v2997_v22, %v10758_v20  ;;  %v10988_v54 = vld [vmem:[%s13478_s3 + $0xa8] sm:$0xff]  }
 0xb7d   : > { %v3006_v31 = vpack.c.bf16 %v2999_v28, %v2998_v26  ;;  %v1905_v22 = vmax.f32 %v1903_v56, 0.0 }
 0xb85   : > { %v10746_v33 = vpop.permute.xlu1 %10745 }
 0xb86   : > { %v10748_v49 = vunpack.i.h.bf16 %v10746_v33  ;;  %v10747_v52 = vunpack.i.l.bf16 %v10746_v33 }
 0xb88   : > { %v3003_v2 = vsel %vm942_vm3, %v3001_v58, %v10748_v49  ;;  %v3002_v5 = vsel %vm942_vm3, %v3000_v46, %v10747_v52  ;;  %v10971_v49 = vld [vmem:[%s13478_s3] sm:$0xff]   ;;  %v10973_v52 = vld [vmem:[%s13478_s3 + $0x48] sm:$0xff]   ;;  %v10974_v58 = vld [vmem:[%s13478_s3 + $0xd0] sm:$0xff]  }
 0xb89   : > { %v10751_v19 = vpop.permute.xlu1 %10750  ;;  %v10975_v46 = vld [vmem:[%s13478_s3 + $0x8] sm:$0xff]  }
 0xb8a   : > { %v10753_v55 = vunpack.i.h.bf16 %v10751_v19  ;;  %v10752_v63 = vunpack.i.l.bf16 %v10751_v19  ;;  %v10972_v19 = vld [vmem:[%s13478_s3 + $0x88] sm:$0xff]  }
 0xb8c   : > { %v3004_v14 = vsel %vm945_vm4, %v3002_v5, %v10752_v63  ;;  %v3005_v15 = vsel %vm945_vm4, %v3003_v2, %v10753_v55  ;;  %v10977_v55 = vld [vmem:[%s13478_s3 + $0x50] sm:$0xff]   ;;  %v10978_v5 = vld [vmem:[%s13478_s3 + $0xd8] sm:$0xff]  }
 0xb8d   : > { %v3007_v34 = vpack.c.bf16 %v3005_v15, %v3004_v14  ;;  %v10976_v63 = vld [vmem:[%s13478_s3 + $0x90] sm:$0xff]   ;;  %v10981_v14 = vld [vmem:[%s13478_s3 + $0x58] sm:$0xff]  }
 0xb8e   : > { %v10979_v2 = vld [vmem:[%s13478_s3 + $0x10] sm:$0xff]   ;;  %v10980_v15 = vld [vmem:[%s13478_s3 + $0x98] sm:$0xff]  }
 0xb8f   : > { %3044 = vmatprep.mubr.bf16.mxu1 %v3007_v34  ;;  %v10983_v34 = vld [vmem:[%s13478_s3 + $0x18] sm:$0xff]  }
 0xb90   : > { %3045 = vmatmul.mubr.bf16.vlgmr.msra.gmra.mrb[92].mxu1 %v3006_v31 }
 0xb91   : > { %10167 = vmatprep.mubr.msk.bf16.mxu1 %vm11242_vm1, %v13513_v44 }
 0xbee   : > { %v3087_v30 = vpop.f32.mrb[84].mxu0 }
 0xbef   : > { %v10145_v16 = vpop.f32.mrb[85].mxu0 }
 0xbf0   : > { %v3090_v51 = vpop.f32.mrb[86].mxu0  ;;  %v10984_v16 = vld [vmem:[%s13478_s3 + $0xa0] sm:$0xff]  }
 0xbf1   : > { %v10146_v37 = vpop.f32.mrb[87].mxu0 }
 0xc63   : > { %v9490_v53 = vpop.f32.mrb[92].mxu1 }
 0xc64   : > { %v9491_v39 = vpop.f32.mrb[93].mxu1 }
 0xc65   : > { %v9492_v59 = vadd.f32 %v9491_v39, %v9490_v53  ;;  %v9493_v7 = vpop.f32.mrb[94].mxu1 }
 0xc66   : > { %v9494_v42 = vpop.f32.mrb[95].mxu1 }
 0xc67   : > { %v3047_v43 = vadd.f32 %v9492_v59, %v11902_v13  ;;  %v9495_v0 = vadd.f32 %v9494_v42, %v9493_v7 }
 0xc69   : > { %v3088_v18 = vadd.f32 %v3087_v30, %v3047_v43  ;;  %v3050_v17 = vadd.f32 %v9495_v0, %v11902_v13  ;;  %v10982_v30 = vld [vmem:[%s13478_s3 + $0xe0] sm:$0xff]  }
 0xc6b   : > { %v3094_v41 = vadd.f32 %v3088_v18, %v11831_v45  ;;  %v3091_v50 = vadd.f32 %v3090_v51, %v3050_v17 }
 0xc6d   : > { %v3095_v3 = vadd.f32 %v3091_v50, %v11834_v60  ;;  %v12092_v8 = vmax.f32 %v3094_v41, 0.0 }
 0xc6f   : > { %v12094_v24 = vmax.f32 %v3095_v3, 0.0 }
 0xc71   : > { %v3101_v4 = vpack.c.bf16 %v12094_v24, %v12092_v8 }
 0xc73   : > { %10148 = vmatpush3.bf16.msra.mxu0 %v3101_v4 }
 0xc74   : > { %10153 = vmatprep.subr.bf16.mxu0 %v13513_v44 }
 0xc76   : > { %10150 = vmatmul.mubr.msk.bf16.vlgmr.msra.gmra.mrb[88].mxu0 %vm282_vm0, %v10957_v12 }
 0xc77   : > { %10155 = vmatprep.mubr.msk.bf16.mxu0 %vm11242_vm1, %v13513_v44 }
 0xd49   : > { %v3144_v45 = vpop.f32.mrb[88].mxu0 }
 0xd4a   : > { %3153 = vrot.lane.b32.xlu1 %v3144_v45, %s11243_s13  ;;  %v10151_v60 = vpop.f32.mrb[89].mxu0 }
 0xd4b   : > { %v3147_v13 = vpop.f32.mrb[90].mxu0 }
 0xd4c   : > { %3155 = vrot.lane.b32.xlu0 %v3147_v13, %s11243_s13  ;;  %v10152_v23 = vpop.f32.mrb[91].mxu0  ;;  %v10985_v13 = vld [vmem:[%s13478_s3 + $0x60] sm:$0xff]  }
 0xd4d   : > { %v10986_v23 = vld [vmem:[%s13478_s3 + $0xe8] sm:$0xff]  }
 0xdbc   : > { %v3154_v20 = vpop.permute.xlu1 %3153 }
 0xdbd   : > { %v3159_v21 = vsel %vm382_vm2, %v1904_v10, %v3154_v20 }
 0xdbe   : > { %v3156_v25 = vpop.permute.xlu0 %3155  ;;  %v4887_v28 = vsel %vm942_vm3, %v3159_v21, 0.0 }
 0xdbf   : > { %v3160_v26 = vsel %vm382_vm2, %v1905_v22, %v3156_v25  ;;  %v10990_v22 = vld [vmem:[%s13478_s3 + $0xf0] sm:$0xff]  }
 0xdc0   : > { %v12114_v31 = vpack.c.bf16 %v3160_v26, %v3159_v21  ;;  %v4888_v32 = vsel %vm942_vm3, %v3160_v26, 0.0  ;;  %v10989_v21 = vld [vmem:[%s13478_s3 + $0x68] sm:$0xff]  }
 0xdc1   : > { %v12117_v33 = vadd.f32 %v4888_v32, %v4887_v28  ;;  %v10991_v26 = vld [vmem:[%s13478_s3 + $0x28] sm:$0xff]   ;;  %v10992_v28 = vld [vmem:[%s13478_s3 + $0xb0] sm:$0xff]  }
 0xdc2   : > { %10154 = vmatpush3.bf16.msra.mxu0 %v12114_v31  ;;  %10166 = vmatpush3.bf16.msra.mxu1 %v12114_v31 }
 0xdc3   : > { %10159 = vmatprep.subr.bf16.mxu0 %v13513_v44  ;;  %10177 = vmatprep.subr.bf16.mxu1 %v13513_v44 }
 0xdc5   : > { %10156 = vmatmul.mubr.msk.bf16.vlgmr.msra.gmra.mrb[92].mxu0 %vm282_vm0, %v11962_v47  ;;  %10168 = vmatmul.mubr.msk.bf16.vlgmr.msra.gmra.mrb[96].mxu1 %vm282_vm0, %v12002_v6  ;;  %v10960_v47 = vld [vmem:[%s13476_s1 + $0x60] sm:$0xff]   ;;  %v10964_v6 = vld [vmem:[%s13476_s1 + $0x78] sm:$0xff]  }
 0xdc6   : > { %10160 = vmatpush3.bf16.msra.mxu0 %v12114_v31  ;;  %10178 = vmatpush3.bf16.msra.mxu1 %v12114_v31 }
 0xdc7   : > { %10161 = vmatprep.mubr.msk.bf16.mxu0 %vm11242_vm1, %v13513_v44  ;;  %10171 = vmatprep.subr.bf16.mxu0 %v13513_v44 }
 0xdc8   : > { %10179 = vmatprep.mubr.msk.bf16.mxu1 %vm11242_vm1, %v13513_v44  ;;  %10189 = vmatprep.subr.bf16.mxu1 %v13513_v44 }
 0xdcd   : > { %10162 = vmatmul.mubr.msk.bf16.vlgmr.msra.gmra.mrb[96].mxu0 %vm282_vm0, %v11982_v48  ;;  %10180 = vmatmul.mubr.msk.bf16.vlgmr.msra.gmra.mrb[100].mxu1 %vm282_vm0, %v12023_v9  ;;  %v10962_v48 = vld [vmem:[%s13476_s1 + $0x70] sm:$0xff]   ;;  %v10966_v9 = vld [vmem:[%s13476_s1 + $0x80] sm:$0xff]  }
 0xdce   : > { %10172 = vmatpush3.bf16.msra.mxu0 %v12114_v31  ;;  %10190 = vmatpush3.bf16.msra.mxu1 %v12114_v31 }
 0xdcf   : > { %10173 = vmatprep.mubr.msk.bf16.mxu0 %vm11242_vm1, %v13513_v44  ;;  %10183 = vmatprep.subr.bf16.mxu0 %v13513_v44 }
 0xdd0   : > { %10191 = vmatprep.mubr.msk.bf16.mxu1 %vm11242_vm1, %v13513_v44  ;;  %10201 = vmatprep.subr.bf16.mxu1 %v13513_v44 }
 0xdd5   : > { %10174 = vmatmul.mubr.msk.bf16.vlgmr.msra.gmra.mrb[100].mxu0 %vm282_vm0, %v11969_v36  ;;  %10192 = vmatmul.mubr.msk.bf16.vlgmr.msra.gmra.mrb[104].mxu1 %vm282_vm0, %v12037_v57  ;;  %v10961_v36 = vld [vmem:[%s13476_s1 + $0x58] sm:$0xff]   ;;  %v10967_v57 = vld [vmem:[%s13478_s3 + $0xc0] sm:$0xff]  }
 0xdd6   : > { %10184 = vmatpush3.bf16.msra.mxu0 %v12114_v31  ;;  %10202 = vmatpush3.bf16.msra.mxu1 %v12114_v31 }
 0xdd7   : > { %10185 = vmatprep.mubr.msk.bf16.mxu0 %vm11242_vm1, %v13513_v44  ;;  %10195 = vmatprep.subr.bf16.mxu0 %v13513_v44 }
 0xdd8   : > { %10203 = vmatprep.mubr.msk.bf16.mxu1 %vm11242_vm1, %v13513_v44  ;;  %10213 = vmatprep.subr.bf16.mxu1 %v13513_v44 }
 0xddd   : > { %10186 = vmatmul.mubr.msk.bf16.vlgmr.msra.gmra.mrb[104].mxu0 %vm282_vm0, %v11989_v62  ;;  %10204 = vmatmul.mubr.msk.bf16.vlgmr.msra.gmra.mrb[108].mxu1 %vm282_vm0, %v12051_v11  ;;  %v10963_v62 = vld [vmem:[%s13476_s1 + $0x68] sm:$0xff]   ;;  %v10968_v11 = vld [vmem:[%s13478_s3 + $0x80] sm:$0xff]  }
 0xdde   : > { %10196 = vmatpush3.bf16.msra.mxu0 %v12114_v31  ;;  %10214 = vmatpush3.bf16.msra.mxu1 %v12114_v31 }
 0xddf   : > { %10197 = vmatprep.mubr.msk.bf16.mxu0 %vm11242_vm1, %v13513_v44  ;;  %10207 = vmatprep.subr.bf16.mxu0 %v13513_v44 }
 0xde0   : > { %10215 = vmatprep.mubr.msk.bf16.mxu1 %vm11242_vm1, %v13513_v44  ;;  %10225 = vmatprep.subr.bf16.mxu1 %v13513_v44 }
 0xde5   : > { %10198 = vmatmul.mubr.msk.bf16.vlgmr.msra.gmra.mrb[108].mxu0 %vm282_vm0, %v12009_v1  ;;  %10216 = vmatmul.mubr.msk.bf16.vlgmr.msra.gmra.mrb[112].mxu1 %vm282_vm0, %v10958_v27  ;;  %v10965_v1 = vld [vmem:[%s13476_s1 + $0x88] sm:$0xff]  }
 0xde6   : > { %10208 = vmatpush3.bf16.msra.mxu0 %v12114_v31  ;;  %10226 = vmatpush3.bf16.msra.mxu1 %v12114_v31 }
 0xde7   : > { %10209 = vmatprep.mubr.msk.bf16.mxu0 %vm11242_vm1, %v13513_v44  ;;  %10219 = vmatprep.subr.bf16.mxu0 %v13513_v44 }
 0xde8   : > { %10227 = vmatprep.mubr.msk.bf16.mxu1 %vm11242_vm1, %v13513_v44  ;;  %10237 = vmatprep.subr.bf16.mxu1 %v13513_v44 }
 0xded   : > { %10210 = vmatmul.mubr.msk.bf16.vlgmr.msra.gmra.mrb[112].mxu0 %vm282_vm0, %v10959_v29  ;;  %10228 = vmatmul.mubr.msk.bf16.vlgmr.msra.gmra.mrb[116].mxu1 %vm282_vm0, %v10960_v47  ;;  %v10993_v47 = vld [vmem:[%s13478_s3 + $0x70] sm:$0xff]  }
 0xdee   : > { %10220 = vmatpush3.bf16.msra.mxu0 %v12114_v31  ;;  %10238 = vmatpush3.bf16.msra.mxu1 %v12114_v31 }
 0xdef   : > { %10221 = vmatprep.mubr.msk.bf16.mxu0 %vm11242_vm1, %v13513_v44  ;;  %10231 = vmatprep.subr.bf16.mxu0 %v13513_v44 }
 0xdf0   : > { %10239 = vmatprep.mubr.msk.bf16.mxu1 %vm11242_vm1, %v13513_v44  ;;  %10249 = vmatprep.subr.bf16.mxu1 %v13513_v44 }
 0xdf5   : > { %10222 = vmatmul.mubr.msk.bf16.vlgmr.msra.gmra.mrb[116].mxu0 %vm282_vm0, %v10961_v36  ;;  %10240 = vmatmul.mubr.msk.bf16.vlgmr.msra.gmra.mrb[120].mxu1 %vm282_vm0, %v10962_v48  ;;  %v10994_v36 = vld [vmem:[%s13478_s3 + $0xf8] sm:$0xff]   ;;  %v10995_v48 = vld [vmem:[%s13478_s3 + $0x30] sm:$0xff]  }
 0xdf6   : > { %10232 = vmatpush3.bf16.msra.mxu0 %v12114_v31  ;;  %10250 = vmatpush3.bf16.msra.mxu1 %v12114_v31 }
 0xdf7   : > { %10233 = vmatprep.mubr.msk.bf16.mxu0 %vm11242_vm1, %v13513_v44  ;;  %10243 = vmatprep.subr.bf16.mxu0 %v13513_v44 }
 0xdf8   : > { %10251 = vmatprep.mubr.msk.bf16.mxu1 %vm11242_vm1, %v13513_v44  ;;  %9537 = vmatprep.subr.bf16.mxu1 %v10969_v35  ;;  %v10997_v35 = vld [vmem:[%s13478_s3 + $0x78] sm:$0xff]  }
 0xdfd   : > { %10234 = vmatmul.mubr.msk.bf16.vlgmr.msra.gmra.mrb[120].mxu0 %vm282_vm0, %v10963_v62  ;;  %10252 = vmatmul.mubr.msk.bf16.vlgmr.msra.gmra.mrb[124].mxu1 %vm282_vm0, %v10966_v9 }
 0xdfe   : > { %10244 = vmatpush3.bf16.msra.mxu0 %v12114_v31  ;;  %10245 = vmatprep.mubr.msk.bf16.mxu0 %vm11242_vm1, %v13513_v44 }
 0xdff   : > { %10255 = vmatprep.subr.bf16.mxu0 %v13513_v44  ;;  %9538 = vmatpush3.bf16.msra.mxu1 %v10971_v49 }
 0xe00   : > { %9539 = vmatprep.subr.bf16.mxu1 %v10973_v52  ;;  %v10999_v52 = vld [vmem:[%s13478_s3 + $0x38] sm:$0xff]  }
 0xe03   : > { %9540 = vmatpush3.bf16.msra.mxu1 %v10975_v46 }
 0xe04   : > { %9541 = vmatprep.subr.bf16.mxu1 %v10977_v55  ;;  %v11001_v55 = vld [vmem:[%s13478_s3 + $0x140] sm:$0xff]  }
 0xe05   : > { %10246 = vmatmul.mubr.msk.bf16.vlgmr.msra.gmra.mrb[124].mxu0 %vm282_vm0, %v10964_v6  ;;  %v10996_v6 = vld [vmem:[%s13478_s3 + $0xb8] sm:$0xff]  }
 0xe06   : > { %10256 = vmatpush3.bf16.msra.mxu0 %v12114_v31  ;;  %10257 = vmatprep.mubr.msk.bf16.mxu0 %vm11242_vm1, %v13513_v44 }
 0xe07   : > { %9559 = vmatprep.subr.bf16.mxu0 %v10967_v57  ;;  %9542 = vmatpush3.bf16.msra.mxu1 %v10979_v2 }
 0xe08   : > { %9543 = vmatprep.subr.bf16.mxu1 %v10981_v14 }
 0xe0b   : > { %9544 = vmatpush3.bf16.msra.mxu1 %v10983_v34 }
 0xe0c   : > { %9545 = vmatprep.subr.bf16.mxu1 %v10985_v13 }
 0xe0d   : > { %10258 = vmatmul.mubr.msk.bf16.vlgmr.msra.gmra.mrb[128].mxu0 %vm282_vm0, %v10965_v1 }
 0xe0e   : > { %9560 = vmatpush3.bf16.msra.mxu0 %v10968_v11 }
 0xe0f   : > { %9561 = vmatprep.subr.bf16.mxu0 %v10970_v38  ;;  %9546 = vmatpush3.bf16.msra.mxu1 %v10987_v40  ;;  %v10998_v38 = vld [vmem:[%s13478_s3 + $0x1c0] sm:$0xff]  }
 0xe10   : > { %9547 = vmatprep.subr.bf16.mxu1 %v10989_v21 }
 0xe12   : > { %9562 = vmatpush3.bf16.msra.mxu0 %v10972_v19 }
 0xe13   : > { %9563 = vmatprep.subr.bf16.mxu0 %v10974_v58  ;;  %9548 = vmatpush3.bf16.msra.mxu1 %v10991_v26 }
 0xe14   : > { %9549 = vmatprep.subr.bf16.mxu1 %v10993_v47 }
 0xe16   : > { %9564 = vmatpush3.bf16.msra.mxu0 %v10976_v63 }
 0xe17   : > { %9565 = vmatprep.subr.bf16.mxu0 %v10978_v5  ;;  %9550 = vmatpush3.bf16.msra.mxu1 %v10995_v48 }
 0xe18   : > { %9551 = vmatprep.subr.bf16.mxu1 %v10997_v35 }
 0xe1a   : > { %9566 = vmatpush3.bf16.msra.mxu0 %v10980_v15 }
 0xe1b   : > { %9567 = vmatprep.subr.bf16.mxu0 %v10982_v30  ;;  %9552 = vmatpush3.bf16.msra.mxu1 %v10999_v52 }
 0xe1c   : > { %9581 = vmatprep.subr.bf16.mxu1 %v11001_v55 }
 0xe1e   : > { %9568 = vmatpush3.bf16.msra.mxu0 %v10984_v16 }
 0xe1f   : > { %9569 = vmatprep.subr.bf16.mxu0 %v10986_v23 }
 0xe22   : > { %9570 = vmatpush3.bf16.msra.mxu0 %v10988_v54 }
 0xe23   : > { %9571 = vmatprep.subr.bf16.mxu0 %v10990_v22 }
 0xe26   : > { %9572 = vmatpush3.bf16.msra.mxu0 %v10992_v28 }
 0xe27   : > { %9573 = vmatprep.subr.bf16.mxu0 %v10994_v36 }
 0xe2a   : > { %9574 = vmatpush3.bf16.msra.mxu0 %v10996_v6 }
 0xe2b   : > { %9603 = vmatprep.subr.bf16.mxu0 %v10998_v38 }
 0xe98   : > { %v12293_v51 = vpop.f32.mrb[92].mxu0  ;;  %v12295_v37 = vpop.f32.mrb[96].mxu1 }
 0xe99   : > { %v10157_v53 = vpop.f32.mrb[93].mxu0  ;;  %v10169_v39 = vpop.f32.mrb[97].mxu1 }
 0xe9a   : > { %v12297_v59 = vpop.f32.mrb[94].mxu0  ;;  %v12299_v7 = vpop.f32.mrb[98].mxu1 }
 0xe9b   : > { %v10158_v42 = vpop.f32.mrb[95].mxu0  ;;  %v10170_v43 = vpop.f32.mrb[99].mxu1 }
 0xea0   : > { %v3237_v0 = vpop.f32.mrb[96].mxu0  ;;  %v12301_v18 = vpop.f32.mrb[100].mxu1 }
 0xea1   : > { %v10163_v17 = vpop.f32.mrb[97].mxu0  ;;  %v10181_v41 = vpop.f32.mrb[101].mxu1 }
 0xea2   : > { %v3240_v50 = vpop.f32.mrb[98].mxu0  ;;  %v12303_v3 = vpop.f32.mrb[102].mxu1 }
 0xea3   : > { %v10774_v4 = vpack.i.bf16 %v3240_v50, %v3237_v0  ;;  %v10164_v12 = vpop.f32.mrb[99].mxu0  ;;  %v10182_v45 = vpop.f32.mrb[103].mxu1 }
 0xea8   : > { %v12305_v60 = vpop.f32.mrb[100].mxu0  ;;  %v12326_v25 = vpop.f32.mrb[104].mxu1 }
 0xea9   : > { %v10175_v61 = vpop.f32.mrb[101].mxu0  ;;  %v10193_v31 = vpop.f32.mrb[105].mxu1 }
 0xeaa   : > { %v3322_v56 = vpop.f32.mrb[102].mxu0  ;;  %v12334_v32 = vpop.f32.mrb[106].mxu1 }
 0xeab   : > { %v10769_v10 = vpack.i.bf16 %v3322_v56, %v12305_v60  ;;  %v10176_v20 = vpop.f32.mrb[103].mxu0  ;;  %v10194_v29 = vpop.f32.mrb[107].mxu1 }
 0xeb0   : > { %v3401_v27 = vpop.f32.mrb[104].mxu0  ;;  %v12348_v11 = vpop.f32.mrb[108].mxu1 }
 0xeb1   : > { %v10187_v62 = vpop.f32.mrb[105].mxu0  ;;  %v10205_v49 = vpop.f32.mrb[109].mxu1 }
 0xeb2   : > { %v3404_v1 = vpop.f32.mrb[106].mxu0  ;;  %v12360_v19 = vpop.f32.mrb[110].mxu1 }
 0xeb3   : > { %v10764_v9 = vpack.i.bf16 %v3404_v1, %v3401_v27  ;;  %v10188_v57 = vpop.f32.mrb[107].mxu0  ;;  %v10206_v46 = vpop.f32.mrb[111].mxu1 }
 0xeb5   : > { %10765 = vrot.lane.b32.xlu0 %v10764_v9, %s11244_s16 }
 0xeb8   : > { %v3483_v58 = vpop.f32.mrb[108].mxu0  ;;  %v12366_v15 = vpop.f32.mrb[112].mxu1 }
 0xeb9   : > { %10775 = vrot.lane.b32.xlu0 %v10774_v4, %s11244_s16  ;;  %v10199_v63 = vpop.f32.mrb[109].mxu0  ;;  %v10217_v34 = vpop.f32.mrb[113].mxu1 }
 0xeba   : > { %v3486_v2 = vpop.f32.mrb[110].mxu0  ;;  %v12369_v30 = vpop.f32.mrb[114].mxu1 }
 0xebb   : > { %v10759_v5 = vpack.i.bf16 %v3486_v2, %v3483_v58  ;;  %v10200_v14 = vpop.f32.mrb[111].mxu0  ;;  %v10218_v16 = vpop.f32.mrb[115].mxu1 }
 0xebd   : > { %10760 = vrot.lane.b32.xlu1 %v10759_v5, %s11244_s16 }
 0xec0   : > { %v3576_v53 = vpop.f32.mrb[112].mxu0  ;;  %v12372_v17 = vpop.f32.mrb[116].mxu1 }
 0xec1   : > { %10770 = vrot.lane.b32.xlu1 %v10769_v10, %s11244_s16  ;;  %v10211_v39 = vpop.f32.mrb[113].mxu0  ;;  %v10229_v41 = vpop.f32.mrb[117].mxu1 }
 0xec2   : > { %v3579_v42 = vpop.f32.mrb[114].mxu0  ;;  %v12374_v50 = vpop.f32.mrb[118].mxu1 }
 0xec3   : > { %v10794_v43 = vpack.i.bf16 %v3579_v42, %v3576_v53  ;;  %v10212_v0 = vpop.f32.mrb[115].mxu0  ;;  %v10230_v4 = vpop.f32.mrb[119].mxu1 }
 0xec4   : > { %v11000_v4 = vld [vmem:[%s13478_s3 + $0x180] sm:$0xff]  }
 0xec8   : > { %v3680_v12 = vpop.f32.mrb[116].mxu0  ;;  %v12376_v61 = vpop.f32.mrb[120].mxu1 }
 0xec9   : > { %v10223_v45 = vpop.f32.mrb[117].mxu0  ;;  %v10241_v40 = vpop.f32.mrb[121].mxu1 }
 0xeca   : > { %v3683_v60 = vpop.f32.mrb[118].mxu0  ;;  %v12378_v54 = vpop.f32.mrb[122].mxu1  ;;  %v11008_v40 = vld [vmem:[%s13478_s3 + $0x190] sm:$0xff]  }
 0xecb   : > { %v10789_v13 = vpack.i.bf16 %v3683_v60, %v3680_v12  ;;  %v10224_v23 = vpop.f32.mrb[119].mxu0  ;;  %v10242_v10 = vpop.f32.mrb[123].mxu1  ;;  %v11003_v60 = vld [vmem:[%s13478_s3 + $0x100] sm:$0xff]  }
 0xecc   : > { %v11005_v23 = vld [vmem:[%s13478_s3 + $0x148] sm:$0xff]   ;;  %v11010_v10 = vld [vmem:[%s13478_s3 + $0x1d8] sm:$0xff]  }
 0xed0   : > { %v3784_v56 = vpop.f32.mrb[120].mxu0  ;;  %v12385_v9 = vpop.f32.mrb[124].mxu1 }
 0xed1   : > { %v10235_v20 = vpop.f32.mrb[121].mxu0  ;;  %v10253_v57 = vpop.f32.mrb[125].mxu1 }
 0xed2   : > { %v3787_v21 = vpop.f32.mrb[122].mxu0  ;;  %v12387_v35 = vpop.f32.mrb[126].mxu1  ;;  %v11011_v20 = vld [vmem:[%s13478_s3 + $0x110] sm:$0xff]   ;;  %v11021_v57 = vld [vmem:[%s13478_s3 + $0x168] sm:$0xff]  }
 0xed3   : > { %v10784_v22 = vpack.i.bf16 %v3787_v21, %v3784_v56  ;;  %v10236_v26 = vpop.f32.mrb[123].mxu0  ;;  %v10254_v38 = vpop.f32.mrb[127].mxu1  ;;  %v11009_v56 = vld [vmem:[%s13478_s3 + $0x150] sm:$0xff]   ;;  %v11012_v21 = vld [vmem:[%s13478_s3 + $0x198] sm:$0xff]  }
 0xed4   : > { %v11014_v26 = vld [vmem:[%s13478_s3 + $0x1e0] sm:$0xff]   ;;  %v11022_v38 = vld [vmem:[%s13478_s3 + $0x1f0] sm:$0xff]  }
 0xed5   : > { %10785 = vrot.lane.b32.xlu0 %v10784_v22, %s11244_s16  ;;  %v11013_v22 = vld [vmem:[%s13478_s3 + $0x158] sm:$0xff]  }
 0xed8   : > { %v3888_v28 = vpop.f32.mrb[124].mxu0 }
 0xed9   : > { %10795 = vrot.lane.b32.xlu0 %v10794_v43, %s11244_s16  ;;  %v10247_v31 = vpop.f32.mrb[125].mxu0 }
 0xeda   : > { %v3891_v27 = vpop.f32.mrb[126].mxu0  ;;  %v11016_v31 = vld [vmem:[%s13478_s3 + $0x1a0] sm:$0xff]  }
 0xedb   : > { %v10779_v29 = vpack.i.bf16 %v3891_v27, %v3888_v28  ;;  %v10248_v47 = vpop.f32.mrb[127].mxu0  ;;  %v11015_v28 = vld [vmem:[%s13478_s3 + $0x118] sm:$0xff]   ;;  %v11017_v27 = vld [vmem:[%s13478_s3 + $0x160] sm:$0xff]  }
 0xedd   : > { %10780 = vrot.lane.b32.xlu1 %v10779_v29, %s11244_s16  ;;  %v11018_v29 = vld [vmem:[%s13478_s3 + $0x1e8] sm:$0xff]  }
 0xee0   : > { %v3992_v36 = vpop.f32.mrb[128].mxu0 }
 0xee1   : > { %10790 = vrot.lane.b32.xlu1 %v10789_v13, %s11244_s16  ;;  %v10259_v48 = vpop.f32.mrb[129].mxu0  ;;  %v11004_v13 = vld [vmem:[%s13478_s3 + $0x188] sm:$0xff]  }
 0xee2   : > { %v3995_v62 = vpop.f32.mrb[130].mxu0  ;;  %v11020_v48 = vld [vmem:[%s13478_s3 + $0x1a8] sm:$0xff]  }
 0xee3   : > { %v10799_v6 = vpack.i.bf16 %v3995_v62, %v3992_v36  ;;  %v10260_v1 = vpop.f32.mrb[131].mxu0  ;;  %v11019_v36 = vld [vmem:[%s13478_s3 + $0x120] sm:$0xff]   ;;  %v4890_v62 = vrot.slane %v12117_v33, 4 }
 0xee5   : > { %10800 = vrot.lane.b32.xlu1 %v10799_v6, %s11244_s16 }
 0xf27   : > { %v10766_v49 = vpop.permute.xlu0 %10765 }
 0xf28   : > { %v10768_v52 = vunpack.i.h.bf16 %v10766_v49  ;;  %v10767_v46 = vunpack.i.l.bf16 %v10766_v49 }
 0xf2a   : > { %v4068_v58 = vsel %vm942_vm3, %v12303_v3, %v10768_v52  ;;  %v4067_v55 = vsel %vm942_vm3, %v12301_v18, %v10767_v46 }
 0xf2b   : > { %v4091_v63 = vpack.c.bf16 %v4068_v58, %v4067_v55  ;;  %v10776_v2 = vpop.permute.xlu0 %10775  ;;  %v11023_v55 = vld [vmem:[%s13478_s3 + $0x128] sm:$0xff]  }
 0xf2c   : > { %v10778_v5 = vunpack.i.h.bf16 %v10776_v2  ;;  %v10777_v14 = vunpack.i.l.bf16 %v10776_v2  ;;  %v4891_v2 = vadd.f32 %v4890_v62, %v12117_v33 }
 0xf2e   : > { %v4064_v34 = vsel %vm942_vm3, %v12297_v59, %v10778_v5  ;;  %v4063_v16 = vsel %vm942_vm3, %v12293_v51, %v10777_v14  ;;  %v11002_v51 = vld [vmem:[%s13478_s3 + $0x1c8] sm:$0xff]  }
 0xf2f   : > { %v4089_v53 = vpack.c.bf16 %v4064_v34, %v4063_v16  ;;  %v10761_v39 = vpop.permute.xlu1 %10760 }
 0xf30   : > { %v10763_v42 = vunpack.i.h.bf16 %v10761_v39  ;;  %v10762_v43 = vunpack.i.l.bf16 %v10761_v39  ;;  %v11027_v39 = vld [vmem:[%s13478_s3 + $0x130] sm:$0xff]  }
 0xf32   : > { %v4069_v3 = vsel %vm942_vm3, %v12326_v25, %v10762_v43  ;;  %v4070_v18 = vsel %vm942_vm3, %v12334_v32, %v10763_v42  ;;  %v11028_v42 = vld [vmem:[%s13478_s3 + $0x1b8] sm:$0xff]   ;;  %v4892_v43 = vrot.slane %v4891_v2, 2 }
 0xf33   : > { %v10771_v0 = vpop.permute.xlu1 %10770  ;;  %v4092_v41 = vpack.c.bf16 %v4070_v18, %v4069_v3 }
 0xf34   : > { %v10773_v59 = vunpack.i.h.bf16 %v10771_v0  ;;  %v10772_v12 = vunpack.i.l.bf16 %v10771_v0 }
 0xf35   : > { %4752 = vmatprep.mubr.bf16.mxu0 %v4092_v41 }
 0xf36   : > { %4753 = vmatmul.mubr.bf16.vlgmr.msra.gmra.mrb[132].mxu0 %v4091_v63  ;;  %v4065_v25 = vsel %vm942_vm3, %v12295_v37, %v10772_v12  ;;  %v4066_v32 = vsel %vm942_vm3, %v12299_v7, %v10773_v59  ;;  %v11006_v37 = vld [vmem:[%s13478_s3 + $0x1d0] sm:$0xff]   ;;  %v11007_v7 = vld [vmem:[%s13478_s3 + $0x108] sm:$0xff]   ;;  %v11030_v59 = vld [vmem:[%s13478_s3 + $0x138] sm:$0xff]  }
 0xf37   : > { %9604 = vmatpush3.bf16.msra.mxu0 %v11000_v4  ;;  %v4090_v45 = vpack.c.bf16 %v4066_v32, %v4065_v25  ;;  %v11024_v63 = vld [vmem:[%s13478_s3 + $0x1b0] sm:$0xff]  }
 0xf38   : > { %9605 = vmatprep.subr.bf16.mxu0 %v11002_v51  ;;  %v11031_v12 = vld [vmem:[%s13479_s4 + $0x90] sm:$0xff]   ;;  %v4893_v51 = vadd.f32 %v4892_v43, %v4891_v2 }
 0xf39   : > { %4711 = vmatprep.mubr.bf16.mxu1 %v4090_v45 }
 0xf3a   : > { %4712 = vmatmul.mubr.bf16.vlgmr.msra.gmra.mrb[128].mxu1 %v4089_v53 }
 0xf3b   : > { %9582 = vmatpush3.bf16.msra.mxu1 %v11003_v60  ;;  %9606 = vmatpush3.bf16.msra.mxu0 %v11004_v13  ;;  %v11032_v60 = vld [vmem:[%s13478_s3 + $0x200] sm:$0xff]   ;;  %v11033_v13 = vld [vmem:[%s13479_s4 + $0x98] sm:$0xff]  }
 0xf3c   : > { %9583 = vmatprep.subr.bf16.mxu1 %v11005_v23  ;;  %9607 = vmatprep.subr.bf16.mxu0 %v11006_v37  ;;  %v4894_v37 = vrot.slane %v4893_v51, 1 }
 0xf3f   : > { %9584 = vmatpush3.bf16.msra.mxu1 %v11007_v7  ;;  %9608 = vmatpush3.bf16.msra.mxu0 %v11008_v40 }
 0xf40   : > { %9585 = vmatprep.subr.bf16.mxu1 %v11009_v56  ;;  %9609 = vmatprep.subr.bf16.mxu0 %v11010_v10  ;;  %v11034_v56 = vld [vmem:[%s13478_s3 + $0x208] sm:$0xff]   ;;  %v11035_v10 = vld [vmem:[%s13479_s4 + $0xa0] sm:$0xff]  }
 0xf43   : > { %9586 = vmatpush3.bf16.msra.mxu1 %v11011_v20  ;;  %9610 = vmatpush3.bf16.msra.mxu0 %v11012_v21  ;;  %v4895_v21 = vadd.f32 %v4894_v37, %v4893_v51 }
 0xf44   : > { %9587 = vmatprep.subr.bf16.mxu1 %v11013_v22  ;;  %9611 = vmatprep.subr.bf16.mxu0 %v11014_v26  ;;  %v11038_v26 = vld [vmem:[%s13478_s3 + $0x218] sm:$0xff]  }
 0xf45   : > { %v4896_v22 = vmul.f32 0.0625, %v4895_v21 }
 0xf47   : > { %9588 = vmatpush3.bf16.msra.mxu1 %v11015_v28  ;;  %9612 = vmatpush3.bf16.msra.mxu0 %v11016_v31  ;;  %v10786_v47 = vpop.permute.xlu0 %10785  ;;  %v4897_v28 = vpack.c.bf16 %v4896_v22, %v4896_v22  ;;  %v11039_v31 = vld [vmem:[%s13478_s3 + $0x220] sm:$0xff]   ;;  %v11050_v22 = vld [vmem:[%s13479_s4 + $0xd8] sm:$0xff]  }
 0xf48   : > { %v10788_v6 = vunpack.i.h.bf16 %v10786_v47  ;;  %v10787_v1 = vunpack.i.l.bf16 %v10786_v47  ;;  %9589 = vmatprep.subr.bf16.mxu1 %v11017_v27  ;;  %9613 = vmatprep.subr.bf16.mxu0 %v11018_v29  ;;  %v11040_v27 = vld [vmem:[%s13478_s3 + $0x228] sm:$0xff]   ;;  %v11041_v29 = vld [vmem:[%s13478_s3 + $0x230] sm:$0xff]   ;;  %v11042_v47 = vld [vmem:[%s13478_s3 + $0x238] sm:$0xff]  }
 0xf4a   : > { %v4076_v49 = vsel %vm942_vm3, %v12374_v50, %v10788_v6  ;;  %v4075_v52 = vsel %vm942_vm3, %v12372_v17, %v10787_v1  ;;  %v11025_v17 = vld [vmem:[%s13478_s3 + $0x170] sm:$0xff]   ;;  %v11026_v50 = vld [vmem:[%s13478_s3 + $0x1f8] sm:$0xff]  }
 0xf4b   : > { %v4095_v46 = vpack.c.bf16 %v4076_v49, %v4075_v52  ;;  %9590 = vmatpush3.bf16.msra.mxu1 %v11019_v36  ;;  %9614 = vmatpush3.bf16.msra.mxu0 %v11020_v48  ;;  %v10796_v58 = vpop.permute.xlu0 %10795  ;;  %v11043_v36 = vld [vmem:[%s13479_s4 + $0xe0] sm:$0xff]   ;;  %v11044_v48 = vld [vmem:[%s13479_s4 + $0xe8] sm:$0xff]  }
 0xf4c   : > { %v10798_v5 = vunpack.i.h.bf16 %v10796_v58  ;;  %v10797_v14 = vunpack.i.l.bf16 %v10796_v58  ;;  %9591 = vmatprep.subr.bf16.mxu1 %v11021_v57  ;;  %9615 = vmatprep.subr.bf16.mxu0 %v11022_v38 }
 0xf4e   : > { %v4072_v34 = vsel %vm942_vm3, %v12360_v19, %v10798_v5  ;;  %v4071_v16 = vsel %vm942_vm3, %v12348_v11, %v10797_v14  ;;  %v11029_v11 = vld [vmem:[%s13478_s3 + $0x178] sm:$0xff]  }
 0xf4f   : > { %v4093_v53 = vpack.c.bf16 %v4072_v34, %v4071_v16  ;;  %9592 = vmatpush3.bf16.msra.mxu1 %v11023_v55  ;;  %9616 = vmatpush3.bf16.msra.mxu0 %v11024_v63  ;;  %v10781_v33 = vpop.permute.xlu1 %10780 }
 0xf50   : > { %v10783_v3 = vunpack.i.h.bf16 %v10781_v33  ;;  %v10782_v18 = vunpack.i.l.bf16 %v10781_v33  ;;  %9593 = vmatprep.subr.bf16.mxu1 %v11025_v17  ;;  %9617 = vmatprep.subr.bf16.mxu0 %v11026_v50 }
 0xf52   : > { %v4077_v19 = vsel %vm942_vm3, %v12376_v61, %v10782_v18  ;;  %v4078_v0 = vsel %vm942_vm3, %v12378_v54, %v10783_v3 }
 0xf53   : > { %9594 = vmatpush3.bf16.msra.mxu1 %v11027_v39  ;;  %9618 = vmatpush3.bf16.msra.mxu0 %v11028_v42  ;;  %v10791_v41 = vpop.permute.xlu1 %10790  ;;  %v4096_v4 = vpack.c.bf16 %v4078_v0, %v4077_v19 }
 0xf54   : > { %v10793_v25 = vunpack.i.h.bf16 %v10791_v41  ;;  %v10792_v32 = vunpack.i.l.bf16 %v10791_v41  ;;  %9595 = vmatprep.subr.bf16.mxu1 %v11029_v11  ;;  %10281 = vmatprep.subr.bf16.mxu0 %v13513_v44 }
 0xf55   : > { %4834 = vmatprep.mubr.bf16.mxu0 %v4096_v4 }
 0xf56   : > { %4835 = vmatmul.mubr.bf16.vlgmr.msra.gmra.mrb[136].mxu0 %v4095_v46  ;;  %v4073_v61 = vsel %vm942_vm3, %v12366_v15, %v10792_v32  ;;  %v4074_v54 = vsel %vm942_vm3, %v12369_v30, %v10793_v25  ;;  %v9003_v46 = vld [vmem:[%s13480_s5 + $0x7] ss:$0 sm:$0xff]  ;;  %v4906_v25 = vld [vmem:[%s13480_s5 + $0x8] sm:$0x1] }
 0xf57   : > { %9596 = vmatpush3.bf16.msra.mxu1 %v11030_v59  ;;  %10282 = vmatpush3.bf16.msra.mxu0 %v11031_v12  ;;  %v4094_v45 = vpack.c.bf16 %v4074_v54, %v4073_v61  ;;  %v10801_v23 = vpop.permute.xlu1 %10800 }
 0xf58   : > { %10261 = vmatprep.subr.bf16.mxu1 %v13513_v44  ;;  %10283 = vmatprep.subr.bf16.mxu0 %v13513_v44  ;;  %v10803_v15 = vunpack.i.h.bf16 %v10801_v23  ;;  %v10802_v7 = vunpack.i.l.bf16 %v10801_v23  ;;  %v11045_v23 = vld [vmem:[%s13479_s4 + $0xb0] sm:$0xff]  }
 0xf59   : > { %4793 = vmatprep.mubr.bf16.mxu1 %v4094_v45  ;;  %10289 = vmatprep.mubr.msk.bf16.mxu0 %vm11242_vm1, %v13513_v44 }
 0xf5a   : > { %4794 = vmatmul.mubr.bf16.vlgmr.msra.gmra.mrb[132].mxu1 %v4093_v53  ;;  %v4087_v30 = vsel %vm942_vm3, %v12385_v9, %v10802_v7  ;;  %v4088_v40 = vsel %vm942_vm3, %v12387_v35, %v10803_v15  ;;  %v11036_v9 = vld [vmem:[%s13478_s3 + $0x210] sm:$0xff]   ;;  %v11037_v35 = vld [vmem:[%s13479_s4 + $0xa8] sm:$0xff]   ;;  %v11046_v15 = vld [vmem:[%s13479_s4 + $0xb8] sm:$0xff]  }
 0xf5b   : > { %10262 = vmatpush3.bf16.msra.mxu1 %v11032_v60  ;;  %10284 = vmatpush3.bf16.msra.mxu0 %v11033_v13  ;;  %v4097_v20 = vpack.c.bf16 %v4088_v40, %v4087_v30  ;;  %v11047_v7 = vld [vmem:[%s13479_s4 + $0xc0] sm:$0xff]   ;;  %v11048_v30 = vld [vmem:[%s13479_s4 + $0xc8] sm:$0xff]  }
 0xf5c   : > { %10263 = vmatprep.subr.bf16.mxu1 %v13513_v44  ;;  %10285 = vmatprep.subr.bf16.mxu0 %v13513_v44 }
 0xf5d   : > { %10277 = vmatprep.mubr.msk.bf16.mxu1 %vm11242_vm1, %v13513_v44 }
 0xf5f   : > { %10264 = vmatpush3.bf16.msra.mxu1 %v11034_v56  ;;  %10286 = vmatpush3.bf16.msra.mxu0 %v11035_v10  ;;  %v11049_v56 = vld [vmem:[%s13479_s4 + $0xd0] sm:$0xff]  }
 0xf60   : > { %10265 = vmatprep.subr.bf16.mxu1 %v13513_v44  ;;  %10287 = vmatprep.subr.bf16.mxu0 %v13513_v44 }
 0xf63   : > { %10266 = vmatpush3.bf16.msra.mxu1 %v11036_v9  ;;  %10288 = vmatpush3.bf16.msra.mxu0 %v11037_v35 }
 0xf64   : > { %10267 = vmatprep.subr.bf16.mxu1 %v13513_v44  ;;  %10293 = vmatprep.subr.bf16.mxu0 %v13513_v44 }
 0xf66   : > { %10290 = vmatmul.mubr.msk.bf16.vlgmr.msra.gmra.mrb[140].mxu0 %vm942_vm3, %v4897_v28 }
 0xf67   : > { %10268 = vmatpush3.bf16.msra.mxu1 %v11038_v26  ;;  %10297 = vmatprep.mubr.msk.bf16.mxu0 %vm11242_vm1, %v13513_v44 }
 0xf68   : > { %10269 = vmatprep.subr.bf16.mxu1 %v13513_v44  ;;  %10294 = vmatpush3.bf16.msra.mxu0 %v11043_v36 }
 0xf69   : > { %10295 = vmatprep.subr.bf16.mxu0 %v13513_v44 }
 0xf6b   : > { %10270 = vmatpush3.bf16.msra.mxu1 %v11039_v31 }
 0xf6c   : > { %10271 = vmatprep.subr.bf16.mxu1 %v13513_v44  ;;  %10296 = vmatpush3.bf16.msra.mxu0 %v11044_v48  ;;  %v5048_v48 = vlaneseq }
 0xf6d   : > { %10301 = vmatprep.subr.bf16.mxu0 %v13513_v44 }
 0xf6f   : > { %10272 = vmatpush3.bf16.msra.mxu1 %v11040_v27 }
 0xf70   : > { %10273 = vmatprep.subr.bf16.mxu1 %v13513_v44 }
 0xf73   : > { %10274 = vmatpush3.bf16.msra.mxu1 %v11041_v29 }
 0xf74   : > { %10275 = vmatprep.subr.bf16.mxu1 %v13513_v44 }
 0xf77   : > { %10276 = vmatpush3.bf16.msra.mxu1 %v11042_v47 }
 0xf78   : > { %10317 = vmatprep.subr.bf16.mxu1 %v13513_v44 }
 0xf7a   : > { %10278 = vmatmul.mubr.bf16.vlgmr.msra.gmra.mrb[136].mxu1 %v4097_v20 }
 0xf7b   : > { %10319 = vmatprep.mubr.msk.bf16.mxu1 %vm11242_vm1, %v13513_v44 }
0x1009   : > { %v9575_v62 = vpop.f32.mrb[132].mxu0 }
0x100a   : > { %v9576_v6 = vpop.f32.mrb[133].mxu0 }
0x100b   : > { %v9577_v1 = vadd.f32 %v9576_v6, %v9575_v62  ;;  %v9578_v57 = vpop.f32.mrb[134].mxu0  ;;  %v12620_v62 = vshrl.u32 %v5048_v48, 7  ;;  %v4980_v6 = vld [vmem:[%s13480_s5 + $0x9] sm:$0x1] }
0x100c   : > { %v9579_v38 = vpop.f32.mrb[135].mxu0 }
0x100d   : > { %v9580_v49 = vadd.f32 %v9579_v38, %v9578_v57  ;;  %v9553_v52 = vpop.f32.mrb[128].mxu1  ;;  %v5050_v57 = vsub.s32 0, %v12620_v62  ;;  %v11229_v62 = vld [vmem:[%s13476_s1 + $0x18] sm:$0xff]  }
0x100e   : > { %v9554_v58 = vpop.f32.mrb[129].mxu1 }
0x100f   : > { %v9555_v55 = vadd.f32 %v9554_v58, %v9553_v52  ;;  %v9556_v63 = vpop.f32.mrb[130].mxu1 }
0x1010   : > { %v9557_v2 = vpop.f32.mrb[131].mxu1 }
0x1011   : > { %v4714_v5 = vadd.f32 %v9555_v55, %v9003_v46  ;;  %v9558_v14 = vadd.f32 %v9557_v2, %v9556_v63 }
0x1013   : > { %v4717_v17 = vadd.f32 %v9558_v14, %v9003_v46  ;;  %v4755_v50 = vadd.f32 %v9577_v1, %v4714_v5 }
0x1015   : > { %v4758_v34 = vadd.f32 %v9580_v49, %v4717_v17  ;;  %v11220_v17 = vld [vmem:[%s13476_s1] sm:$0xff]  }
0x1029   : > { %v9619_v16 = vpop.f32.mrb[136].mxu0 }
0x102a   : > { %v9620_v53 = vpop.f32.mrb[137].mxu0 }
0x102b   : > { %v9621_v33 = vadd.f32 %v9620_v53, %v9619_v16  ;;  %v9622_v39 = vpop.f32.mrb[138].mxu0  ;;  %v11223_v16 = vld [vmem:[%s13476_s1 + $0x28] sm:$0xff]   ;;  %v11224_v53 = vld [vmem:[%s13476_s1 + $0x10] sm:$0xff]  }
0x102c   : > { %v9623_v42 = vpop.f32.mrb[139].mxu0 }
0x102d   : > { %v9624_v43 = vadd.f32 %v9623_v42, %v9622_v39  ;;  %v9597_v3 = vpop.f32.mrb[132].mxu1  ;;  %v11226_v39 = vld [vmem:[%s13476_s1 + $0x20] sm:$0xff]   ;;  %v11227_v42 = vld [vmem:[%s13476_s1 + $0x30] sm:$0xff]  }
0x102e   : > { %v9598_v18 = vpop.f32.mrb[133].mxu1 }
0x102f   : > { %v9599_v11 = vadd.f32 %v9598_v18, %v9597_v3  ;;  %v9600_v19 = vpop.f32.mrb[134].mxu1 }
0x1030   : > { %v9601_v0 = vpop.f32.mrb[135].mxu1 }
0x1031   : > { %v4796_v41 = vadd.f32 %v9599_v11, %v4755_v50  ;;  %v9602_v4 = vadd.f32 %v9601_v0, %v9600_v19  ;;  %v11221_v50 = vld [vmem:[%s13476_s1 + $0x18] sm:$0xff]   ;;  %v11051_v0 = vld [vmem:[%s13479_s4 + $0x40] sm:$0xff]  }
0x1033   : > { %v4799_v59 = vadd.f32 %v9602_v4, %v4758_v34  ;;  %v4837_v12 = vadd.f32 %v9621_v33, %v4796_v41  ;;  %v11222_v34 = vld [vmem:[%s13476_s1 + $0x8] sm:$0xff]   ;;  %v11225_v33 = vld [vmem:[%s13476_s1 + $0x38] sm:$0xff]  }
0x1035   : > { %v4840_v51 = vadd.f32 %v9624_v43, %v4799_v59  ;;  %v11228_v43 = vld [vmem:[%s13476_s1 + $0x40] sm:$0xff]  }
0x1036   : > { %v11052_v59 = vld [vmem:[%s13479_s4] sm:$0xff]  }
0x1039   : > { %v4968_v32 = vpop.f32.mrb[140].mxu0 }
0x103a   : > { %v4969_v61 = vadd.f32 %v4968_v32, %v4906_v25  ;;  %v10291_v54 = vpop.f32.mrb[141].mxu0 }
0x103b   : > { %v4971_v45 = vpop.f32.mrb[142].mxu0 }
0x103c   : > { %v4974_v60 = vmax.f32 %v4969_v61, 0.0  ;;  %v10292_v13 = vpop.f32.mrb[143].mxu0  ;;  %v11054_v61 = vld [vmem:[%s13479_s4 + $0x8] sm:$0xff]  }
0x103e   : > { %v4975_v37 = vpack.c.bf16 %v4974_v60, %v4974_v60 }
0x1040   : > { %10298 = vmatmul.mubr.msk.bf16.vlgmr.msra.gmra.mrb[144].mxu0 %vm382_vm2, %v4975_v37 }
0x1041   : > { %10302 = vmatpush3.bf16.msra.mxu0 %v11045_v23  ;;  %10313 = vmatprep.mubr.msk.bf16.mxu0 %vm11242_vm1, %v13513_v44  ;;  %v11055_v23 = vld [vmem:[%s13479_s4 + $0x50] sm:$0xff]  }
0x1042   : > { %10303 = vmatprep.subr.bf16.mxu0 %v13513_v44 }
0x1045   : > { %10304 = vmatpush3.bf16.msra.mxu0 %v11046_v15 }
0x1046   : > { %10305 = vmatprep.subr.bf16.mxu0 %v13513_v44 }
0x1049   : > { %10306 = vmatpush3.bf16.msra.mxu0 %v11047_v7  ;;  %v11056_v7 = vld [vmem:[%s13479_s4 + $0x10] sm:$0xff]  }
0x104a   : > { %10307 = vmatprep.subr.bf16.mxu0 %v13513_v44 }
0x104d   : > { %10308 = vmatpush3.bf16.msra.mxu0 %v11048_v30  ;;  %v4877_v40 = vpop.f32.mrb[136].mxu1 }
0x104e   : > { %v4878_v10 = vadd.f32 %v4877_v40, %v4837_v12  ;;  %v10279_v20 = vpop.f32.mrb[137].mxu1  ;;  %10309 = vmatprep.subr.bf16.mxu0 %v13513_v44  ;;  %v11053_v12 = vld [vmem:[%s13479_s4 + $0x48] sm:$0xff]  }
0x104f   : > { %v4880_v21 = vpop.f32.mrb[138].mxu1  ;;  %v11057_v20 = vld [vmem:[%s13479_s4 + $0x58] sm:$0xff]  }
0x1050   : > { %v4881_v9 = vadd.f32 %v4880_v21, %v4840_v51  ;;  %v10280_v35 = vpop.f32.mrb[139].mxu1  ;;  %v4884_v26 = vmax.f32 %v4878_v10, 0.0  ;;  %v11058_v21 = vld [vmem:[%s13479_s4 + $0x18] sm:$0xff]  }
0x1051   : > { %10310 = vmatpush3.bf16.msra.mxu0 %v11049_v56 }
0x1052   : > { %v4885_v28 = vmax.f32 %v4881_v9, 0.0  ;;  %10311 = vmatprep.subr.bf16.mxu0 %v13513_v44 }
0x1054   : > { %v4886_v31 = vpack.c.bf16 %v4885_v28, %v4884_v26  ;;  %v11059_v28 = vld [vmem:[%s13479_s4 + $0x60] sm:$0xff]  }
0x1055   : > { %10312 = vmatpush3.bf16.msra.mxu0 %v11050_v22 }
0x1056   : > { %10335 = vmatprep.subr.bf16.mxu0 %v13513_v44 }
0x1058   : > { %10314 = vmatmul.mubr.msk.bf16.vlgmr.msra.gmra.mrb[148].mxu0 %vm945_vm4, %v4886_v31  ;;  %v11060_v31 = vld [vmem:[%s13479_s4 + $0x20] sm:$0xff]  }
0x1059   : > { %10337 = vmatprep.mubr.msk.bf16.mxu0 %vm11242_vm1, %v13513_v44 }
0x1113   : > { %v5030_v27 = vpop.f32.mrb[144].mxu0 }
0x1114   : > { %v10299_v29 = vpop.f32.mrb[145].mxu0  ;;  %v5031_v1 = vadd.f32 %v5030_v27, %v4980_v6  ;;  %v11061_v27 = vld [vmem:[%s13479_s4 + $0x68] sm:$0xff]  }
0x1115   : > { %v5033_v47 = vpop.f32.mrb[146].mxu0 }
0x1116   : > { %v10300_v36 = vpop.f32.mrb[147].mxu0  ;;  %v5051_v38 = vrot.slane %v5031_v1, %v5050_v57 }
0x112b   : > { %v5125_v49 = vpop.f32.mrb[148].mxu0 }
0x112c   : > { %v5126_v52 = vadd.f32 %v5125_v49, %v5051_v38  ;;  %v10315_v46 = vpop.f32.mrb[149].mxu0 }
0x112d   : > { %v5128_v58 = vpop.f32.mrb[150].mxu0  ;;  %v11063_v46 = vld [vmem:[%s13479_s4 + $0x70] sm:$0xff]  }
0x112e   : > { %v5129_v55 = vadd.f32 %v5128_v58, %v5051_v38  ;;  %v10316_v63 = vpop.f32.mrb[151].mxu0  ;;  %v5132_v2 = vmax.f32 %v5126_v52, 0.0  ;;  %v11062_v38 = vld [vmem:[%s13479_s4 + $0x28] sm:$0xff]  }
0x112f   : > { %v11065_v63 = vld [vmem:[%s13479_s4 + $0x80] sm:$0xff]  }
0x1130   : > { %v5133_v5 = vmax.f32 %v5129_v55, 0.0  ;;  %v11064_v55 = vld [vmem:[%s13479_s4 + $0x30] sm:$0xff]  }
0x1132   : > { %v5134_v14 = vpack.c.bf16 %v5133_v5, %v5132_v2  ;;  %v11066_v5 = vld [vmem:[%s13479_s4 + $0x78] sm:$0xff]  }
0x1134   : > { %10318 = vmatpush3.bf16.msra.mxu1 %v5134_v14  ;;  %10336 = vmatpush3.bf16.msra.mxu0 %v5134_v14 }
0x1135   : > { %10323 = vmatprep.subr.bf16.mxu1 %v13513_v44  ;;  %10347 = vmatprep.subr.bf16.mxu0 %v13513_v44 }
0x1137   : > { %10320 = vmatmul.mubr.msk.bf16.vlgmr.msra.gmra.mrb[140].mxu1 %vm282_vm0, %v11220_v17  ;;  %10338 = vmatmul.mubr.msk.bf16.vlgmr.msra.gmra.mrb[152].mxu0 %vm282_vm0, %v11221_v50  ;;  %v11068_v17 = vld [vmem:[%s13479_s4 + $0x88] sm:$0xff]  }
0x1138   : > { %10324 = vmatpush3.bf16.msra.mxu1 %v5134_v14  ;;  %10348 = vmatpush3.bf16.msra.mxu0 %v5134_v14 }
0x1139   : > { %10325 = vmatprep.mubr.msk.bf16.mxu1 %vm11242_vm1, %v13513_v44  ;;  %10329 = vmatprep.subr.bf16.mxu1 %v13513_v44 }
0x113a   : > { %10349 = vmatprep.mubr.msk.bf16.mxu0 %vm11242_vm1, %v13513_v44  ;;  %10359 = vmatprep.subr.bf16.mxu0 %v13513_v44 }
0x113f   : > { %10326 = vmatmul.mubr.msk.bf16.vlgmr.msra.gmra.mrb[144].mxu1 %vm282_vm0, %v11222_v34  ;;  %10350 = vmatmul.mubr.msk.bf16.vlgmr.msra.gmra.mrb[156].mxu0 %vm282_vm0, %v11223_v16 }
0x1140   : > { %10330 = vmatpush3.bf16.msra.mxu1 %v5134_v14  ;;  %10360 = vmatpush3.bf16.msra.mxu0 %v5134_v14 }
0x1141   : > { %10331 = vmatprep.mubr.msk.bf16.mxu1 %vm11242_vm1, %v13513_v44  ;;  %10341 = vmatprep.subr.bf16.mxu1 %v13513_v44 }
0x1142   : > { %10361 = vmatprep.mubr.msk.bf16.mxu0 %vm11242_vm1, %v13513_v44  ;;  %9667 = vmatprep.subr.bf16.mxu0 %v11051_v0 }
0x1147   : > { %10332 = vmatmul.mubr.msk.bf16.vlgmr.msra.gmra.mrb[148].mxu1 %vm282_vm0, %v11224_v53  ;;  %10362 = vmatmul.mubr.msk.bf16.vlgmr.msra.gmra.mrb[160].mxu0 %vm282_vm0, %v11225_v33 }
0x1148   : > { %10342 = vmatpush3.bf16.msra.mxu1 %v5134_v14  ;;  %10343 = vmatprep.mubr.msk.bf16.mxu1 %vm11242_vm1, %v13513_v44 }
0x1149   : > { %10353 = vmatprep.subr.bf16.mxu1 %v13513_v44  ;;  %9668 = vmatpush3.bf16.msra.mxu0 %v11052_v59 }
0x114a   : > { %9669 = vmatprep.subr.bf16.mxu0 %v11053_v12 }
0x114d   : > { %9670 = vmatpush3.bf16.msra.mxu0 %v11054_v61 }
0x114e   : > { %9671 = vmatprep.subr.bf16.mxu0 %v11055_v23 }
0x114f   : > { %10344 = vmatmul.mubr.msk.bf16.vlgmr.msra.gmra.mrb[152].mxu1 %vm282_vm0, %v11226_v39 }
0x1150   : > { %10354 = vmatpush3.bf16.msra.mxu1 %v5134_v14  ;;  %10355 = vmatprep.mubr.msk.bf16.mxu1 %vm11242_vm1, %v13513_v44 }
0x1151   : > { %10365 = vmatprep.subr.bf16.mxu1 %v13513_v44  ;;  %9672 = vmatpush3.bf16.msra.mxu0 %v11056_v7 }
0x1152   : > { %9673 = vmatprep.subr.bf16.mxu0 %v11057_v20 }
0x1155   : > { %9674 = vmatpush3.bf16.msra.mxu0 %v11058_v21 }
0x1156   : > { %9675 = vmatprep.subr.bf16.mxu0 %v11059_v28 }
0x1157   : > { %10356 = vmatmul.mubr.msk.bf16.vlgmr.msra.gmra.mrb[156].mxu1 %vm282_vm0, %v11227_v42 }
0x1158   : > { %10366 = vmatpush3.bf16.msra.mxu1 %v5134_v14  ;;  %10367 = vmatprep.mubr.msk.bf16.mxu1 %vm11242_vm1, %v13513_v44  ;;  %v11067_v14 = vld [vmem:[%s13479_s4 + $0x38] sm:$0xff]  }
0x1159   : > { %10371 = vmatprep.subr.bf16.mxu1 %v13513_v44  ;;  %9676 = vmatpush3.bf16.msra.mxu0 %v11060_v31 }
0x115a   : > { %9677 = vmatprep.subr.bf16.mxu0 %v11061_v27 }
0x115d   : > { %9678 = vmatpush3.bf16.msra.mxu0 %v11062_v38 }
0x115e   : > { %9679 = vmatprep.subr.bf16.mxu0 %v11063_v46  ;;  %v11072_v46 = vld [vmem:[%s13476_s1 + $0x38] sm:$0xff]  }
0x115f   : > { %10368 = vmatmul.mubr.msk.bf16.vlgmr.msra.gmra.mrb[160].mxu1 %vm282_vm0, %v11228_v43 }
0x1160   : > { %10375 = vmatprep.mubr.msk.bf16.mxu1 %vm11242_vm1, %v13513_v44  ;;  %10372 = vmatpush3.bf16.msra.mxu1 %v11065_v63  ;;  %v11075_v63 = vld [vmem:[%s13476_s1 + $0x68] sm:$0xff]  }
0x1161   : > { %9680 = vmatpush3.bf16.msra.mxu0 %v11064_v55  ;;  %10373 = vmatprep.subr.bf16.mxu1 %v13513_v44  ;;  %v11074_v55 = vld [vmem:[%s13476_s1 + $0x58] sm:$0xff]  }
0x1162   : > { %9681 = vmatprep.subr.bf16.mxu0 %v11066_v5 }
0x1164   : > { %10374 = vmatpush3.bf16.msra.mxu1 %v11068_v17 }
0x1165   : > { %9682 = vmatpush3.bf16.msra.mxu0 %v11067_v14  ;;  %10379 = vmatprep.subr.bf16.mxu1 %v13513_v44 }
0x1166   : > { %10391 = vmatprep.subr.bf16.mxu0 %v13513_v44 }
0x120a   : > { %v12688_v3 = vpop.f32.mrb[140].mxu1  ;;  %v5292_v18 = vpop.f32.mrb[152].mxu0 }
0x120b   : > { %v10321_v11 = vpop.f32.mrb[141].mxu1  ;;  %v10339_v19 = vpop.f32.mrb[153].mxu0 }
0x120c   : > { %v12693_v41 = vpop.f32.mrb[142].mxu1  ;;  %v5295_v4 = vpop.f32.mrb[154].mxu0 }
0x120d   : > { %v10322_v51 = vpop.f32.mrb[143].mxu1  ;;  %v10829_v25 = vpack.i.bf16 %v5295_v4, %v5292_v18  ;;  %v10340_v32 = vpop.f32.mrb[155].mxu0 }
0x1212   : > { %v5210_v54 = vpop.f32.mrb[144].mxu1  ;;  %v5374_v45 = vpop.f32.mrb[156].mxu0 }
0x1213   : > { %v10327_v60 = vpop.f32.mrb[145].mxu1  ;;  %v10351_v13 = vpop.f32.mrb[157].mxu0 }
0x1214   : > { %v5213_v37 = vpop.f32.mrb[146].mxu1  ;;  %v5377_v15 = vpop.f32.mrb[158].mxu0 }
0x1215   : > { %v10809_v30 = vpack.i.bf16 %v5213_v37, %v5210_v54  ;;  %v10804_v40 = vpack.i.bf16 %v5377_v15, %v5374_v45  ;;  %v10328_v56 = vpop.f32.mrb[147].mxu1  ;;  %v10352_v10 = vpop.f32.mrb[159].mxu0 }
0x1217   : > { %10810 = vrot.lane.b32.xlu1 %v10809_v30, %s11243_s13  ;;  %10805 = vrot.lane.b32.xlu0 %v10804_v40, %s11243_s13 }
0x121a   : > { %v5251_v9 = vpop.f32.mrb[148].mxu1  ;;  %v5456_v35 = vpop.f32.mrb[160].mxu0 }
0x121b   : > { %v10333_v22 = vpop.f32.mrb[149].mxu1  ;;  %v10363_v26 = vpop.f32.mrb[161].mxu0 }
0x121c   : > { %v5254_v29 = vpop.f32.mrb[150].mxu1  ;;  %v5459_v47 = vpop.f32.mrb[162].mxu0 }
0x121d   : > { %v10814_v36 = vpack.i.bf16 %v5254_v29, %v5251_v9  ;;  %v10334_v48 = vpop.f32.mrb[151].mxu1  ;;  %v10824_v6 = vpack.i.bf16 %v5459_v47, %v5456_v35  ;;  %v10364_v1 = vpop.f32.mrb[163].mxu0 }
0x121f   : > { %10815 = vrot.lane.b32.xlu1 %v10814_v36, %s11244_s16 }
0x1222   : > { %v12731_v49 = vpop.f32.mrb[152].mxu1 }
0x1223   : > { %v10345_v52 = vpop.f32.mrb[153].mxu1  ;;  %10830 = vrot.lane.b32.xlu1 %v10829_v25, %s11245_s17 }
0x1224   : > { %v5336_v58 = vpop.f32.mrb[154].mxu1  ;;  %v11071_v52 = vld [vmem:[%s13476_s1 + $0x28] sm:$0xff]  }
0x1225   : > { %v10346_v2 = vpop.f32.mrb[155].mxu1 }
0x1226   : > { %v11076_v2 = vld [vmem:[%s13476_s1 + $0x78] sm:$0xff]  }
0x1227   : > { %5927 = vrot.lane.b32.xlu1 %v12094_v24, %s11243_s13 }
0x122a   : > { %v5415_v50 = vpop.f32.mrb[156].mxu1 }
0x122b   : > { %v10357_v34 = vpop.f32.mrb[157].mxu1 }
0x122c   : > { %v5418_v16 = vpop.f32.mrb[158].mxu1  ;;  %v5857_v34 = vld [vmem:[%s13480_s5 + $0x10] sm:$0xff] }
0x122d   : > { %v10819_v53 = vpack.i.bf16 %v5418_v16, %v5415_v50  ;;  %v10358_v33 = vpop.f32.mrb[159].mxu1  ;;  %v11078_v16 = vld [vmem:[%s13476_s1 + $0x88] sm:$0xff]  }
0x122f   : > { %10820 = vrot.lane.b32.xlu0 %v10819_v53, %s11244_s16  ;;  %v11246_v53 = vmov 0  }
0x1230   : > { %10834 = vset.pattern.permute.xlu0 %v11246_v53  ;;  %10910 = vset.pattern.permute.xlu1 %v11246_v53 }
0x1232   : > { %v5497_v39 = vpop.f32.mrb[160].mxu1 }
0x1233   : > { %10825 = vrot.lane.b32.xlu0 %v10824_v6, %s11245_s17  ;;  %v10369_v42 = vpop.f32.mrb[161].mxu1 }
0x1234   : > { %v5500_v43 = vpop.f32.mrb[162].mxu1 }
0x1235   : > { %v5566_v18 = vpack.c.bf16 %v5500_v43, %v5497_v39  ;;  %v10370_v11 = vpop.f32.mrb[163].mxu1  ;;  %v9100_v39 = vld [vmem:[%s13480_s5 + $0xa] ss:$0 sm:$0xff] }
0x1237   : > { %5925 = vrot.lane.b32.xlu0 %v12092_v8, %s11243_s13  ;;  %10376 = vmatmul.mubr.msk.bf16.vlgmr.msra.gmra.mrb[164].mxu1 %vm382_vm2, %v5566_v18 }
0x1238   : > { %10381 = vmatprep.mubr.msk.bf16.mxu1 %vm11242_vm1, %v13513_v44 }
0x123b   : > { %5860 = vperm.xlu0 %10834, %v5857_v34  }
0x1289   : > { %v10811_v19 = vpop.permute.xlu1 %10810  ;;  %v10806_v7 = vpop.permute.xlu0 %10805 }
0x128a   : > { %v10813_v4 = vunpack.i.h.bf16 %v10811_v19  ;;  %v10812_v59 = vunpack.i.l.bf16 %v10811_v19  ;;  %v10808_v40 = vunpack.i.h.bf16 %v10806_v7  ;;  %v10807_v56 = vunpack.i.l.bf16 %v10806_v7 }
0x128c   : > { %v5553_v32 = vsel %vm382_vm2, %v12693_v41, %v10813_v4  ;;  %v5552_v61 = vsel %vm382_vm2, %v12688_v3, %v10812_v59  ;;  %v5559_v3 = vsel %vm382_vm2, %v5336_v58, %v10808_v40  ;;  %v5558_v9 = vsel %vm382_vm2, %v12731_v49, %v10807_v56  ;;  %v11073_v58 = vld [vmem:[%s13476_s1 + $0x48] sm:$0xff]  }
0x1291   : > { %v10816_v0 = vpop.permute.xlu1 %10815 }
0x1292   : > { %v10818_v12 = vunpack.i.h.bf16 %v10816_v0  ;;  %v10817_v51 = vunpack.i.l.bf16 %v10816_v0 }
0x1294   : > { %v5555_v60 = vsel %vm942_vm3, %v5553_v32, %v10818_v12  ;;  %v5554_v13 = vsel %vm942_vm3, %v5552_v61, %v10817_v51 }
0x1295   : > { %v10831_v25 = vpop.permute.xlu1 %10830 }
0x1296   : > { %v10833_v54 = vunpack.i.h.bf16 %v10831_v25  ;;  %v10832_v45 = vunpack.i.l.bf16 %v10831_v25 }
0x1298   : > { %v5557_v23 = vsel %vm945_vm4, %v5555_v60, %v10833_v54  ;;  %v5556_v37 = vsel %vm945_vm4, %v5554_v13, %v10832_v45  ;;  %v11077_v54 = vld [vmem:[%s13479_s4 + $0xf0] sm:$0xff]   ;;  %v11081_v45 = vld [vmem:[%s13481_s6 + $0x4] ss:$8 sps:$4 sm:$0xff]   ;;  %v11079_v60 = vld [vmem:[%s13481_s6] ss:$8 sps:$4 sm:$0xff]  }
0x1299   : > { %v5564_v15 = vpack.c.bf16 %v5557_v23, %v5556_v37  ;;  %v5928_v20 = vpop.permute.xlu1 %5927 }
0x129a   : > { %v5932_v31 = vsel %vm382_vm2, %v12094_v24, %v5928_v20  ;;  %v11070_v24 = vld [vmem:[%s13476_s1 + $0x18] sm:$0xff]  }
0x129b   : > { %v7741_v6 = vsel %vm942_vm3, %v5932_v31, 0.0 }
0x12a1   : > { %v10821_v30 = vpop.permute.xlu0 %10820 }
0x12a2   : > { %v10823_v10 = vunpack.i.h.bf16 %v10821_v30  ;;  %v10822_v41 = vunpack.i.l.bf16 %v10821_v30 }
0x12a4   : > { %v5560_v26 = vsel %vm942_vm3, %v5558_v9, %v10822_v41  ;;  %v5561_v28 = vsel %vm942_vm3, %v5559_v3, %v10823_v10 }
0x12a5   : > { %v10826_v21 = vpop.permute.xlu0 %10825 }
0x12a6   : > { %v10828_v35 = vunpack.i.h.bf16 %v10826_v21  ;;  %v10827_v22 = vunpack.i.l.bf16 %v10826_v21 }
0x12a8   : > { %v5562_v27 = vsel %vm945_vm4, %v5560_v26, %v10827_v22  ;;  %v5563_v29 = vsel %vm945_vm4, %v5561_v28, %v10828_v35 }
0x12a9   : > { %v5926_v47 = vpop.permute.xlu0 %5925  ;;  %v5565_v36 = vpack.c.bf16 %v5563_v29, %v5562_v27 }
0x12aa   : > { %v5931_v48 = vsel %vm382_vm2, %v12092_v8, %v5926_v47  ;;  %v11069_v8 = vld [vmem:[%s13476_s1 + $0x8] sm:$0xff]  }
0x12ab   : > { %v12784_v1 = vpack.c.bf16 %v5932_v31, %v5931_v48  ;;  %v7740_v38 = vsel %vm942_vm3, %v5931_v48, 0.0  ;;  %5751 = vmatprep.mubr.bf16.mxu0 %v5565_v36 }
0x12ac   : > { %v12787_v49 = vadd.f32 %v7741_v6, %v7740_v38  ;;  %5752 = vmatmul.mubr.bf16.vlgmr.msra.gmra.mrb[164].mxu0 %v5564_v15 }
0x12ad   : > { %10392 = vmatpush3.bf16.msra.mxu0 %v12784_v1  ;;  %10393 = vmatprep.mubr.msk.bf16.mxu0 %vm11242_vm1, %v13513_v44 }
0x12ae   : > { %10403 = vmatprep.subr.bf16.mxu0 %v13513_v44 }
0x12b4   : > { %10394 = vmatmul.mubr.msk.bf16.vlgmr.msra.gmra.mrb[168].mxu0 %vm282_vm0, %v11069_v8 }
0x12b5   : > { %10404 = vmatpush3.bf16.msra.mxu0 %v12784_v1  ;;  %10405 = vmatprep.mubr.msk.bf16.mxu0 %vm11242_vm1, %v13513_v44 }
0x12b6   : > { %10415 = vmatprep.subr.bf16.mxu0 %v13513_v44 }
0x12bc   : > { %10406 = vmatmul.mubr.msk.bf16.vlgmr.msra.gmra.mrb[172].mxu0 %vm282_vm0, %v11070_v24 }
0x12bd   : > { %10416 = vmatpush3.bf16.msra.mxu0 %v12784_v1  ;;  %10417 = vmatprep.mubr.msk.bf16.mxu0 %vm11242_vm1, %v13513_v44 }
0x12be   : > { %10427 = vmatprep.subr.bf16.mxu0 %v13513_v44 }
0x12c4   : > { %10418 = vmatmul.mubr.msk.bf16.vlgmr.msra.gmra.mrb[176].mxu0 %vm282_vm0, %v11071_v52 }
0x12c5   : > { %10428 = vmatpush3.bf16.msra.mxu0 %v12784_v1  ;;  %10429 = vmatprep.mubr.msk.bf16.mxu0 %vm11242_vm1, %v13513_v44 }
0x12c6   : > { %10439 = vmatprep.subr.bf16.mxu0 %v13513_v44 }
0x12cc   : > { %10430 = vmatmul.mubr.msk.bf16.vlgmr.msra.gmra.mrb[180].mxu0 %vm282_vm0, %v11072_v46 }
0x12cd   : > { %10440 = vmatpush3.bf16.msra.mxu0 %v12784_v1  ;;  %10441 = vmatprep.mubr.msk.bf16.mxu0 %vm11242_vm1, %v13513_v44 }
0x12ce   : > { %10451 = vmatprep.subr.bf16.mxu0 %v13513_v44 }
0x12d4   : > { %10442 = vmatmul.mubr.msk.bf16.vlgmr.msra.gmra.mrb[184].mxu0 %vm282_vm0, %v11073_v58 }
0x12d5   : > { %10452 = vmatpush3.bf16.msra.mxu0 %v12784_v1  ;;  %10453 = vmatprep.mubr.msk.bf16.mxu0 %vm11242_vm1, %v13513_v44 }
0x12d6   : > { %10463 = vmatprep.subr.bf16.mxu0 %v13513_v44 }
0x12dc   : > { %10454 = vmatmul.mubr.msk.bf16.vlgmr.msra.gmra.mrb[188].mxu0 %vm282_vm0, %v11074_v55 }
0x12dd   : > { %10464 = vmatpush3.bf16.msra.mxu0 %v12784_v1  ;;  %10465 = vmatprep.mubr.msk.bf16.mxu0 %vm11242_vm1, %v13513_v44 }
0x12de   : > { %10475 = vmatprep.subr.bf16.mxu0 %v13513_v44 }
0x12e4   : > { %10466 = vmatmul.mubr.msk.bf16.vlgmr.msra.gmra.mrb[192].mxu0 %vm282_vm0, %v11075_v63 }
0x12e5   : > { %10476 = vmatpush3.bf16.msra.mxu0 %v12784_v1  ;;  %10477 = vmatprep.mubr.msk.bf16.mxu0 %vm11242_vm1, %v13513_v44 }
0x12e6   : > { %10487 = vmatprep.subr.bf16.mxu0 %v13513_v44 }
0x12ec   : > { %10478 = vmatmul.mubr.msk.bf16.vlgmr.msra.gmra.mrb[196].mxu0 %vm282_vm0, %v11076_v2 }
0x12ed   : > { %10488 = vmatpush3.bf16.msra.mxu0 %v12784_v1  ;;  %10489 = vmatprep.mubr.msk.bf16.mxu0 %vm11242_vm1, %v13513_v44 }
0x12f4   : > { %10490 = vmatmul.mubr.msk.bf16.vlgmr.msra.gmra.mrb[200].mxu0 %vm282_vm0, %v11078_v16 }
0x130a   : > { %v5794_v5 = vpop.f32.mrb[164].mxu1 }
0x130b   : > { %v10377_v14 = vpop.f32.mrb[165].mxu1 }
0x130c   : > { %v5797_v17 = vpop.f32.mrb[166].mxu1 }
0x130d   : > { %v10378_v50 = vpop.f32.mrb[167].mxu1 }
0x137f   : > { %v9683_v33 = vpop.f32.mrb[164].mxu0 }
0x1380   : > { %v9684_v42 = vpop.f32.mrb[165].mxu0 }
0x1381   : > { %v9685_v43 = vadd.f32 %v9684_v42, %v9683_v33  ;;  %v9686_v18 = vpop.f32.mrb[166].mxu0 }
0x1382   : > { %v9687_v11 = vpop.f32.mrb[167].mxu0 }
0x1383   : > { %v5754_v19 = vadd.f32 %v9685_v43, %v9100_v39  ;;  %v9688_v0 = vadd.f32 %v9687_v11, %v9686_v18  ;;  %v5861_v11 = vpop.permute.xlu0 %5860 }
0x1385   : > { %v5795_v4 = vadd.f32 %v5794_v5, %v5754_v19  ;;  %v5757_v59 = vadd.f32 %v9688_v0, %v9100_v39 }
0x1387   : > { %v5798_v12 = vadd.f32 %v5797_v17, %v5757_v59  ;;  %v5801_v51 = vmax.f32 %v5795_v4, 0.0  ;;  %v6029_v13 = vpop.f32.mrb[168].mxu0 }
0x1388   : > { %v10395_v23 = vpop.f32.mrb[169].mxu0 }
0x1389   : > { %v5802_v25 = vmax.f32 %v5798_v12, 0.0  ;;  %v6032_v37 = vpop.f32.mrb[170].mxu0  ;;  %v11089_v23 = vld [vmem:[%s13476_s1 + $0x70] sm:$0xff]  }
0x138a   : > { %v10850_v15 = vpack.i.bf16 %v6032_v37, %v6029_v13  ;;  %v10396_v7 = vpop.f32.mrb[171].mxu0  ;;  %v11088_v13 = vld [vmem:[%s13476_s1 + $0x60] sm:$0xff]  }
0x138b   : > { %v5803_v32 = vpack.c.bf16 %v5802_v25, %v5801_v51  ;;  %v12898_v25 = vld [vmem:[%s13476_s1] sm:$0xff]  }
0x138c   : > { %v11091_v37 = vld [vmem:[%s13478_s3 + $0x40] sm:$0xff]  }
0x138d   : > { %v5815_v61 = vsel %vm382_vm2, %v5803_v32, 0  ;;  %v12909_v32 = vld [vmem:[%s13476_s1 + $0x10] sm:$0xff]   ;;  %v11092_v7 = vld [vmem:[%s13478_s3] sm:$0xff]  }
0x138e   : > { %10380 = vmatpush3.bf16.xpose.msra.mxu1 %v5815_v61  ;;  %v12920_v61 = vld [vmem:[%s13476_s1 + $0x20] sm:$0xff]  }
0x138f   : > { %5880 = vmatprep.subr.bf16.mxu1 %v11081_v45  ;;  %v6131_v30 = vpop.f32.mrb[172].mxu0  ;;  %v12942_v45 = vld [vmem:[%s13476_s1 + $0x40] sm:$0xff]  }
0x1390   : > { %v10407_v40 = vpop.f32.mrb[173].mxu0 }
0x1391   : > { %v6134_v56 = vpop.f32.mrb[174].mxu0  ;;  %v11095_v40 = vld [vmem:[%s13478_s3 + $0x50] sm:$0xff]  }
0x1392   : > { %v10845_v10 = vpack.i.bf16 %v6134_v56, %v6131_v30  ;;  %v10408_v41 = vpop.f32.mrb[175].mxu0  ;;  %v11093_v30 = vld [vmem:[%s13478_s3 + $0x48] sm:$0xff]   ;;  %v11096_v56 = vld [vmem:[%s13478_s3 + $0x10] sm:$0xff]  }
0x1393   : > { %v11098_v41 = vld [vmem:[%s13478_s3 + $0x18] sm:$0xff]  }
0x1394   : > { %10846 = vrot.lane.b32.xlu0 %v10845_v10, %s11244_s16  ;;  %v11097_v10 = vld [vmem:[%s13478_s3 + $0x58] sm:$0xff]  }
0x1395   : > { %10382 = vmatmul.mubr.msk.bf16.vlgmr.msra.gmra.mrb[168].mxu1 %vm382_vm2, %v11077_v54  ;;  %v12931_v54 = vld [vmem:[%s13476_s1 + $0x30] sm:$0xff]  }
0x1396   : > { %5912 = vmatprep.mubr.bf16.mxu1 %v11246_v53  ;;  %5881 = vmatpush1.bf16.msra.mxu1 %v11079_v60  ;;  %v11087_v60 = vld [vmem:[%s13476_s1 + $0x50] sm:$0xff]  }
0x1397   : > { %10385 = vmatprep.subr.bf16.mxu1 %v13513_v44  ;;  %v6233_v20 = vpop.f32.mrb[176].mxu0 }
0x1398   : > { %v10419_v21 = vpop.f32.mrb[177].mxu0 }
0x1399   : > { %v6236_v3 = vpop.f32.mrb[178].mxu0  ;;  %v11100_v21 = vld [vmem:[%s13478_s3 + $0xc0] sm:$0xff]  }
0x139a   : > { %v10840_v9 = vpack.i.bf16 %v6236_v3, %v6233_v20  ;;  %v10420_v35 = vpop.f32.mrb[179].mxu0  ;;  %v11099_v20 = vld [vmem:[%s13478_s3 + $0x60] sm:$0xff]   ;;  %9752 = vmatprep.subr.bf16.mxu0 %v11100_v21  ;;  %v11122_v21 = vld [vmem:[%s13478_s3 + $0x108] sm:$0xff]  }
0x139b   : > { %v11101_v3 = vld [vmem:[%s13478_s3 + $0x20] sm:$0xff]   ;;  %v11103_v35 = vld [vmem:[%s13478_s3 + $0x68] sm:$0xff]  }
0x139f   : > { %v6335_v22 = vpop.f32.mrb[180].mxu0 }
0x13a0   : > { %v10431_v26 = vpop.f32.mrb[181].mxu0 }
0x13a1   : > { %v6338_v28 = vpop.f32.mrb[182].mxu0  ;;  %v11105_v26 = vld [vmem:[%s13478_s3 + $0x88] sm:$0xff]  }
0x13a2   : > { %v10835_v31 = vpack.i.bf16 %v6338_v28, %v6335_v22  ;;  %v10432_v27 = vpop.f32.mrb[183].mxu0  ;;  %v11104_v22 = vld [vmem:[%s13478_s3 + $0xc8] sm:$0xff]  }
0x13a3   : > { %v11106_v28 = vld [vmem:[%s13478_s3 + $0x28] sm:$0xff]   ;;  %v11108_v27 = vld [vmem:[%s13478_s3 + $0xd0] sm:$0xff]  }
0x13a4   : > { %10836 = vrot.lane.b32.xlu1 %v10835_v31, %s11244_s16  ;;  %v11107_v31 = vld [vmem:[%s13478_s3 + $0x70] sm:$0xff]  }
0x13a7   : > { %v6437_v29 = vpop.f32.mrb[184].mxu0 }
0x13a8   : > { %v10443_v47 = vpop.f32.mrb[185].mxu0  ;;  %10841 = vrot.lane.b32.xlu1 %v10840_v9, %s11244_s16  ;;  %v11102_v9 = vld [vmem:[%s13478_s3 + $0x80] sm:$0xff]  }
0x13a9   : > { %v6440_v36 = vpop.f32.mrb[186].mxu0  ;;  %9753 = vmatpush3.bf16.msra.mxu0 %v11102_v9  ;;  %v11110_v47 = vld [vmem:[%s13478_s3 + $0x90] sm:$0xff]  }
0x13aa   : > { %v10870_v48 = vpack.i.bf16 %v6440_v36, %v6437_v29  ;;  %v10444_v6 = vpop.f32.mrb[187].mxu0  ;;  %9754 = vmatprep.subr.bf16.mxu0 %v11104_v22  ;;  %v11109_v29 = vld [vmem:[%s13478_s3 + $0x30] sm:$0xff]   ;;  %v11111_v36 = vld [vmem:[%s13478_s3 + $0x78] sm:$0xff]  }
0x13ab   : > { %v11113_v6 = vld [vmem:[%s13478_s3 + $0x38] sm:$0xff]   ;;  %v11124_v22 = vld [vmem:[%s13478_s3 + $0x150] sm:$0xff]  }
0x13ac   : > { %10851 = vrot.lane.b32.xlu1 %v10850_v15, %s11244_s16  ;;  %v11090_v15 = vld [vmem:[%s13476_s1 + $0x80] sm:$0xff]  }
0x13ad   : > { %9755 = vmatpush3.bf16.msra.mxu0 %v11105_v26 }
0x13ae   : > { %9756 = vmatprep.subr.bf16.mxu0 %v11108_v27 }
0x13af   : > { %v6539_v38 = vpop.f32.mrb[188].mxu0 }
0x13b0   : > { %v10455_v8 = vpop.f32.mrb[189].mxu0 }
0x13b1   : > { %v6542_v24 = vpop.f32.mrb[190].mxu0  ;;  %9757 = vmatpush3.bf16.msra.mxu0 %v11110_v47  ;;  %v11115_v8 = vld [vmem:[%s13478_s3 + $0xe0] sm:$0xff]   ;;  %v11126_v47 = vld [vmem:[%s13478_s3 + $0x110] sm:$0xff]  }
0x13b2   : > { %v10865_v52 = vpack.i.bf16 %v6542_v24, %v6539_v38  ;;  %v10456_v46 = vpop.f32.mrb[191].mxu0  ;;  %v11114_v38 = vld [vmem:[%s13478_s3 + $0x98] sm:$0xff]   ;;  %v11116_v24 = vld [vmem:[%s13478_s3 + $0x140] sm:$0xff]  }
0x13b3   : > { %v11119_v46 = vld [vmem:[%s13478_s3 + $0xe8] sm:$0xff]  }
0x13b7   : > { %v6641_v58 = vpop.f32.mrb[192].mxu0 }
0x13b8   : > { %v10467_v55 = vpop.f32.mrb[193].mxu0 }
0x13b9   : > { %v6644_v63 = vpop.f32.mrb[194].mxu0  ;;  %v11123_v55 = vld [vmem:[%s13478_s3 + $0xf0] sm:$0xff]  }
0x13ba   : > { %v10860_v2 = vpack.i.bf16 %v6644_v63, %v6641_v58  ;;  %v10468_v5 = vpop.f32.mrb[195].mxu0  ;;  %v11121_v58 = vld [vmem:[%s13478_s3 + $0xa8] sm:$0xff]   ;;  %v11125_v63 = vld [vmem:[%s13478_s3 + $0xb0] sm:$0xff]  }
0x13bb   : > { %v11129_v5 = vld [vmem:[%s13478_s3 + $0xb8] sm:$0xff]  }
0x13bc   : > { %10861 = vrot.lane.b32.xlu1 %v10860_v2, %s11244_s16  ;;  %v11127_v2 = vld [vmem:[%s13478_s3 + $0xf8] sm:$0xff]  }
0x13bf   : > { %v6743_v14 = vpop.f32.mrb[196].mxu0 }
0x13c0   : > { %v10479_v17 = vpop.f32.mrb[197].mxu0  ;;  %10871 = vrot.lane.b32.xlu1 %v10870_v48, %s11244_s16  ;;  %v11112_v48 = vld [vmem:[%s13478_s3 + $0xd8] sm:$0xff]  }
0x13c1   : > { %v6746_v50 = vpop.f32.mrb[198].mxu0  ;;  %9758 = vmatprep.subr.bf16.mxu0 %v11112_v48 }
0x13c2   : > { %v10855_v34 = vpack.i.bf16 %v6746_v50, %v6743_v14  ;;  %v10480_v16 = vpop.f32.mrb[199].mxu0  ;;  %9759 = vmatpush3.bf16.msra.mxu0 %v11114_v38  ;;  %v11131_v14 = vld [vmem:[%s13478_s3 + $0x1c0] sm:$0xff]   ;;  %v11130_v38 = vld [vmem:[%s13478_s3 + $0x118] sm:$0xff]  }
0x13c3   : > { %9760 = vmatprep.subr.bf16.mxu0 %v11115_v8 }
0x13c4   : > { %10856 = vrot.lane.b32.xlu0 %v10855_v34, %s11244_s16 }
0x13c7   : > { %v6845_v33 = vpop.f32.mrb[200].mxu0 }
0x13c8   : > { %v10491_v39 = vpop.f32.mrb[201].mxu0  ;;  %10866 = vrot.lane.b32.xlu0 %v10865_v52, %s11244_s16  ;;  %v11117_v52 = vld [vmem:[%s13478_s3 + $0xa0] sm:$0xff]  }
0x13c9   : > { %v6848_v42 = vpop.f32.mrb[202].mxu0  ;;  %9761 = vmatpush3.bf16.msra.mxu0 %v11117_v52 }
0x13ca   : > { %v10875_v43 = vpack.i.bf16 %v6848_v42, %v6845_v33  ;;  %v10492_v18 = vpop.f32.mrb[203].mxu0  ;;  %9762 = vmatprep.subr.bf16.mxu0 %v11119_v46  ;;  %v11132_v46 = vld [vmem:[%s13478_s3 + $0x160] sm:$0xff]  }
0x13cc   : > { %10876 = vrot.lane.b32.xlu0 %v10875_v43, %s11244_s16 }
0x13cd   : > { %9763 = vmatpush3.bf16.msra.mxu0 %v11121_v58 }
0x13ce   : > { %9764 = vmatprep.subr.bf16.mxu0 %v11123_v55 }
0x13d1   : > { %9765 = vmatpush3.bf16.msra.mxu0 %v11125_v63 }
0x13d2   : > { %9766 = vmatprep.subr.bf16.mxu0 %v11127_v2 }
0x13d5   : > { %9767 = vmatpush3.bf16.msra.mxu0 %v11129_v5 }
0x13d6   : > { %9796 = vmatprep.subr.bf16.mxu0 %v11131_v14 }
0x1416   : > { %v13079_v17 = vpop.permute.xlu1 %10836 }
0x1417   : > { %v10839_v8 = vunpack.i.h.bf16 %v13079_v17 }
0x141a   : > { %v10842_v50 = vpop.permute.xlu1 %10841 }
0x141b   : > { %v10843_v9 = vunpack.i.l.bf16 %v10842_v50 }
0x141e   : > { %v10852_v42 = vpop.permute.xlu1 %10851 }
0x141f   : > { %v10854_v18 = vunpack.i.h.bf16 %v10852_v42 }
0x142e   : > { %v13114_v48 = vpop.permute.xlu1 %10861 }
0x1432   : > { %v10872_v14 = vpop.permute.xlu1 %10871 }
0x1468   : > { %v5851_v19 = vpop.f32.mrb[168].mxu1 }
0x1469   : > { %v5863_v0 = vadd.f32 %v5861_v11, %v5851_v19  ;;  %v10383_v4 = vpop.f32.mrb[169].mxu1  ;;  %v10853_v11 = vunpack.i.l.bf16 %v10852_v42 }
0x146a   : > { %v5854_v59 = vpop.f32.mrb[170].mxu1 }
0x146b   : > { %v5864_v12 = vpack.c.bf16 %v5863_v0, %v5863_v0  ;;  %v10384_v51 = vpop.f32.mrb[171].mxu1 }
0x146d   : > { %9124 = vmatmul.mubr.msk.bf16.vlgmr.msra.gmra.mrb[172].mxu1 %vm282_vm0, %v5864_v12 }
0x146e   : > { %10386 = vmatpush3.bf16.msra.mxu1 %v12784_v1  ;;  %10387 = vmatprep.mubr.msk.bf16.mxu1 %vm11242_vm1, %v13513_v44 }
0x146f   : > { %10397 = vmatprep.subr.bf16.mxu1 %v13513_v44 }
0x1475   : > { %10388 = vmatmul.mubr.msk.bf16.vlgmr.msra.gmra.mrb[176].mxu1 %vm282_vm0, %v12898_v25 }
0x1476   : > { %10398 = vmatpush3.bf16.msra.mxu1 %v12784_v1  ;;  %10399 = vmatprep.mubr.msk.bf16.mxu1 %vm11242_vm1, %v13513_v44 }
0x1477   : > { %10409 = vmatprep.subr.bf16.mxu1 %v13513_v44 }
0x147d   : > { %10400 = vmatmul.mubr.msk.bf16.vlgmr.msra.gmra.mrb[180].mxu1 %vm282_vm0, %v12909_v32 }
0x147e   : > { %10410 = vmatpush3.bf16.msra.mxu1 %v12784_v1  ;;  %10411 = vmatprep.mubr.msk.bf16.mxu1 %vm11242_vm1, %v13513_v44 }
0x147f   : > { %10421 = vmatprep.subr.bf16.mxu1 %v13513_v44 }
0x1485   : > { %10412 = vmatmul.mubr.msk.bf16.vlgmr.msra.gmra.mrb[184].mxu1 %vm282_vm0, %v12920_v61 }
0x1486   : > { %10422 = vmatpush3.bf16.msra.mxu1 %v12784_v1  ;;  %10423 = vmatprep.mubr.msk.bf16.mxu1 %vm11242_vm1, %v13513_v44 }
0x1487   : > { %10433 = vmatprep.subr.bf16.mxu1 %v13513_v44 }
0x148d   : > { %10424 = vmatmul.mubr.msk.bf16.vlgmr.msra.gmra.mrb[188].mxu1 %vm282_vm0, %v12931_v54 }
0x148e   : > { %10434 = vmatpush3.bf16.msra.mxu1 %v12784_v1  ;;  %10435 = vmatprep.mubr.msk.bf16.mxu1 %vm11242_vm1, %v13513_v44 }
0x148f   : > { %10445 = vmatprep.subr.bf16.mxu1 %v13513_v44 }
0x1495   : > { %10436 = vmatmul.mubr.msk.bf16.vlgmr.msra.gmra.mrb[192].mxu1 %vm282_vm0, %v12942_v45 }
0x1496   : > { %10446 = vmatpush3.bf16.msra.mxu1 %v12784_v1  ;;  %10447 = vmatprep.mubr.msk.bf16.mxu1 %vm11242_vm1, %v13513_v44 }
0x1497   : > { %10457 = vmatprep.subr.bf16.mxu1 %v13513_v44 }
0x149d   : > { %10448 = vmatmul.mubr.msk.bf16.vlgmr.msra.gmra.mrb[196].mxu1 %vm282_vm0, %v11087_v60  ;;  %v10847_v60 = vpop.permute.xlu0 %10846 }
0x149e   : > { %10458 = vmatpush3.bf16.msra.mxu1 %v12784_v1  ;;  %10459 = vmatprep.mubr.msk.bf16.mxu1 %vm11242_vm1, %v13513_v44 }
0x149f   : > { %10469 = vmatprep.subr.bf16.mxu1 %v13513_v44 }
0x14a5   : > { %10460 = vmatmul.mubr.msk.bf16.vlgmr.msra.gmra.mrb[200].mxu1 %vm282_vm0, %v11088_v13 }
0x14a6   : > { %10470 = vmatpush3.bf16.msra.mxu1 %v12784_v1  ;;  %10471 = vmatprep.mubr.msk.bf16.mxu1 %vm11242_vm1, %v13513_v44 }
0x14a7   : > { %10481 = vmatprep.subr.bf16.mxu1 %v13513_v44 }
0x14ad   : > { %10472 = vmatmul.mubr.msk.bf16.vlgmr.msra.gmra.mrb[204].mxu1 %vm282_vm0, %v11089_v23  ;;  %v10849_v23 = vunpack.i.h.bf16 %v10847_v60 }
0x14ae   : > { %10482 = vmatpush3.bf16.msra.mxu1 %v12784_v1  ;;  %10483 = vmatprep.mubr.msk.bf16.mxu1 %vm11242_vm1, %v13513_v44  ;;  %v11094_v1 = vld [vmem:[%s13478_s3 + $0x8] sm:$0xff]  }
0x14af   : > { %9730 = vmatprep.subr.bf16.mxu1 %v11091_v37  ;;  %v10848_v37 = vunpack.i.l.bf16 %v10847_v60 }
0x14b5   : > { %10484 = vmatmul.mubr.msk.bf16.vlgmr.msra.gmra.mrb[208].mxu1 %vm282_vm0, %v11090_v15 }
0x14b6   : > { %9731 = vmatpush3.bf16.msra.mxu1 %v11092_v7 }
0x14b7   : > { %9732 = vmatprep.subr.bf16.mxu1 %v11093_v30 }
0x14ba   : > { %9733 = vmatpush3.bf16.msra.mxu1 %v11094_v1 }
0x14bb   : > { %9734 = vmatprep.subr.bf16.mxu1 %v11095_v40 }
0x14be   : > { %9735 = vmatpush3.bf16.msra.mxu1 %v11096_v56 }
0x14bf   : > { %9736 = vmatprep.subr.bf16.mxu1 %v11097_v10  ;;  %v11118_v10 = vld [vmem:[%s13478_s3 + $0x100] sm:$0xff]  }
0x14c2   : > { %9737 = vmatpush3.bf16.msra.mxu1 %v11098_v41  ;;  %v11120_v41 = vld [vmem:[%s13478_s3 + $0x148] sm:$0xff]  }
0x14c3   : > { %9738 = vmatprep.subr.bf16.mxu1 %v11099_v20 }
0x14c6   : > { %9739 = vmatpush3.bf16.msra.mxu1 %v11101_v3  ;;  %v10844_v3 = vunpack.i.h.bf16 %v10842_v50  ;;  %v11133_v50 = vld [vmem:[%s13478_s3 + $0x120] sm:$0xff]  }
0x14c7   : > { %9740 = vmatprep.subr.bf16.mxu1 %v11103_v35 }
0x14ca   : > { %9741 = vmatpush3.bf16.msra.mxu1 %v11106_v28 }
0x14cb   : > { %9742 = vmatprep.subr.bf16.mxu1 %v11107_v31 }
0x14ce   : > { %9743 = vmatpush3.bf16.msra.mxu1 %v11109_v29 }
0x14cf   : > { %9744 = vmatprep.subr.bf16.mxu1 %v11111_v36  ;;  %v11128_v36 = vld [vmem:[%s13478_s3 + $0x158] sm:$0xff]  }
0x14d2   : > { %9745 = vmatpush3.bf16.msra.mxu1 %v11113_v6 }
0x14d3   : > { %9774 = vmatprep.subr.bf16.mxu1 %v11116_v24  ;;  %v10838_v24 = vunpack.i.l.bf16 %v13079_v17  ;;  %v11134_v17 = vld [vmem:[%s13478_s3 + $0x180] sm:$0xff]  }
0x1540   : > { %v5914_v34 = vpop.f32.mrb[172].mxu1 }
0x1541   : > { %5921 = vst [vmem:[%s13086_s20] sm:$0xff] %v5914_v34  ;;  %v5916_v16 = vpop.f32.mrb[173].mxu1  ;;  %v11135_v34 = vld [vmem:[%s13478_s3 + $0x168] sm:$0xff]  }
0x1542   : > { %5922 = vst [vmem:[%s13086_s20 + $0x8] sm:$0xff] %v5916_v16  ;;  %v5918_v33 = vpop.f32.mrb[174].mxu1  ;;  %v11136_v16 = vld [vmem:[%s13478_s3 + $0x1c8] sm:$0xff]  }
0x1543   : > { %v5919_v39 = vpop.f32.mrb[175].mxu1  ;;  %v13138_v33 = vpop.permute.xlu0 %10856 }
0x1544   : > { %v10873_v39 = vunpack.i.l.bf16 %v10872_v14 }
0x1548   : > { %v5978_v43 = vpop.f32.mrb[176].mxu1 }
0x1549   : > { %v10389_v19 = vpop.f32.mrb[177].mxu1  ;;  %v6916_v4 = vsel %vm942_vm3, %v5978_v43, %v10853_v11  ;;  %v11137_v43 = vld [vmem:[%s13478_s3 + $0x128] sm:$0xff]   ;;  %v10874_v11 = vunpack.i.h.bf16 %v10872_v14 }
0x154a   : > { %v5981_v0 = vpop.f32.mrb[178].mxu1 }
0x154b   : > { %v6917_v59 = vsel %vm942_vm3, %v5981_v0, %v10854_v18  ;;  %v10390_v12 = vpop.f32.mrb[179].mxu1  ;;  %v11138_v18 = vld [vmem:[%s13478_s3 + $0x188] sm:$0xff]   ;;  %v11139_v0 = vld [vmem:[%s13478_s3 + $0x170] sm:$0xff]  }
0x154c   : > { %v6942_v51 = vpack.c.bf16 %v6917_v59, %v6916_v4  ;;  %v11140_v4 = vld [vmem:[%s13478_s3 + $0x1d0] sm:$0xff]  }
0x1550   : > { %v6080_v13 = vpop.f32.mrb[180].mxu1 }
0x1551   : > { %v10401_v15 = vpop.f32.mrb[181].mxu1  ;;  %v6918_v30 = vsel %vm942_vm3, %v6080_v13, %v10848_v37  ;;  %v11141_v37 = vld [vmem:[%s13478_s3 + $0x130] sm:$0xff]  }
0x1552   : > { %v6083_v7 = vpop.f32.mrb[182].mxu1  ;;  %v11142_v15 = vld [vmem:[%s13478_s3 + $0x190] sm:$0xff]  }
0x1553   : > { %v6919_v1 = vsel %vm942_vm3, %v6083_v7, %v10849_v23  ;;  %v10402_v40 = vpop.f32.mrb[183].mxu1  ;;  %v10867_v23 = vpop.permute.xlu0 %10866  ;;  %v11143_v7 = vld [vmem:[%s13478_s3 + $0x178] sm:$0xff]  }
0x1554   : > { %v6943_v56 = vpack.c.bf16 %v6919_v1, %v6918_v30  ;;  %v11144_v30 = vld [vmem:[%s13478_s3 + $0x1d8] sm:$0xff]   ;;  %v10868_v1 = vunpack.i.l.bf16 %v10867_v23 }
0x1556   : > { %7564 = vmatprep.mubr.bf16.mxu1 %v6943_v56  ;;  %v11145_v56 = vld [vmem:[%s13478_s3 + $0x138] sm:$0xff]  }
0x1557   : > { %7565 = vmatmul.mubr.bf16.vlgmr.msra.gmra.mrb[212].mxu1 %v6942_v51 }
0x1558   : > { %9775 = vmatpush3.bf16.msra.mxu1 %v11118_v10  ;;  %v6182_v20 = vpop.f32.mrb[184].mxu1  ;;  %v11146_v10 = vld [vmem:[%s13478_s3 + $0x198] sm:$0xff]  }
0x1559   : > { %v10413_v35 = vpop.f32.mrb[185].mxu1  ;;  %9776 = vmatprep.subr.bf16.mxu1 %v11120_v41  ;;  %v6920_v28 = vsel %vm942_vm3, %v6182_v20, %v10843_v9  ;;  %v10869_v41 = vunpack.i.h.bf16 %v10867_v23  ;;  %v11161_v23 = vld [vmem:[%s13478_s3 + $0x228] sm:$0xff]  }
0x155a   : > { %v6185_v26 = vpop.f32.mrb[186].mxu1 }
0x155b   : > { %v6921_v31 = vsel %vm942_vm3, %v6185_v26, %v10844_v3  ;;  %v10414_v27 = vpop.f32.mrb[187].mxu1 }
0x155c   : > { %v6944_v29 = vpack.c.bf16 %v6921_v31, %v6920_v28  ;;  %9777 = vmatpush3.bf16.msra.mxu1 %v11122_v21  ;;  %v11147_v21 = vld [vmem:[%s13478_s3 + $0x1e0] sm:$0xff]   ;;  %v11150_v27 = vld [vmem:[%s13478_s3 + $0x1e8] sm:$0xff]  }
0x155d   : > { %9778 = vmatprep.subr.bf16.mxu1 %v11124_v22  ;;  %v11148_v28 = vld [vmem:[%s13478_s3 + $0x1a0] sm:$0xff]  }
0x155e   : > { %v11149_v31 = vld [vmem:[%s13478_s3 + $0x200] sm:$0xff]  }
0x1560   : > { %9779 = vmatpush3.bf16.msra.mxu1 %v11126_v47  ;;  %v6284_v6 = vpop.f32.mrb[188].mxu1 }
0x1561   : > { %v10425_v52 = vpop.f32.mrb[189].mxu1  ;;  %9780 = vmatprep.subr.bf16.mxu1 %v11128_v36  ;;  %v6922_v55 = vsel %vm942_vm3, %v6284_v6, %v10838_v24  ;;  %v11151_v36 = vld [vmem:[%s13478_s3 + $0x1a8] sm:$0xff]  }
0x1562   : > { %v6287_v58 = vpop.f32.mrb[190].mxu1  ;;  %v11152_v6 = vld [vmem:[%s13478_s3 + $0x208] sm:$0xff]   ;;  %v11153_v52 = vld [vmem:[%s13478_s3 + $0x1f0] sm:$0xff]  }
0x1563   : > { %v6923_v63 = vsel %vm942_vm3, %v6287_v58, %v10839_v8  ;;  %v10426_v2 = vpop.f32.mrb[191].mxu1  ;;  %v10864_v8 = vunpack.i.h.bf16 %v13114_v48 }
0x1564   : > { %v6945_v5 = vpack.c.bf16 %v6923_v63, %v6922_v55  ;;  %9781 = vmatpush3.bf16.msra.mxu1 %v11130_v38  ;;  %v7743_v38 = vrot.slane %v12787_v49, 4 }
0x1565   : > { %9782 = vmatprep.subr.bf16.mxu1 %v11132_v46 }
0x1566   : > { %7605 = vmatprep.mubr.bf16.mxu0 %v6945_v5  ;;  %v11155_v5 = vld [vmem:[%s13478_s3 + $0x210] sm:$0xff]   ;;  %v7744_v14 = vadd.f32 %v7743_v38, %v12787_v49  ;;  %v11158_v49 = vld [vmem:[%s13478_s3 + $0x218] sm:$0xff]  }
0x1567   : > { %7606 = vmatmul.mubr.bf16.vlgmr.msra.gmra.mrb[204].mxu0 %v6944_v29  ;;  %v10863_v29 = vunpack.i.l.bf16 %v13114_v48  ;;  %v11154_v48 = vld [vmem:[%s13478_s3 + $0x1b0] sm:$0xff]  }
0x1568   : > { %9783 = vmatpush3.bf16.msra.mxu1 %v11133_v50  ;;  %9797 = vmatpush3.bf16.msra.mxu0 %v11134_v17  ;;  %v6386_v42 = vpop.f32.mrb[192].mxu1  ;;  %v11156_v50 = vld [vmem:[%s13478_s3 + $0x1f8] sm:$0xff]   ;;  %v10858_v17 = vunpack.i.l.bf16 %v13138_v33 }
0x1569   : > { %v10437_v19 = vpop.f32.mrb[193].mxu1  ;;  %9784 = vmatprep.subr.bf16.mxu1 %v11135_v34  ;;  %9798 = vmatprep.subr.bf16.mxu0 %v11136_v16  ;;  %v6924_v12 = vsel %vm942_vm3, %v6386_v42, %v10873_v39  ;;  %v11157_v16 = vld [vmem:[%s13478_s3 + $0x1b8] sm:$0xff]   ;;  %v7745_v39 = vrot.slane %v7744_v14, 2  ;;  %v10859_v42 = vunpack.i.h.bf16 %v13138_v33  ;;  %v11160_v33 = vld [vmem:[%s13479_s4 + $0x90] sm:$0xff]  }
0x156a   : > { %v6389_v59 = vpop.f32.mrb[194].mxu1 }
0x156b   : > { %v6925_v51 = vsel %vm942_vm3, %v6389_v59, %v10874_v11  ;;  %v10438_v60 = vpop.f32.mrb[195].mxu1  ;;  %v10877_v11 = vpop.permute.xlu0 %10876 }
0x156c   : > { %v6946_v13 = vpack.c.bf16 %v6925_v51, %v6924_v12  ;;  %9785 = vmatpush3.bf16.msra.mxu1 %v11137_v43  ;;  %9799 = vmatpush3.bf16.msra.mxu0 %v11138_v18  ;;  %v11159_v12 = vld [vmem:[%s13478_s3 + $0x220] sm:$0xff]   ;;  %v7746_v51 = vadd.f32 %v7745_v39, %v7744_v14  ;;  %v10878_v60 = vunpack.i.l.bf16 %v10877_v11 }
0x156d   : > { %9786 = vmatprep.subr.bf16.mxu1 %v11139_v0  ;;  %9800 = vmatprep.subr.bf16.mxu0 %v11140_v4 }
0x1570   : > { %9787 = vmatpush3.bf16.msra.mxu1 %v11141_v37  ;;  %9801 = vmatpush3.bf16.msra.mxu0 %v11142_v15  ;;  %v6488_v40 = vpop.f32.mrb[196].mxu1  ;;  %v11162_v37 = vld [vmem:[%s13479_s4 + $0x98] sm:$0xff]  }
0x1571   : > { %v10449_v20 = vpop.f32.mrb[197].mxu1  ;;  %9788 = vmatprep.subr.bf16.mxu1 %v11143_v7  ;;  %9802 = vmatprep.subr.bf16.mxu0 %v11144_v30  ;;  %v6926_v9 = vsel %vm942_vm3, %v6488_v40, %v10868_v1  ;;  %v7747_v7 = vrot.slane %v7746_v51, 1 }
0x1572   : > { %v6491_v3 = vpop.f32.mrb[198].mxu1  ;;  %v11164_v20 = vld [vmem:[%s13479_s4 + $0xa0] sm:$0xff]  }
0x1573   : > { %v6927_v35 = vsel %vm942_vm3, %v6491_v3, %v10869_v41  ;;  %v10450_v22 = vpop.f32.mrb[199].mxu1  ;;  %v11163_v41 = vld [vmem:[%s13478_s3 + $0x230] sm:$0xff]   ;;  %v7748_v3 = vadd.f32 %v7747_v7, %v7746_v51  ;;  %v7759_v51 = vld [vmem:[%s13480_s5 + $0x8] sm:$0x1] }
0x1574   : > { %v6947_v26 = vpack.c.bf16 %v6927_v35, %v6926_v9  ;;  %9789 = vmatpush3.bf16.msra.mxu1 %v11145_v56  ;;  %9803 = vmatpush3.bf16.msra.mxu0 %v11146_v10  ;;  %v11165_v9 = vld [vmem:[%s13478_s3 + $0x238] sm:$0xff]   ;;  %v11166_v35 = vld [vmem:[%s13479_s4 + $0xa8] sm:$0xff]  }
0x1575   : > { %9804 = vmatprep.subr.bf16.mxu0 %v11147_v21  ;;  %10493 = vmatprep.subr.bf16.mxu1 %v13513_v44  ;;  %v7749_v22 = vmul.f32 0.0625, %v7748_v3 }
0x1576   : > { %7646 = vmatprep.mubr.bf16.mxu1 %v6947_v26 }
0x1577   : > { %7647 = vmatmul.mubr.bf16.vlgmr.msra.gmra.mrb[216].mxu1 %v6946_v13  ;;  %v10879_v13 = vunpack.i.h.bf16 %v10877_v11  ;;  %v7750_v26 = vpack.c.bf16 %v7749_v22, %v7749_v22  ;;  %v11170_v22 = vld [vmem:[%s13479_s4 + $0xb8] sm:$0xff]  }
0x1578   : > { %9805 = vmatpush3.bf16.msra.mxu0 %v11148_v28  ;;  %10494 = vmatpush3.bf16.msra.mxu1 %v11149_v31  ;;  %v6590_v47 = vpop.f32.mrb[200].mxu1  ;;  %v11167_v28 = vld [vmem:[%s13479_s4 + $0xe0] sm:$0xff]   ;;  %v11168_v31 = vld [vmem:[%s13479_s4 + $0xe8] sm:$0xff]  }
0x1579   : > { %v10461_v24 = vpop.f32.mrb[201].mxu1  ;;  %9806 = vmatprep.subr.bf16.mxu0 %v11150_v27  ;;  %10495 = vmatprep.subr.bf16.mxu1 %v13513_v44  ;;  %v6928_v58 = vsel %vm942_vm3, %v6590_v47, %v10863_v29 }
0x157a   : > { %v6593_v46 = vpop.f32.mrb[202].mxu1  ;;  %10509 = vmatprep.mubr.msk.bf16.mxu1 %vm11242_vm1, %v13513_v44 }
0x157b   : > { %v6929_v55 = vsel %vm942_vm3, %v6593_v46, %v10864_v8  ;;  %v10462_v63 = vpop.f32.mrb[203].mxu1  ;;  %v9195_v8 = vld [vmem:[%s13480_s5 + $0x7] ss:$0 sm:$0xff] }
0x157c   : > { %v6948_v2 = vpack.c.bf16 %v6929_v55, %v6928_v58  ;;  %9807 = vmatpush3.bf16.msra.mxu0 %v11151_v36  ;;  %10496 = vmatpush3.bf16.msra.mxu1 %v11152_v6 }
0x157d   : > { %9808 = vmatprep.subr.bf16.mxu0 %v11153_v52  ;;  %10497 = vmatprep.subr.bf16.mxu1 %v13513_v44 }
0x1580   : > { %9809 = vmatpush3.bf16.msra.mxu0 %v11154_v48  ;;  %10498 = vmatpush3.bf16.msra.mxu1 %v11155_v5  ;;  %v6692_v34 = vpop.f32.mrb[204].mxu1 }
0x1581   : > { %v10473_v43 = vpop.f32.mrb[205].mxu1  ;;  %9810 = vmatprep.subr.bf16.mxu0 %v11156_v50  ;;  %10499 = vmatprep.subr.bf16.mxu1 %v13513_v44  ;;  %v6930_v19 = vsel %vm942_vm3, %v6692_v34, %v10858_v17 }
0x1582   : > { %v6695_v18 = vpop.f32.mrb[206].mxu1 }
0x1583   : > { %v6931_v0 = vsel %vm942_vm3, %v6695_v18, %v10859_v42  ;;  %v10474_v4 = vpop.f32.mrb[207].mxu1 }
0x1584   : > { %v6949_v59 = vpack.c.bf16 %v6931_v0, %v6930_v19  ;;  %9811 = vmatpush3.bf16.msra.mxu0 %v11157_v16  ;;  %10500 = vmatpush3.bf16.msra.mxu1 %v11158_v49 }
0x1585   : > { %10501 = vmatprep.subr.bf16.mxu1 %v13513_v44  ;;  %10513 = vmatprep.subr.bf16.mxu0 %v13513_v44 }
0x1586   : > { %7687 = vmatprep.mubr.bf16.mxu0 %v6949_v59 }
0x1587   : > { %7688 = vmatmul.mubr.bf16.vlgmr.msra.gmra.mrb[208].mxu0 %v6948_v2 }
0x1588   : > { %10502 = vmatpush3.bf16.msra.mxu1 %v11159_v12  ;;  %10514 = vmatpush3.bf16.msra.mxu0 %v11160_v33  ;;  %v6794_v15 = vpop.f32.mrb[208].mxu1 }
0x1589   : > { %10503 = vmatprep.subr.bf16.mxu1 %v13513_v44  ;;  %10515 = vmatprep.subr.bf16.mxu0 %v13513_v44  ;;  %v6940_v30 = vsel %vm942_vm3, %v6794_v15, %v10878_v60  ;;  %v10485_v1 = vpop.f32.mrb[209].mxu1 }
0x158a   : > { %v6797_v40 = vpop.f32.mrb[210].mxu1  ;;  %10521 = vmatprep.mubr.msk.bf16.mxu0 %vm11242_vm1, %v13513_v44 }
0x158b   : > { %v6941_v56 = vsel %vm942_vm3, %v6797_v40, %v10879_v13  ;;  %v10486_v10 = vpop.f32.mrb[211].mxu1 }
0x158c   : > { %10504 = vmatpush3.bf16.msra.mxu1 %v11161_v23  ;;  %10516 = vmatpush3.bf16.msra.mxu0 %v11162_v37  ;;  %v6950_v21 = vpack.c.bf16 %v6941_v56, %v6940_v30 }
0x158d   : > { %10505 = vmatprep.subr.bf16.mxu1 %v13513_v44  ;;  %10517 = vmatprep.subr.bf16.mxu0 %v13513_v44 }
0x1590   : > { %10506 = vmatpush3.bf16.msra.mxu1 %v11163_v41  ;;  %10518 = vmatpush3.bf16.msra.mxu0 %v11164_v20  ;;  %v11169_v20 = vld [vmem:[%s13479_s4 + $0xb0] sm:$0xff]  }
0x1591   : > { %10507 = vmatprep.subr.bf16.mxu1 %v13513_v44  ;;  %10519 = vmatprep.subr.bf16.mxu0 %v13513_v44 }
0x1594   : > { %10508 = vmatpush3.bf16.msra.mxu1 %v11165_v9  ;;  %10520 = vmatpush3.bf16.msra.mxu0 %v11166_v35 }
0x1595   : > { %10525 = vmatprep.subr.bf16.mxu0 %v13513_v44  ;;  %10549 = vmatprep.subr.bf16.mxu1 %v13513_v44 }
0x1597   : > { %10510 = vmatmul.mubr.bf16.vlgmr.msra.gmra.mrb[220].mxu1 %v6950_v21  ;;  %10522 = vmatmul.mubr.msk.bf16.vlgmr.msra.gmra.mrb[212].mxu0 %vm942_vm3, %v7750_v26  ;;  %v11171_v26 = vld [vmem:[%s13479_s4 + $0xc0] sm:$0xff]  }
0x1598   : > { %10529 = vmatprep.mubr.msk.bf16.mxu0 %vm11242_vm1, %v13513_v44  ;;  %10551 = vmatprep.mubr.msk.bf16.mxu1 %vm11242_vm1, %v13513_v44 }
0x1599   : > { %10526 = vmatpush3.bf16.msra.mxu0 %v11167_v28  ;;  %v11172_v28 = vld [vmem:[%s13479_s4 + $0xc8] sm:$0xff]  }
0x159a   : > { %10527 = vmatprep.subr.bf16.mxu0 %v13513_v44 }
0x159d   : > { %10528 = vmatpush3.bf16.msra.mxu0 %v11168_v31  ;;  %v11173_v31 = vld [vmem:[%s13479_s4 + $0xd0] sm:$0xff]  }
0x159e   : > { %10533 = vmatprep.subr.bf16.mxu0 %v13513_v44 }
0x162a   : > { %v9746_v27 = vpop.f32.mrb[212].mxu1 }
0x162b   : > { %v9747_v29 = vpop.f32.mrb[213].mxu1 }
0x162c   : > { %v9748_v47 = vadd.f32 %v9747_v29, %v9746_v27  ;;  %v9749_v36 = vpop.f32.mrb[214].mxu1  ;;  %v11174_v27 = vld [vmem:[%s13479_s4 + $0xd8] sm:$0xff]  }
0x162d   : > { %v9750_v6 = vpop.f32.mrb[215].mxu1 }
0x162e   : > { %v9751_v38 = vadd.f32 %v9750_v6, %v9749_v36  ;;  %v7567_v46 = vadd.f32 %v9748_v47, %v9195_v8 }
0x1630   : > { %v7570_v2 = vadd.f32 %v9751_v38, %v9195_v8  ;;  %v7833_v38 = vld [vmem:[%s13480_s5 + $0x9] sm:$0x1] }
0x163a   : > { %v9768_v24 = vpop.f32.mrb[204].mxu0 }
0x163b   : > { %v9769_v52 = vpop.f32.mrb[205].mxu0 }
0x163c   : > { %v9770_v58 = vadd.f32 %v9769_v52, %v9768_v24  ;;  %v9771_v55 = vpop.f32.mrb[206].mxu0 }
0x163d   : > { %v9772_v63 = vpop.f32.mrb[207].mxu0 }
0x163e   : > { %v7608_v48 = vadd.f32 %v9770_v58, %v7567_v46  ;;  %v9773_v5 = vadd.f32 %v9772_v63, %v9771_v55 }
0x1640   : > { %v7611_v14 = vadd.f32 %v9773_v5, %v7570_v2 }
0x164a   : > { %v9790_v50 = vpop.f32.mrb[216].mxu1 }
0x164b   : > { %v9791_v17 = vpop.f32.mrb[217].mxu1 }
0x164c   : > { %v9792_v34 = vadd.f32 %v9791_v17, %v9790_v50  ;;  %v9793_v16 = vpop.f32.mrb[218].mxu1  ;;  %v11232_v50 = vld [vmem:[%s13476_s1 + $0x38] sm:$0xff]  }
0x164d   : > { %v9794_v49 = vpop.f32.mrb[219].mxu1 }
0x164e   : > { %v7649_v39 = vadd.f32 %v9792_v34, %v7608_v48  ;;  %v9795_v42 = vadd.f32 %v9794_v49, %v9793_v16 }
0x1650   : > { %v7652_v43 = vadd.f32 %v9795_v42, %v7611_v14 }
0x165a   : > { %v9812_v18 = vpop.f32.mrb[208].mxu0 }
0x165b   : > { %v9813_v11 = vpop.f32.mrb[209].mxu0 }
0x165c   : > { %v9814_v19 = vadd.f32 %v9813_v11, %v9812_v18  ;;  %v9815_v0 = vpop.f32.mrb[210].mxu0  ;;  %v11178_v11 = vld [vmem:[%s13479_s4 + $0x8] sm:$0xff]  }
0x165d   : > { %v9816_v4 = vpop.f32.mrb[211].mxu0 }
0x165e   : > { %v9817_v59 = vadd.f32 %v9816_v4, %v9815_v0  ;;  %v7690_v12 = vadd.f32 %v9814_v19, %v7649_v39  ;;  %v11176_v39 = vld [vmem:[%s13479_s4] sm:$0xff]  }
0x1660   : > { %v7693_v33 = vadd.f32 %v9817_v59, %v7652_v43 }
0x166a   : > { %v7730_v60 = vpop.f32.mrb[220].mxu1  ;;  %v7821_v13 = vpop.f32.mrb[212].mxu0 }
0x166b   : > { %v7731_v23 = vadd.f32 %v7730_v60, %v7690_v12  ;;  %v7822_v37 = vadd.f32 %v7821_v13, %v7759_v51  ;;  %v10511_v15 = vpop.f32.mrb[221].mxu1  ;;  %v10523_v7 = vpop.f32.mrb[213].mxu0  ;;  %v11179_v12 = vld [vmem:[%s13479_s4 + $0x50] sm:$0xff]  }
0x166c   : > { %v7733_v30 = vpop.f32.mrb[222].mxu1  ;;  %v7824_v1 = vpop.f32.mrb[214].mxu0  ;;  %v11180_v60 = vld [vmem:[%s13479_s4 + $0x10] sm:$0xff]   ;;  %v11181_v7 = vld [vmem:[%s13479_s4 + $0x58] sm:$0xff]  }
0x166d   : > { %v7827_v40 = vmax.f32 %v7822_v37, 0.0  ;;  %v7734_v56 = vadd.f32 %v7733_v30, %v7693_v33  ;;  %v10524_v10 = vpop.f32.mrb[215].mxu0  ;;  %v10512_v41 = vpop.f32.mrb[223].mxu1  ;;  %v7737_v21 = vmax.f32 %v7731_v23, 0.0  ;;  %v11182_v30 = vld [vmem:[%s13479_s4 + $0x18] sm:$0xff]   ;;  %v11183_v1 = vld [vmem:[%s13479_s4 + $0x60] sm:$0xff]  }
0x166e   : > { %v11184_v10 = vld [vmem:[%s13479_s4 + $0x20] sm:$0xff]  }
0x166f   : > { %v7828_v3 = vpack.c.bf16 %v7827_v40, %v7827_v40  ;;  %v7738_v9 = vmax.f32 %v7734_v56, 0.0 }
0x1671   : > { %v7739_v35 = vpack.c.bf16 %v7738_v9, %v7737_v21  ;;  %10530 = vmatmul.mubr.msk.bf16.vlgmr.msra.gmra.mrb[216].mxu0 %vm382_vm2, %v7828_v3  ;;  %v11185_v21 = vld [vmem:[%s13479_s4 + $0x68] sm:$0xff]  }
0x1672   : > { %10534 = vmatpush3.bf16.msra.mxu0 %v11169_v20  ;;  %10545 = vmatprep.mubr.msk.bf16.mxu0 %vm11242_vm1, %v13513_v44 }
0x1673   : > { %10535 = vmatprep.subr.bf16.mxu0 %v13513_v44 }
0x1676   : > { %10536 = vmatpush3.bf16.msra.mxu0 %v11170_v22 }
0x1677   : > { %10537 = vmatprep.subr.bf16.mxu0 %v13513_v44 }
0x167a   : > { %10538 = vmatpush3.bf16.msra.mxu0 %v11171_v26 }
0x167b   : > { %10539 = vmatprep.subr.bf16.mxu0 %v13513_v44 }
0x167e   : > { %10540 = vmatpush3.bf16.msra.mxu0 %v11172_v28 }
0x167f   : > { %10541 = vmatprep.subr.bf16.mxu0 %v13513_v44 }
0x1682   : > { %10542 = vmatpush3.bf16.msra.mxu0 %v11173_v31  ;;  %v11186_v31 = vld [vmem:[%s13479_s4 + $0x28] sm:$0xff]  }
0x1683   : > { %10543 = vmatprep.subr.bf16.mxu0 %v13513_v44 }
0x1686   : > { %10544 = vmatpush3.bf16.msra.mxu0 %v11174_v27 }
0x1687   : > { %10567 = vmatprep.subr.bf16.mxu0 %v13513_v44 }
0x1689   : > { %10546 = vmatmul.mubr.msk.bf16.vlgmr.msra.gmra.mrb[220].mxu0 %vm945_vm4, %v7739_v35 }
0x168a   : > { %10569 = vmatprep.mubr.msk.bf16.mxu0 %vm11242_vm1, %v13513_v44 }
0x1744   : > { %v7883_v29 = vpop.f32.mrb[216].mxu0 }
0x1745   : > { %v10531_v47 = vpop.f32.mrb[217].mxu0  ;;  %v7884_v8 = vadd.f32 %v7883_v29, %v7833_v38  ;;  %v11191_v38 = vld [vmem:[%s13479_s4 + $0x80] sm:$0xff]  }
0x1746   : > { %v7886_v36 = vpop.f32.mrb[218].mxu0  ;;  %v11187_v47 = vld [vmem:[%s13479_s4 + $0x70] sm:$0xff]  }
0x1747   : > { %v10532_v6 = vpop.f32.mrb[219].mxu0  ;;  %v7904_v24 = vrot.slane %v7884_v8, %v5050_v57  ;;  %v11230_v57 = vld [vmem:[%s13476_s1 + $0x8] sm:$0xff]  }
0x1748   : > { %v11188_v6 = vld [vmem:[%s13479_s4 + $0x30] sm:$0xff]  }
0x175c   : > { %v7978_v52 = vpop.f32.mrb[220].mxu0 }
0x175d   : > { %v7979_v46 = vadd.f32 %v7978_v52, %v7904_v24  ;;  %v10547_v58 = vpop.f32.mrb[221].mxu0  ;;  %v11190_v52 = vld [vmem:[%s13479_s4 + $0x38] sm:$0xff]  }
0x175e   : > { %v7981_v55 = vpop.f32.mrb[222].mxu0 }
0x175f   : > { %v7982_v63 = vadd.f32 %v7981_v55, %v7904_v24  ;;  %v10548_v2 = vpop.f32.mrb[223].mxu0  ;;  %v7985_v48 = vmax.f32 %v7979_v46, 0.0  ;;  %v11189_v24 = vld [vmem:[%s13479_s4 + $0x78] sm:$0xff]   ;;  %v11192_v46 = vld [vmem:[%s13479_s4 + $0x88] sm:$0xff]  }
0x1761   : > { %v7986_v5 = vmax.f32 %v7982_v63, 0.0 }
0x1763   : > { %v7987_v14 = vpack.c.bf16 %v7986_v5, %v7985_v48 }
0x1765   : > { %10550 = vmatpush3.bf16.msra.mxu1 %v7987_v14  ;;  %10568 = vmatpush3.bf16.msra.mxu0 %v7987_v14 }
0x1766   : > { %10555 = vmatprep.subr.bf16.mxu1 %v13513_v44  ;;  %10579 = vmatprep.subr.bf16.mxu0 %v13513_v44 }
0x1768   : > { %10552 = vmatmul.mubr.msk.bf16.vlgmr.msra.gmra.mrb[224].mxu1 %vm282_vm0, %v12898_v25  ;;  %10570 = vmatmul.mubr.msk.bf16.vlgmr.msra.gmra.mrb[224].mxu0 %vm282_vm0, %v11229_v62  ;;  %v11231_v25 = vld [vmem:[%s13476_s1 + $0x28] sm:$0xff]  }
0x1769   : > { %10556 = vmatpush3.bf16.msra.mxu1 %v7987_v14  ;;  %10580 = vmatpush3.bf16.msra.mxu0 %v7987_v14 }
0x176a   : > { %10557 = vmatprep.mubr.msk.bf16.mxu1 %vm11242_vm1, %v13513_v44  ;;  %10561 = vmatprep.subr.bf16.mxu1 %v13513_v44 }
0x176b   : > { %10581 = vmatprep.mubr.msk.bf16.mxu0 %vm11242_vm1, %v13513_v44  ;;  %10591 = vmatprep.subr.bf16.mxu0 %v13513_v44 }
0x1770   : > { %10558 = vmatmul.mubr.msk.bf16.vlgmr.msra.gmra.mrb[228].mxu1 %vm282_vm0, %v11230_v57  ;;  %10582 = vmatmul.mubr.msk.bf16.vlgmr.msra.gmra.mrb[228].mxu0 %vm282_vm0, %v11231_v25 }
0x1771   : > { %10562 = vmatpush3.bf16.msra.mxu1 %v7987_v14  ;;  %10592 = vmatpush3.bf16.msra.mxu0 %v7987_v14 }
0x1772   : > { %10563 = vmatprep.mubr.msk.bf16.mxu1 %vm11242_vm1, %v13513_v44  ;;  %10573 = vmatprep.subr.bf16.mxu1 %v13513_v44 }
0x1773   : > { %10593 = vmatprep.mubr.msk.bf16.mxu0 %vm11242_vm1, %v13513_v44 }
0x1778   : > { %10564 = vmatmul.mubr.msk.bf16.vlgmr.msra.gmra.mrb[232].mxu1 %vm282_vm0, %v12909_v32  ;;  %10594 = vmatmul.mubr.msk.bf16.vlgmr.msra.gmra.mrb[232].mxu0 %vm282_vm0, %v11232_v50 }
0x1779   : > { %10574 = vmatpush3.bf16.msra.mxu1 %v7987_v14  ;;  %10575 = vmatprep.mubr.msk.bf16.mxu1 %vm11242_vm1, %v13513_v44 }
0x177a   : > { %10585 = vmatprep.subr.bf16.mxu1 %v13513_v44 }
0x1780   : > { %10576 = vmatmul.mubr.msk.bf16.vlgmr.msra.gmra.mrb[236].mxu1 %vm282_vm0, %v12920_v61 }
0x1781   : > { %10586 = vmatpush3.bf16.msra.mxu1 %v7987_v14  ;;  %10587 = vmatprep.mubr.msk.bf16.mxu1 %vm11242_vm1, %v13513_v44 }
0x1782   : > { %10597 = vmatprep.subr.bf16.mxu1 %v13513_v44 }
0x1788   : > { %10588 = vmatmul.mubr.msk.bf16.vlgmr.msra.gmra.mrb[240].mxu1 %vm282_vm0, %v12931_v54  ;;  %v11175_v54 = vld [vmem:[%s13479_s4 + $0x40] sm:$0xff]  }
0x1789   : > { %10598 = vmatpush3.bf16.msra.mxu1 %v7987_v14  ;;  %10599 = vmatprep.mubr.msk.bf16.mxu1 %vm11242_vm1, %v13513_v44 }
0x178a   : > { %10603 = vmatprep.subr.bf16.mxu1 %v13513_v44  ;;  %9860 = vmatprep.subr.bf16.mxu0 %v11175_v54 }
0x178b   : > { %9861 = vmatpush3.bf16.msra.mxu0 %v11176_v39 }
0x1790   : > { %10600 = vmatmul.mubr.msk.bf16.vlgmr.msra.gmra.mrb[244].mxu1 %vm282_vm0, %v12942_v45  ;;  %v11177_v45 = vld [vmem:[%s13479_s4 + $0x48] sm:$0xff]  }
0x1791   : > { %10607 = vmatprep.mubr.msk.bf16.mxu1 %vm11242_vm1, %v13513_v44  ;;  %9862 = vmatprep.subr.bf16.mxu0 %v11177_v45 }
0x1792   : > { %9863 = vmatpush3.bf16.msra.mxu0 %v11178_v11  ;;  %10604 = vmatpush3.bf16.msra.mxu1 %v11191_v38 }
0x1793   : > { %9864 = vmatprep.subr.bf16.mxu0 %v11179_v12  ;;  %10605 = vmatprep.subr.bf16.mxu1 %v13513_v44 }
0x1796   : > { %9865 = vmatpush3.bf16.msra.mxu0 %v11180_v60  ;;  %10606 = vmatpush3.bf16.msra.mxu1 %v11192_v46 }
0x1797   : > { %9866 = vmatprep.subr.bf16.mxu0 %v11181_v7  ;;  %10611 = vmatprep.subr.bf16.mxu1 %v13513_v44 }
0x179a   : > { %9867 = vmatpush3.bf16.msra.mxu0 %v11182_v30 }
0x179b   : > { %9868 = vmatprep.subr.bf16.mxu0 %v11183_v1 }
0x179e   : > { %9869 = vmatpush3.bf16.msra.mxu0 %v11184_v10 }
0x179f   : > { %9870 = vmatprep.subr.bf16.mxu0 %v11185_v21 }
0x17a2   : > { %9871 = vmatpush3.bf16.msra.mxu0 %v11186_v31 }
0x17a3   : > { %9872 = vmatprep.subr.bf16.mxu0 %v11187_v47 }
0x17a6   : > { %9873 = vmatpush3.bf16.msra.mxu0 %v11188_v6 }
0x17a7   : > { %9874 = vmatprep.subr.bf16.mxu0 %v11189_v24 }
0x17aa   : > { %9875 = vmatpush3.bf16.msra.mxu0 %v11190_v52  ;;  %v11196_v52 = vld [vmem:[%s13481_s6 + $0x4] ss:$8 sps:$4 sm:$0xff]  }
0x183b   : > { %v13368_v32 = vpop.f32.mrb[224].mxu1  ;;  %v8145_v61 = vpop.f32.mrb[224].mxu0 }
0x183c   : > { %v10553_v17 = vpop.f32.mrb[225].mxu1  ;;  %v10571_v34 = vpop.f32.mrb[225].mxu0 }
0x183d   : > { %v13373_v16 = vpop.f32.mrb[226].mxu1  ;;  %v8148_v49 = vpop.f32.mrb[226].mxu0 }
0x183e   : > { %v10554_v42 = vpop.f32.mrb[227].mxu1  ;;  %v10905_v43 = vpack.i.bf16 %v8148_v49, %v8145_v61  ;;  %v10572_v18 = vpop.f32.mrb[227].mxu0 }
0x1843   : > { %v8063_v19 = vpop.f32.mrb[228].mxu1  ;;  %v8227_v0 = vpop.f32.mrb[228].mxu0 }
0x1844   : > { %v10559_v4 = vpop.f32.mrb[229].mxu1  ;;  %v10583_v59 = vpop.f32.mrb[229].mxu0 }
0x1845   : > { %v8066_v33 = vpop.f32.mrb[230].mxu1  ;;  %v8230_v51 = vpop.f32.mrb[230].mxu0 }
0x1846   : > { %v10885_v13 = vpack.i.bf16 %v8066_v33, %v8063_v19  ;;  %v10880_v23 = vpack.i.bf16 %v8230_v51, %v8227_v0  ;;  %v10560_v37 = vpop.f32.mrb[231].mxu1  ;;  %v10584_v15 = vpop.f32.mrb[231].mxu0 }
0x1848   : > { %10886 = vrot.lane.b32.xlu0 %v10885_v13, %s11243_s13  ;;  %10881 = vrot.lane.b32.xlu1 %v10880_v23, %s11243_s13 }
0x184b   : > { %v8104_v40 = vpop.f32.mrb[232].mxu1  ;;  %v8309_v56 = vpop.f32.mrb[232].mxu0 }
0x184c   : > { %v10565_v41 = vpop.f32.mrb[233].mxu1  ;;  %v10595_v20 = vpop.f32.mrb[233].mxu0 }
0x184d   : > { %v8107_v3 = vpop.f32.mrb[234].mxu1  ;;  %v8312_v9 = vpop.f32.mrb[234].mxu0 }
0x184e   : > { %v10890_v35 = vpack.i.bf16 %v8107_v3, %v8104_v40  ;;  %v10566_v22 = vpop.f32.mrb[235].mxu1  ;;  %v10900_v26 = vpack.i.bf16 %v8312_v9, %v8309_v56  ;;  %v10596_v28 = vpop.f32.mrb[235].mxu0  ;;  %v8710_v3 = vld [vmem:[%s13480_s5 + $0x10] sm:$0xff] }
0x184f   : > { %v9292_v22 = vld [vmem:[%s13480_s5 + $0xa] ss:$0 sm:$0xff] }
0x1850   : > { %10891 = vrot.lane.b32.xlu0 %v10890_v35, %s11244_s16 }
0x1853   : > { %v8186_v27 = vpop.f32.mrb[236].mxu1 }
0x1854   : > { %10906 = vrot.lane.b32.xlu0 %v10905_v43, %s11245_s17  ;;  %v10577_v29 = vpop.f32.mrb[237].mxu1 }
0x1855   : > { %v8189_v36 = vpop.f32.mrb[238].mxu1 }
0x1856   : > { %v10578_v8 = vpop.f32.mrb[239].mxu1 }
0x185b   : > { %v8268_v58 = vpop.f32.mrb[240].mxu1 }
0x185c   : > { %v10589_v55 = vpop.f32.mrb[241].mxu1 }
0x185d   : > { %v8271_v63 = vpop.f32.mrb[242].mxu1  ;;  %v11194_v55 = vld [vmem:[%s13481_s6] ss:$8 sps:$4 sm:$0xff]  }
0x185e   : > { %v10895_v2 = vpack.i.bf16 %v8271_v63, %v8268_v58  ;;  %v10590_v48 = vpop.f32.mrb[243].mxu1  ;;  %v11193_v58 = vld [vmem:[%s13479_s4 + $0xf0] sm:$0xff]  }
0x1860   : > { %10896 = vrot.lane.b32.xlu1 %v10895_v2, %s11244_s16 }
0x1863   : > { %v8350_v5 = vpop.f32.mrb[244].mxu1 }
0x1864   : > { %10901 = vrot.lane.b32.xlu1 %v10900_v26, %s11245_s17  ;;  %v10601_v14 = vpop.f32.mrb[245].mxu1 }
0x1865   : > { %v8353_v62 = vpop.f32.mrb[246].mxu1 }
0x1866   : > { %v8419_v57 = vpack.c.bf16 %v8353_v62, %v8350_v5  ;;  %v10602_v25 = vpop.f32.mrb[247].mxu1 }
0x1868   : > { %10608 = vmatmul.mubr.msk.bf16.vlgmr.msra.gmra.mrb[248].mxu1 %vm382_vm2, %v8419_v57  ;;  %8713 = vperm.xlu1 %10910, %v8710_v3  }
0x1869   : > { %10613 = vmatprep.mubr.msk.bf16.mxu1 %vm11242_vm1, %v13513_v44 }
0x18ba   : > { %v10887_v50 = vpop.permute.xlu0 %10886  ;;  %v10882_v59 = vpop.permute.xlu1 %10881 }
0x18bb   : > { %v10889_v17 = vunpack.i.h.bf16 %v10887_v50  ;;  %v10888_v34 = vunpack.i.l.bf16 %v10887_v50  ;;  %v10884_v33 = vunpack.i.h.bf16 %v10882_v59  ;;  %v10883_v51 = vunpack.i.l.bf16 %v10882_v59 }
0x18bd   : > { %v8406_v45 = vsel %vm382_vm2, %v13373_v16, %v10889_v17  ;;  %v8405_v42 = vsel %vm382_vm2, %v13368_v32, %v10888_v34  ;;  %v8412_v32 = vsel %vm382_vm2, %v8189_v36, %v10884_v33  ;;  %v8411_v23 = vsel %vm382_vm2, %v8186_v27, %v10883_v51 }
0x18c2   : > { %v10892_v61 = vpop.permute.xlu0 %10891 }
0x18c3   : > { %v10894_v54 = vunpack.i.h.bf16 %v10892_v61  ;;  %v10893_v49 = vunpack.i.l.bf16 %v10892_v61 }
0x18c5   : > { %v8408_v11 = vsel %vm942_vm3, %v8406_v45, %v10894_v54  ;;  %v8407_v19 = vsel %vm942_vm3, %v8405_v42, %v10893_v49 }
0x18c6   : > { %v10907_v39 = vpop.permute.xlu0 %10906 }
0x18c7   : > { %v10909_v43 = vunpack.i.h.bf16 %v10907_v39  ;;  %v10908_v18 = vunpack.i.l.bf16 %v10907_v39 }
0x18c9   : > { %v8410_v44 = vsel %vm945_vm4, %v8408_v11, %v10909_v43  ;;  %v8409_v0 = vsel %vm945_vm4, %v8407_v19, %v10908_v18 }
0x18ca   : > { %v8417_v4 = vpack.c.bf16 %v8410_v44, %v8409_v0 }
0x18d2   : > { %v10897_v12 = vpop.permute.xlu1 %10896 }
0x18d3   : > { %v10899_v60 = vunpack.i.h.bf16 %v10897_v12  ;;  %v10898_v16 = vunpack.i.l.bf16 %v10897_v12 }
0x18d5   : > { %v8413_v7 = vsel %vm942_vm3, %v8411_v23, %v10898_v16  ;;  %v8414_v30 = vsel %vm942_vm3, %v8412_v32, %v10899_v60 }
0x18d6   : > { %v10902_v13 = vpop.permute.xlu1 %10901 }
0x18d7   : > { %v10904_v37 = vunpack.i.h.bf16 %v10902_v13  ;;  %v10903_v15 = vunpack.i.l.bf16 %v10902_v13 }
0x18d9   : > { %v8415_v1 = vsel %vm945_vm4, %v8413_v7, %v10903_v15  ;;  %v8416_v40 = vsel %vm945_vm4, %v8414_v30, %v10904_v37 }
0x18da   : > { %v8418_v56 = vpack.c.bf16 %v8416_v40, %v8415_v1 }
0x18dc   : > { %8604 = vmatprep.mubr.bf16.mxu0 %v8418_v56 }
0x18dd   : > { %8605 = vmatmul.mubr.bf16.vlgmr.msra.gmra.mrb[236].mxu0 %v8417_v4 }
0x18e7   : > { %v8714_v63 = vpop.permute.xlu1 %8713 }
0x193b   : > { %v8647_v10 = vpop.f32.mrb[248].mxu1 }
0x193c   : > { %v10609_v41 = vpop.f32.mrb[249].mxu1 }
0x193d   : > { %v8650_v20 = vpop.f32.mrb[250].mxu1 }
0x193e   : > { %v10610_v21 = vpop.f32.mrb[251].mxu1 }
0x19b0   : > { %v9876_v9 = vpop.f32.mrb[236].mxu0 }
0x19b1   : > { %v9877_v35 = vpop.f32.mrb[237].mxu0 }
0x19b2   : > { %v9878_v26 = vadd.f32 %v9877_v35, %v9876_v9  ;;  %v9879_v28 = vpop.f32.mrb[238].mxu0 }
0x19b3   : > { %v9880_v31 = vpop.f32.mrb[239].mxu0 }
0x19b4   : > { %v9881_v27 = vadd.f32 %v9880_v31, %v9879_v28  ;;  %v8607_v29 = vadd.f32 %v9878_v26, %v9292_v22 }
0x19b6   : > { %v8648_v47 = vadd.f32 %v8647_v10, %v8607_v29  ;;  %v8610_v36 = vadd.f32 %v9881_v27, %v9292_v22 }
0x19b8   : > { %v8651_v6 = vadd.f32 %v8650_v20, %v8610_v36  ;;  %v8654_v38 = vmax.f32 %v8648_v47, 0.0 }
0x19ba   : > { %v8655_v8 = vmax.f32 %v8651_v6, 0.0 }
0x19bc   : > { %v8656_v24 = vpack.c.bf16 %v8655_v8, %v8654_v38 }
0x19be   : > { %v8668_v46 = vsel %vm382_vm2, %v8656_v24, 0 }
0x19bf   : > { %10612 = vmatpush3.bf16.xpose.msra.mxu1 %v8668_v46 }
0x19c0   : > { %8733 = vmatprep.subr.bf16.mxu1 %v11196_v52 }
0x19c6   : > { %10614 = vmatmul.mubr.msk.bf16.vlgmr.msra.gmra.mrb[252].mxu1 %vm382_vm2, %v11193_v58 }
0x19c7   : > { %8734 = vmatpush1.bf16.msra.mxu1 %v11194_v55  ;;  %8765 = vmatprep.mubr.bf16.mxu1 %v11246_v53 }
0x1a99   : > { %v8704_v2 = vpop.f32.mrb[252].mxu1 }
0x1a9a   : > { %v8716_v48 = vadd.f32 %v8714_v63, %v8704_v2  ;;  %v10615_v5 = vpop.f32.mrb[253].mxu1 }
0x1a9b   : > { %v8707_v14 = vpop.f32.mrb[254].mxu1 }
0x1a9c   : > { %v8717_v62 = vpack.c.bf16 %v8716_v48, %v8716_v48  ;;  %v10616_v57 = vpop.f32.mrb[255].mxu1 }
0x1a9e   : > { %9316 = vmatmul.mubr.msk.bf16.vlgmr.msra.gmra.mrb[0].mxu1 %vm282_vm0, %v8717_v62 }
0x1b71   : > { %v8767_v25 = vpop.f32.mrb[0].mxu1 }
0x1b72   : > { %9317 = vst [vmem:[%s13086_s20 + $0x10] sm:$0xff] %v8767_v25  ;;  %v8769_v50 = vpop.f32.mrb[1].mxu1 }
0x1b73   : > { %9318 = vst [vmem:[%s13086_s20 + $0x18] sm:$0xff] %v8769_v50  ;;  %v8771_v61 = vpop.f32.mrb[2].mxu1 }
0x1b74   : > { %v8772_v17 = vpop.f32.mrb[3].mxu1 }
0x1b75 PF: > { %s17_s24 = sadd.s32 1, %s11239_s24  }
0x1b76   : > { %p14_p4 = scmp.ge.s32.totalorder %s17_s24, 4  }
0x1b78   :  { %16 = sbr.rel (!%p14_p4) target bundleno = 1 (0x1), region = 98 }

</bundles_post_ra>
